<compile_context>
chip_gen: v5e
topology: v5e:2x2
jax: 0.10.0
libtpu: 0.0.40
codegen_flags: <defaults>
</compile_context>

<pallas_src>
import functools

import numpy as np
import jax
import jax.numpy as jnp
from jax.experimental import pallas as pl
from jax.experimental.pallas import tpu as pltpu


# ----------------------------- Pallas kernel ------------------------------ #

def _mm_bias_act_kernel(x_ref, w_ref, b_ref, o_ref, *, relu):
    # x: [TM, K] bf16, w: [K, N] bf16, b: [1, N] f32  ->  o: [TM, N] (o_ref.dtype)
    acc = jnp.dot(x_ref[...], w_ref[...], preferred_element_type=jnp.float32)
    acc = acc + b_ref[...].astype(jnp.float32)
    if relu:
        acc = jnp.maximum(acc, 0.0)
    o_ref[...] = acc.astype(o_ref.dtype)


def _round_up(a, b):
    return (a + b - 1) // b * b


def mm_bias_relu(x, w, b, *, relu=True, out_dtype=jnp.bfloat16, tm=512):
    """Fused x @ w + b [-> ReLU], tiled over M, bf16 operands / f32 accumulation."""
    M, K = x.shape
    K2, N = w.shape
    assert K == K2, (K, K2)

    x = x.astype(jnp.bfloat16)
    w = w.astype(jnp.bfloat16)
    b = b.reshape(1, N).astype(jnp.float32)

    # Tile size: multiple of 8 sublanes; shrink for small M, pad M to a tile multiple.
    tm = min(tm, _round_up(M, 8))
    Mp = _round_up(M, tm)
    if Mp != M:
        x = jnp.pad(x, ((0, Mp - M), (0, 0)))

    grid = (Mp // tm,)
    kernel = functools.partial(_mm_bias_act_kernel, relu=relu)
    out = pl.pallas_call(
        kernel,
        out_shape=jax.ShapeDtypeStruct((Mp, N), out_dtype),
        grid=grid,
        in_specs=[
            pl.BlockSpec((tm, K), lambda i: (i, 0)),   # activations: new tile per step
            pl.BlockSpec((K, N), lambda i: (0, 0)),    # weights: resident
            pl.BlockSpec((1, N), lambda i: (0, 0)),    # bias: resident
        ],
        out_specs=pl.BlockSpec((tm, N), lambda i: (i, 0)),
        compiler_params=pltpu.CompilerParams(
            dimension_semantics=("parallel",),
            vmem_limit_bytes=32 * 1024 * 1024,
        ),
    )(x, w, b)

    if Mp != M:
        out = out[:M]
    return out


# ------------------------------ conv as im2col ----------------------------- #

def _im2col_nhwc(x, kh, kw, stride):
    """x: (N, H, W, C) -> ([N*OH*OW, KH*KW*C], OH, OW). Feature order (kh, kw, c)."""
    N, H, W, C = x.shape
    oh = (H - kh) // stride + 1
    ow = (W - kw) // stride + 1
    cols = []
    for i in range(kh):
        for j in range(kw):
            cols.append(x[:, i:i + stride * oh:stride, j:j + stride * ow:stride, :])
    cols = jnp.stack(cols, axis=0).reshape(kh, kw, N, oh, ow, C)
    cols = cols.transpose(2, 3, 4, 0, 1, 5).reshape(N * oh * ow, kh * kw * C)
    return cols, oh, ow


def conv2d_relu_nhwc(x, wmat, b, kh, kw, stride):
    """x: (N,H,W,C) bf16, wmat: (KH*KW*C, OC) bf16, b: (OC,) f32. Returns NHWC bf16."""
    N = x.shape[0]
    oc = wmat.shape[1]
    cols, oh, ow = _im2col_nhwc(x, kh, kw, stride)
    out = mm_bias_relu(cols, wmat, b, relu=True, out_dtype=jnp.bfloat16)
    return out.reshape(N, oh, ow, oc)


# ------------------------------- Agent params ------------------------------ #

def _layer_init(key, out_features, in_shape, std):
    """Deterministic orthogonal init (like layer_init in the PyTorch script)."""
    fan_in = int(np.prod(in_shape))
    w2d = jax.nn.initializers.orthogonal(scale=std)(key, (out_features, fan_in), jnp.float32)
    w = w2d.reshape((out_features,) + tuple(in_shape))
    b = jnp.zeros((out_features,), jnp.float32)
    return w, b


def init_agent_params(key, frames=3, n_actions=8):
    """Parameters in the original PyTorch layout (conv: OC,C,KH,KW; fc: OUT,IN)."""
    k1, k2, k3, k4, k5, k6 = jax.random.split(key, 6)
    sqrt2 = float(np.sqrt(2.0))
    p = {}
    p["c1w"], p["c1b"] = _layer_init(k1, 32, (frames, 8, 8), sqrt2)
    p["c2w"], p["c2b"] = _layer_init(k2, 64, (32, 4, 4), sqrt2)
    p["c3w"], p["c3b"] = _layer_init(k3, 64, (64, 3, 3), sqrt2)
    p["fcw"], p["fcb"] = _layer_init(k4, 512, (1536,), sqrt2)
    # actor / critic heads exist on the module; forward() does not use them.
    p["actor_w"], p["actor_b"] = _layer_init(k5, n_actions, (512,), 0.01)
    p["critic_w"], p["critic_b"] = _layer_init(k6, 1, (512,), 1.0)
    return p


def prepare_params(p):
    """One-time re-layout to kernel-ready matrices (bf16 weights, f32 biases)."""
    def convmat(w):  # (OC, C, KH, KW) -> (KH*KW*C, OC), matching (kh,kw,c) im2col order
        oc, c, kh, kw = w.shape
        return jnp.transpose(w, (2, 3, 1, 0)).reshape(kh * kw * c, oc)

    w1 = convmat(p["c1w"]) * (1.0 / 255.0)          # fold Scale(1/255) into conv1 weights
    w2 = convmat(p["c2w"])
    w3 = convmat(p["c3w"])

    # PyTorch flattens (N, 64, 4, 6) in (C,H,W) order; our activations are (H,W,C).
    # Re-permute the FC columns once and pre-transpose to (1536, 512).
    fcw = p["fcw"].reshape(512, 64, 4, 6).transpose(0, 2, 3, 1).reshape(512, 1536).T

    return {
        "w1": w1.astype(jnp.bfloat16), "b1": p["c1b"].astype(jnp.float32),
        "w2": w2.astype(jnp.bfloat16), "b2": p["c2b"].astype(jnp.float32),
        "w3": w3.astype(jnp.bfloat16), "b3": p["c3b"].astype(jnp.float32),
        "fcw": fcw.astype(jnp.bfloat16), "fcb": p["fcb"].astype(jnp.float32),
    }


# ------------------------------ Agent.forward ------------------------------ #

@jax.jit
def agent_forward(prep, x):
    """x: (N, 3, 60, 80) float32 in [0, 255]  ->  (N, 512) float32 features."""
    # Single layout fix-up: NCHW -> NHWC, bf16 (1/255 already folded into w1).
    h = jnp.transpose(x, (0, 2, 3, 1)).astype(jnp.bfloat16)       # (N,60,80,3)
    h = conv2d_relu_nhwc(h, prep["w1"], prep["b1"], 8, 8, 4)      # (N,14,19,32)
    h = conv2d_relu_nhwc(h, prep["w2"], prep["b2"], 4, 4, 2)      # (N, 6, 8,64)
    h = conv2d_relu_nhwc(h, prep["w3"], prep["b3"], 3, 3, 1)      # (N, 4, 6,64)
    n = h.shape[0]
    h = h.reshape(n, 4 * 6 * 64)                                  # HWC flatten (fcw re-permuted to match)
    h = mm_bias_relu(h, prep["fcw"], prep["fcb"], relu=True, out_dtype=jnp.float32)
    return h
    # TODO(synk): get_action's Categorical sampling / log_prob / entropy are not part of forward().
    # TODO(synk): a single fully-fused conv-stack kernel (in-kernel im2col) could further cut
    #             launch/HBM overhead at very small batch; kept per-layer tiled kernels for robustness.


# ----------------------------------- main ----------------------------------- #

if __name__ == "__main__":
    key = jax.random.PRNGKey(0)
    pkey, xkey = jax.random.split(key)

    params = init_agent_params(pkey, frames=3, n_actions=8)
    prep = prepare_params(params)

    # Observation shape fixed by the module (Linear(1536,512) implies 3x60x80 input).
    batch = 2
    x = jax.random.uniform(xkey, (batch, 3, 60, 80), dtype=jnp.float32) * 255.0

    feats = agent_forward(prep, x)
    feats = jax.block_until_ready(feats)

    assert feats.shape == (batch, 512), feats.shape
    assert feats.dtype == jnp.float32
    assert bool(jnp.all(jnp.isfinite(feats)))
    print("KERNEL_OK")
</pallas_src>

<mosaic_0001>
module attributes {stable_mosaic.version = 11 : i64} {
  func.func @_mm_bias_act_kernel(%arg0: i32, %arg1: memref<512x192xbf16, #tpu.memory_space<vmem>>, %arg2: memref<192x32xbf16, #tpu.memory_space<vmem>>, %arg3: memref<1x32xf32, #tpu.memory_space<vmem>>, %arg4: memref<512x32xbf16, #tpu.memory_space<vmem>>) attributes {dimension_semantics = [#tpu.dimension_semantics<parallel>], iteration_bounds = array<i64: 2>, scalar_prefetch = 0 : i64, scratch_operands = 0 : i64, tpu.core_type = #tpu.core_type<tc>, window_params = [{transform_indices = @transform_0, window_bounds = array<i64: 512, 192>}, {pipeline_mode = #tpu.pipeline_mode<synchronous>, transform_indices = @transform_1, window_bounds = array<i64: 192, 32>}, {pipeline_mode = #tpu.pipeline_mode<synchronous>, transform_indices = @transform_2, window_bounds = array<i64: 1, 32>}, {transform_indices = @transform_3, window_bounds = array<i64: 512, 32>}]} {
    %c0 = arith.constant 0 : index
    %c0_0 = arith.constant 0 : index
    %0 = vector.load %arg1[%c0, %c0_0] : memref<512x192xbf16, #tpu.memory_space<vmem>>, vector<512x192xbf16>
    %c0_1 = arith.constant 0 : index
    %c0_2 = arith.constant 0 : index
    %1 = vector.load %arg2[%c0_1, %c0_2] : memref<192x32xbf16, #tpu.memory_space<vmem>>, vector<192x32xbf16>
    %cst = arith.constant dense<0.000000e+00> : vector<512x32xf32>
    %2 = tpu.matmul %0, %1, %cst {dimension_numbers = #tpu.dot_dimension_numbers<[1], [0], [0], [1], [0, 0, 1, 1], [], []>} : vector<512x192xbf16>, vector<192x32xbf16>, vector<512x32xf32> -> vector<512x32xf32>
    %c0_3 = arith.constant 0 : index
    %c0_4 = arith.constant 0 : index
    %3 = vector.load %arg3[%c0_3, %c0_4] : memref<1x32xf32, #tpu.memory_space<vmem>>, vector<1x32xf32>
    %4 = vector.broadcast %3 : vector<1x32xf32> to vector<512x32xf32>
    %5 = arith.addf %2, %4 : vector<512x32xf32>
    %cst_5 = arith.constant 0.000000e+00 : f32
    %6 = vector.broadcast %cst_5 : f32 to vector<512x32xf32>
    %7 = arith.maximumf %5, %6 : vector<512x32xf32>
    %8 = arith.truncf %7 : vector<512x32xf32> to vector<512x32xbf16>
    %c0_6 = arith.constant 0 : index
    %c0_7 = arith.constant 0 : index
    %9 = vector.load %arg4[%c0_6, %c0_7] : memref<512x32xbf16, #tpu.memory_space<vmem>>, vector<512x32xbf16>
    tpu.vector_store %arg4[%c0_6, %c0_7], %8 {strides = array<i32>} : memref<512x32xbf16, #tpu.memory_space<vmem>>, vector<512x32xbf16>,
    return
  }
  func.func @transform_0(%arg0: i32) -> (i32, i32) {
    %c0_i32 = arith.constant 0 : i32
    %c0_i32_0 = arith.constant 0 : i32
    return %arg0, %c0_i32 : i32, i32
  }
  func.func @transform_1(%arg0: i32) -> (i32, i32) {
    %c0_i32 = arith.constant 0 : i32
    %c0_i32_0 = arith.constant 0 : i32
    %c0_i32_1 = arith.constant 0 : i32
    return %c0_i32, %c0_i32_0 : i32, i32
  }
  func.func @transform_2(%arg0: i32) -> (i32, i32) {
    %c0_i32 = arith.constant 0 : i32
    %c0_i32_0 = arith.constant 0 : i32
    %c0_i32_1 = arith.constant 0 : i32
    return %c0_i32, %c0_i32_0 : i32, i32
  }
  func.func @transform_3(%arg0: i32) -> (i32, i32) {
    %c0_i32 = arith.constant 0 : i32
    %c0_i32_0 = arith.constant 0 : i32
    return %arg0, %c0_i32 : i32, i32
  }
}

module attributes {stable_mosaic.version = 11 : i64} {
  func.func @_mm_bias_act_kernel(%arg0: i32, %arg1: memref<96x512xbf16, #tpu.memory_space<vmem>>, %arg2: memref<512x64xbf16, #tpu.memory_space<vmem>>, %arg3: memref<1x64xf32, #tpu.memory_space<vmem>>, %arg4: memref<96x64xbf16, #tpu.memory_space<vmem>>) attributes {dimension_semantics = [#tpu.dimension_semantics<parallel>], iteration_bounds = array<i64: 1>, scalar_prefetch = 0 : i64, scratch_operands = 0 : i64, tpu.core_type = #tpu.core_type<tc>, window_params = [{transform_indices = @transform_0, window_bounds = array<i64: 96, 512>}, {pipeline_mode = #tpu.pipeline_mode<synchronous>, transform_indices = @transform_1, window_bounds = array<i64: 512, 64>}, {pipeline_mode = #tpu.pipeline_mode<synchronous>, transform_indices = @transform_2, window_bounds = array<i64: 1, 64>}, {transform_indices = @transform_3, window_bounds = array<i64: 96, 64>}]} {
    %c0 = arith.constant 0 : index
    %c0_0 = arith.constant 0 : index
    %0 = vector.load %arg1[%c0, %c0_0] : memref<96x512xbf16, #tpu.memory_space<vmem>>, vector<96x512xbf16>
    %c0_1 = arith.constant 0 : index
    %c0_2 = arith.constant 0 : index
    %1 = vector.load %arg2[%c0_1, %c0_2] : memref<512x64xbf16, #tpu.memory_space<vmem>>, vector<512x64xbf16>
    %cst = arith.constant dense<0.000000e+00> : vector<96x64xf32>
    %2 = tpu.matmul %0, %1, %cst {dimension_numbers = #tpu.dot_dimension_numbers<[1], [0], [0], [1], [0, 0, 1, 1], [], []>} : vector<96x512xbf16>, vector<512x64xbf16>, vector<96x64xf32> -> vector<96x64xf32>
    %c0_3 = arith.constant 0 : index
    %c0_4 = arith.constant 0 : index
    %3 = vector.load %arg3[%c0_3, %c0_4] : memref<1x64xf32, #tpu.memory_space<vmem>>, vector<1x64xf32>
    %4 = vector.broadcast %3 : vector<1x64xf32> to vector<96x64xf32>
    %5 = arith.addf %2, %4 : vector<96x64xf32>
    %cst_5 = arith.constant 0.000000e+00 : f32
    %6 = vector.broadcast %cst_5 : f32 to vector<96x64xf32>
    %7 = arith.maximumf %5, %6 : vector<96x64xf32>
    %8 = arith.truncf %7 : vector<96x64xf32> to vector<96x64xbf16>
    %c0_6 = arith.constant 0 : index
    %c0_7 = arith.constant 0 : index
    %9 = vector.load %arg4[%c0_6, %c0_7] : memref<96x64xbf16, #tpu.memory_space<vmem>>, vector<96x64xbf16>
    tpu.vector_store %arg4[%c0_6, %c0_7], %8 {strides = array<i32>} : memref<96x64xbf16, #tpu.memory_space<vmem>>, vector<96x64xbf16>,
    return
  }
  func.func @transform_0(%arg0: i32) -> (i32, i32) {
    %c0_i32 = arith.constant 0 : i32
    %c0_i32_0 = arith.constant 0 : i32
    return %arg0, %c0_i32 : i32, i32
  }
  func.func @transform_1(%arg0: i32) -> (i32, i32) {
    %c0_i32 = arith.constant 0 : i32
    %c0_i32_0 = arith.constant 0 : i32
    %c0_i32_1 = arith.constant 0 : i32
    return %c0_i32, %c0_i32_0 : i32, i32
  }
  func.func @transform_2(%arg0: i32) -> (i32, i32) {
    %c0_i32 = arith.constant 0 : i32
    %c0_i32_0 = arith.constant 0 : i32
    %c0_i32_1 = arith.constant 0 : i32
    return %c0_i32, %c0_i32_0 : i32, i32
  }
  func.func @transform_3(%arg0: i32) -> (i32, i32) {
    %c0_i32 = arith.constant 0 : i32
    %c0_i32_0 = arith.constant 0 : i32
    return %arg0, %c0_i32 : i32, i32
  }
}

module attributes {stable_mosaic.version = 11 : i64} {
  func.func @_mm_bias_act_kernel(%arg0: i32, %arg1: memref<48x576xbf16, #tpu.memory_space<vmem>>, %arg2: memref<576x64xbf16, #tpu.memory_space<vmem>>, %arg3: memref<1x64xf32, #tpu.memory_space<vmem>>, %arg4: memref<48x64xbf16, #tpu.memory_space<vmem>>) attributes {dimension_semantics = [#tpu.dimension_semantics<parallel>], iteration_bounds = array<i64: 1>, scalar_prefetch = 0 : i64, scratch_operands = 0 : i64, tpu.core_type = #tpu.core_type<tc>, window_params = [{transform_indices = @transform_0, window_bounds = array<i64: 48, 576>}, {pipeline_mode = #tpu.pipeline_mode<synchronous>, transform_indices = @transform_1, window_bounds = array<i64: 576, 64>}, {pipeline_mode = #tpu.pipeline_mode<synchronous>, transform_indices = @transform_2, window_bounds = array<i64: 1, 64>}, {transform_indices = @transform_3, window_bounds = array<i64: 48, 64>}]} {
    %c0 = arith.constant 0 : index
    %c0_0 = arith.constant 0 : index
    %0 = vector.load %arg1[%c0, %c0_0] : memref<48x576xbf16, #tpu.memory_space<vmem>>, vector<48x576xbf16>
    %c0_1 = arith.constant 0 : index
    %c0_2 = arith.constant 0 : index
    %1 = vector.load %arg2[%c0_1, %c0_2] : memref<576x64xbf16, #tpu.memory_space<vmem>>, vector<576x64xbf16>
    %cst = arith.constant dense<0.000000e+00> : vector<48x64xf32>
    %2 = tpu.matmul %0, %1, %cst {dimension_numbers = #tpu.dot_dimension_numbers<[1], [0], [0], [1], [0, 0, 1, 1], [], []>} : vector<48x576xbf16>, vector<576x64xbf16>, vector<48x64xf32> -> vector<48x64xf32>
    %c0_3 = arith.constant 0 : index
    %c0_4 = arith.constant 0 : index
    %3 = vector.load %arg3[%c0_3, %c0_4] : memref<1x64xf32, #tpu.memory_space<vmem>>, vector<1x64xf32>
    %4 = vector.broadcast %3 : vector<1x64xf32> to vector<48x64xf32>
    %5 = arith.addf %2, %4 : vector<48x64xf32>
    %cst_5 = arith.constant 0.000000e+00 : f32
    %6 = vector.broadcast %cst_5 : f32 to vector<48x64xf32>
    %7 = arith.maximumf %5, %6 : vector<48x64xf32>
    %8 = arith.truncf %7 : vector<48x64xf32> to vector<48x64xbf16>
    %c0_6 = arith.constant 0 : index
    %c0_7 = arith.constant 0 : index
    %9 = vector.load %arg4[%c0_6, %c0_7] : memref<48x64xbf16, #tpu.memory_space<vmem>>, vector<48x64xbf16>
    tpu.vector_store %arg4[%c0_6, %c0_7], %8 {strides = array<i32>} : memref<48x64xbf16, #tpu.memory_space<vmem>>, vector<48x64xbf16>,
    return
  }
  func.func @transform_0(%arg0: i32) -> (i32, i32) {
    %c0_i32 = arith.constant 0 : i32
    %c0_i32_0 = arith.constant 0 : i32
    return %arg0, %c0_i32 : i32, i32
  }
  func.func @transform_1(%arg0: i32) -> (i32, i32) {
    %c0_i32 = arith.constant 0 : i32
    %c0_i32_0 = arith.constant 0 : i32
    %c0_i32_1 = arith.constant 0 : i32
    return %c0_i32, %c0_i32_0 : i32, i32
  }
  func.func @transform_2(%arg0: i32) -> (i32, i32) {
    %c0_i32 = arith.constant 0 : i32
    %c0_i32_0 = arith.constant 0 : i32
    %c0_i32_1 = arith.constant 0 : i32
    return %c0_i32, %c0_i32_0 : i32, i32
  }
  func.func @transform_3(%arg0: i32) -> (i32, i32) {
    %c0_i32 = arith.constant 0 : i32
    %c0_i32_0 = arith.constant 0 : i32
    return %arg0, %c0_i32 : i32, i32
  }
}

module attributes {stable_mosaic.version = 11 : i64} {
  func.func @_mm_bias_act_kernel(%arg0: i32, %arg1: memref<8x1536xbf16, #tpu.memory_space<vmem>>, %arg2: memref<1536x512xbf16, #tpu.memory_space<vmem>>, %arg3: memref<1x512xf32, #tpu.memory_space<vmem>>, %arg4: memref<8x512xf32, #tpu.memory_space<vmem>>) attributes {dimension_semantics = [#tpu.dimension_semantics<parallel>], iteration_bounds = array<i64: 1>, scalar_prefetch = 0 : i64, scratch_operands = 0 : i64, tpu.core_type = #tpu.core_type<tc>, window_params = [{transform_indices = @transform_0, window_bounds = array<i64: 8, 1536>}, {pipeline_mode = #tpu.pipeline_mode<synchronous>, transform_indices = @transform_1, window_bounds = array<i64: 1536, 512>}, {pipeline_mode = #tpu.pipeline_mode<synchronous>, transform_indices = @transform_2, window_bounds = array<i64: 1, 512>}, {transform_indices = @transform_3, window_bounds = array<i64: 8, 512>}]} {
    %c0 = arith.constant 0 : index
    %c0_0 = arith.constant 0 : index
    %0 = vector.load %arg1[%c0, %c0_0] : memref<8x1536xbf16, #tpu.memory_space<vmem>>, vector<8x1536xbf16>
    %c0_1 = arith.constant 0 : index
    %c0_2 = arith.constant 0 : index
    %1 = vector.load %arg2[%c0_1, %c0_2] : memref<1536x512xbf16, #tpu.memory_space<vmem>>, vector<1536x512xbf16>
    %cst = arith.constant dense<0.000000e+00> : vector<8x512xf32>
    %2 = tpu.matmul %0, %1, %cst {dimension_numbers = #tpu.dot_dimension_numbers<[1], [0], [0], [1], [0, 0, 1, 1], [], []>} : vector<8x1536xbf16>, vector<1536x512xbf16>, vector<8x512xf32> -> vector<8x512xf32>
    %c0_3 = arith.constant 0 : index
    %c0_4 = arith.constant 0 : index
    %3 = vector.load %arg3[%c0_3, %c0_4] : memref<1x512xf32, #tpu.memory_space<vmem>>, vector<1x512xf32>
    %4 = vector.broadcast %3 : vector<1x512xf32> to vector<8x512xf32>
    %5 = arith.addf %2, %4 : vector<8x512xf32>
    %cst_5 = arith.constant 0.000000e+00 : f32
    %6 = vector.broadcast %cst_5 : f32 to vector<8x512xf32>
    %7 = arith.maximumf %5, %6 : vector<8x512xf32>
    %c0_6 = arith.constant 0 : index
    %c0_7 = arith.constant 0 : index
    %8 = vector.load %arg4[%c0_6, %c0_7] : memref<8x512xf32, #tpu.memory_space<vmem>>, vector<8x512xf32>
    tpu.vector_store %arg4[%c0_6, %c0_7], %7 {strides = array<i32>} : memref<8x512xf32, #tpu.memory_space<vmem>>, vector<8x512xf32>,
    return
  }
  func.func @transform_0(%arg0: i32) -> (i32, i32) {
    %c0_i32 = arith.constant 0 : i32
    %c0_i32_0 = arith.constant 0 : i32
    return %arg0, %c0_i32 : i32, i32
  }
  func.func @transform_1(%arg0: i32) -> (i32, i32) {
    %c0_i32 = arith.constant 0 : i32
    %c0_i32_0 = arith.constant 0 : i32
    %c0_i32_1 = arith.constant 0 : i32
    return %c0_i32, %c0_i32_0 : i32, i32
  }
  func.func @transform_2(%arg0: i32) -> (i32, i32) {
    %c0_i32 = arith.constant 0 : i32
    %c0_i32_0 = arith.constant 0 : i32
    %c0_i32_1 = arith.constant 0 : i32
    return %c0_i32, %c0_i32_0 : i32, i32
  }
  func.func @transform_3(%arg0: i32) -> (i32, i32) {
    %c0_i32 = arith.constant 0 : i32
    %c0_i32_0 = arith.constant 0 : i32
    return %arg0, %c0_i32 : i32, i32
  }
}

</mosaic_0001>

<bundles_post_ra>
// kernel: agent_forward.4
= control target key start
LH: loop header
LB: loop body
LE: loop exit
PB: predicated region body
PF: predicated region fallthrough
CT: control target
= control target key end

     0   :  { %s1789_s12 = smov 0   ;;  %s2253_s0 = inlined_call_operand.vmem [shape: bf16[1024,192], index: 0, kind: input, shape index: {}]   ;;  %s2254_s1 = inlined_call_operand.vmem [shape: bf16[192,32], index: 1, kind: input, shape index: {}]   ;;  %s2255_s2 = inlined_call_operand.vmem [shape: f32[1,32], index: 2, kind: input, shape index: {}]   ;;  %s2256_s3 = inlined_call_operand.vmem [shape: bf16[1024,32], index: 3, kind: output, shape index: {}]  }
   0x1 LB: > { %s1314_s13 = sadd.s32 4294967295, %s1767_s12   ;;  %p1318_p0 = scmp.ge.s32.totalorder %s1767_s12, 1  ;;  %s1767_s12 = sphi %s1789_s12, %s13_s12  }
   0x2   : > { %p139_p1 = scmp.lt.s32.totalorder %s1767_s12, 3 }
   0x4   : > { %p140_p2 = pnand %p1318_p0, %p139_p1 }
   0x5   : > { %s1319_s18 = sshll.u32 (!%p140_p2), %s1314_s13, 6 }
   0x6   : > { %143 = sbr.rel (%p140_p2) target bundleno = 433 (0x1b1), region = 32  ;;  %p165_p3 = scmp.lt.s32.totalorder (!%p140_p2), %s1319_s18, 127 }
   0xb   : > { %v1734_v0 = vld [vmem:[%s2254_s1 + $0x38] sm:$0xff]  ;;  %v1733_v2 = vld [vmem:[%s2254_s1 + $0x30] sm:$0xff]  ;;  %s2258_s18 = smov (!%p165_p3, %s1319_s18), 127  ;;  %v1732_v4 = vld [vmem:[%s2254_s1 + $0x28] sm:$0xff]  ;;  %vm630_vm0 = vcmask 523264   ;;  %vm1193_vm1 = vcmask 257024  }
   0xc   : > { %v1738_v1 = vld [vmem:[%s2254_s1 + $0x58] sm:$0xff]  ;;  %727 = vmatpush.bf16.msra.mxu0 %v1734_v0  ;;  %1739 = vmatpush.bf16.msra.mxu2 %v1734_v0  ;;  %v1737_v3 = vld [vmem:[%s2254_s1 + $0x50] sm:$0xff]  ;;  %s1662_s23 = sshll.u32 %s2258_s18, 3  ;;  %v1736_v5 = vld [vmem:[%s2254_s1 + $0x48] sm:$0xff]  ;;  %s1323_s20 = sshll.u32 %s2258_s18, 2 }
   0xd   : > { %900 = vmatpush.bf16.msra.mxu1 %v1738_v1  ;;  %1747 = vmatpush.bf16.msra.mxu3 %v1738_v1  ;;  %s1821_s30 = scalar_lea.vmem %s2253_s0, %s1662_s23  ;;  %v1731_v6 = vld [vmem:[%s2254_s1 + $0x20] sm:$0xff]  ;;  %v1730_v13 = vld [vmem:[%s2254_s1 + $0x18] sm:$0xff]  ;;  %v1729_v15 = vld [vmem:[%s2254_s1 + $0x10] sm:$0xff]  ;;  %s1951_s23 = scalar_lea.vmem %s2256_s3, %s1323_s20 }
   0xe   : > { %v1735_v7 = vld [vmem:[%s2254_s1 + $0x40] sm:$0xff]  ;;  %v1328_v9 = vld [vmem:[%s1821_s30 + $0x8] sm:$0xf0]  ;;  %v1697_v10 = vld [vmem:[%s1821_s30 + $0x114] sm:$0xf] }
   0xf   : > { %v1663_v8 = vld [vmem:[%s1821_s30 + $0x4] sm:$0xf]  ;;  %v1464_v11 = vld [vmem:[%s1821_s30 + $0x118] sm:$0xf0]  ;;  %v1728_v16 = vld [vmem:[%s2254_s1 + $0x8] sm:$0xff] }
  0x10   : > { %728 = vmatpush.bf16.msra.mxu0 %v1733_v2  ;;  %1740 = vmatpush.bf16.msra.mxu2 %v1733_v2  ;;  %v1331_v12 = vor.u32 %v1663_v8, %v1328_v9  ;;  %v1467_v14 = vor.u32 %v1697_v10, %v1464_v11  ;;  %v1727_v17 = vld [vmem:[%s2254_s1] sm:$0xff]  ;;  %v1664_v19 = vld [vmem:[%s1821_s30 + $0x4] sm:$0xf0]  ;;  %v1665_v22 = vld [vmem:[%s1821_s30 + $0x14] sm:$0xf] }
  0x11   : > { %901 = vmatpush.bf16.msra.mxu1 %v1737_v3  ;;  %1748 = vmatpush.bf16.msra.mxu3 %v1737_v3  ;;  %v1326_v18 = vld [vmem:[%s1821_s30] sm:$0xf]  ;;  %v1696_v21 = vld [vmem:[%s1821_s30 + $0x104] sm:$0xf0]  ;;  %v1336_v23 = vld [vmem:[%s1821_s30 + $0x18] sm:$0xf0] }
  0x12   : > { %v1454_v20 = vld [vmem:[%s1821_s30 + $0x100] sm:$0xf]  ;;  %v1699_v24 = vld [vmem:[%s1821_s30 + $0x124] sm:$0xf]  ;;  %v1472_v25 = vld [vmem:[%s1821_s30 + $0x128] sm:$0xf0]  ;;  %v1327_v26 = vor.u32 %v1664_v19, %v1326_v18  ;;  %v1339_v28 = vor.u32 %v1665_v22, %v1336_v23 }
  0x13   : > { %v1455_v27 = vor.u32 %v1696_v21, %v1454_v20  ;;  %v1475_v29 = vor.u32 %v1699_v24, %v1472_v25  ;;  %v1334_v30 = vld [vmem:[%s1821_s30 + $0x10] sm:$0xf]  ;;  %v1666_v31 = vld [vmem:[%s1821_s30 + $0x14] sm:$0xf0]  ;;  %v1667_v34 = vld [vmem:[%s1821_s30 + $0x24] sm:$0xf] }
  0x14   : > { %729 = vmatpush.bf16.msra.mxu0 %v1732_v4  ;;  %1741 = vmatpush.bf16.msra.mxu2 %v1732_v4  ;;  %v1462_v32 = vld [vmem:[%s1821_s30 + $0x110] sm:$0xf]  ;;  %v1698_v33 = vld [vmem:[%s1821_s30 + $0x114] sm:$0xf0]  ;;  %v1344_v35 = vld [vmem:[%s1821_s30 + $0x28] sm:$0xf0]  ;;  %v1335_v38 = vor.u32 %v1666_v31, %v1334_v30 }
  0x15   : > { %902 = vmatpush.bf16.msra.mxu1 %v1736_v5  ;;  %1749 = vmatpush.bf16.msra.mxu3 %v1736_v5  ;;  %v1701_v36 = vld [vmem:[%s1821_s30 + $0x134] sm:$0xf]  ;;  %v1480_v37 = vld [vmem:[%s1821_s30 + $0x138] sm:$0xf0]  ;;  %v1463_v39 = vor.u32 %v1698_v33, %v1462_v32  ;;  %v1347_v40 = vor.u32 %v1667_v34, %v1344_v35  ;;  %v1342_v42 = vld [vmem:[%s1821_s30 + $0x20] sm:$0xf] }
  0x16   : > { %v1483_v41 = vor.u32 %v1701_v36, %v1480_v37  ;;  %v1668_v43 = vld [vmem:[%s1821_s30 + $0x24] sm:$0xf0]  ;;  %v1470_v44 = vld [vmem:[%s1821_s30 + $0x120] sm:$0xf]  ;;  %v1669_v46 = vld [vmem:[%s1821_s30 + $0x34] sm:$0xf] }
  0x17   : > { %v1700_v45 = vld [vmem:[%s1821_s30 + $0x124] sm:$0xf0]  ;;  %v1352_v47 = vld [vmem:[%s1821_s30 + $0x38] sm:$0xf0]  ;;  %v1703_v48 = vld [vmem:[%s1821_s30 + $0x144] sm:$0xf]  ;;  %v1343_v50 = vor.u32 %v1668_v43, %v1342_v42 }
  0x18   : > { %730 = vmatpush.bf16.msra.mxu0 %v1731_v6  ;;  %1742 = vmatpush.bf16.msra.mxu2 %v1731_v6  ;;  %v1488_v49 = vld [vmem:[%s1821_s30 + $0x148] sm:$0xf0]  ;;  %v1471_v51 = vor.u32 %v1700_v45, %v1470_v44  ;;  %v1355_v52 = vor.u32 %v1669_v46, %v1352_v47  ;;  %v1350_v54 = vld [vmem:[%s1821_s30 + $0x30] sm:$0xf]  ;;  %v1670_v55 = vld [vmem:[%s1821_s30 + $0x34] sm:$0xf0] }
  0x19   : > { %903 = vmatpush.bf16.msra.mxu1 %v1735_v7  ;;  %1750 = vmatpush.bf16.msra.mxu3 %v1735_v7  ;;  %v1491_v53 = vor.u32 %v1703_v48, %v1488_v49  ;;  %v1478_v56 = vld [vmem:[%s1821_s30 + $0x130] sm:$0xf]  ;;  %v1702_v57 = vld [vmem:[%s1821_s30 + $0x134] sm:$0xf0]  ;;  %v1671_v58 = vld [vmem:[%s1821_s30 + $0x44] sm:$0xf]  ;;  %v1351_v62 = vor.u32 %v1670_v55, %v1350_v54 }
  0x1a   : > { %v1360_v59 = vld [vmem:[%s1821_s30 + $0x48] sm:$0xf0]  ;;  %v1705_v60 = vld [vmem:[%s1821_s30 + $0x154] sm:$0xf]  ;;  %v1496_v61 = vld [vmem:[%s1821_s30 + $0x158] sm:$0xf0]  ;;  %v1479_v63 = vor.u32 %v1702_v57, %v1478_v56 }
  0x1b   : > { %v1363_v0 = vor.u32 %v1671_v58, %v1360_v59  ;;  %v1499_v1 = vor.u32 %v1705_v60, %v1496_v61  ;;  %v1358_v2 = vld [vmem:[%s1821_s30 + $0x40] sm:$0xf]  ;;  %v1672_v3 = vld [vmem:[%s1821_s30 + $0x44] sm:$0xf0]  ;;  %v1673_v6 = vld [vmem:[%s1821_s30 + $0x54] sm:$0xf] }
  0x1c   : > { %1628 = vmatmul.msk.bf16.vlgmr.msra.gmra.mxu1 %vm630_vm0, %v1331_v12  ;;  %731 = vmatpush.bf16.msra.mxu0 %v1730_v13  ;;  %v1486_v4 = vld [vmem:[%s1821_s30 + $0x140] sm:$0xf]  ;;  %v1704_v5 = vld [vmem:[%s1821_s30 + $0x144] sm:$0xf0]  ;;  %v1368_v7 = vld [vmem:[%s1821_s30 + $0x58] sm:$0xf0]  ;;  %v1359_v10 = vor.u32 %v1672_v3, %v1358_v2 }
  0x1d   : > { %1743 = vmatpush.bf16.msra.mxu2 %v1730_v13  ;;  %1645 = vmatmul.msk.bf16.vlgmr.msra.gmra.mxu3 %vm630_vm0, %v1467_v14  ;;  %v1707_v8 = vld [vmem:[%s1821_s30 + $0x164] sm:$0xf]  ;;  %v1504_v9 = vld [vmem:[%s1821_s30 + $0x168] sm:$0xf0]  ;;  %v1487_v11 = vor.u32 %v1704_v5, %v1486_v4  ;;  %v1371_v12 = vor.u32 %v1673_v6, %v1368_v7  ;;  %v1366_v14 = vld [vmem:[%s1821_s30 + $0x50] sm:$0xf] }
  0x1e   : > { %v1507_v13 = vor.u32 %v1707_v8, %v1504_v9  ;;  %v1675_v18 = vld [vmem:[%s1821_s30 + $0x64] sm:$0xf]  ;;  %v1376_v19 = vld [vmem:[%s1821_s30 + $0x68] sm:$0xf0]  ;;  %v1709_v20 = vld [vmem:[%s1821_s30 + $0x174] sm:$0xf] }
  0x1f   : > { %v1512_v21 = vld [vmem:[%s1821_s30 + $0x178] sm:$0xf0]  ;;  %v1379_v24 = vor.u32 %v1675_v18, %v1376_v19  ;;  %v1677_v30 = vld [vmem:[%s1821_s30 + $0x74] sm:$0xf]  ;;  %v1711_v32 = vld [vmem:[%s1821_s30 + $0x184] sm:$0xf] }
  0x20   : > { %732 = vmatpush.bf16.msra.mxu0 %v1729_v15  ;;  %v1515_v25 = vor.u32 %v1709_v20, %v1512_v21  ;;  %v1384_v31 = vld [vmem:[%s1821_s30 + $0x78] sm:$0xf0]  ;;  %v1520_v33 = vld [vmem:[%s1821_s30 + $0x188] sm:$0xf0]  ;;  %v1679_v42 = vld [vmem:[%s1821_s30 + $0x84] sm:$0xf] }
  0x21   : > { %1744 = vmatpush.bf16.msra.mxu2 %v1729_v15  ;;  %v1674_v15 = vld [vmem:[%s1821_s30 + $0x54] sm:$0xf0]  ;;  %v1387_v36 = vor.u32 %v1677_v30, %v1384_v31  ;;  %v1523_v37 = vor.u32 %v1711_v32, %v1520_v33  ;;  %v1392_v43 = vld [vmem:[%s1821_s30 + $0x88] sm:$0xf0]  ;;  %v1713_v44 = vld [vmem:[%s1821_s30 + $0x194] sm:$0xf] }
  0x22   : > { %v1367_v22 = vor.u32 %v1674_v15, %v1366_v14  ;;  %v1528_v45 = vld [vmem:[%s1821_s30 + $0x198] sm:$0xf0]  ;;  %v1395_v48 = vor.u32 %v1679_v42, %v1392_v43  ;;  %v1390_v54 = vld [vmem:[%s1821_s30 + $0x80] sm:$0xf]  ;;  %v1680_v55 = vld [vmem:[%s1821_s30 + $0x84] sm:$0xf0] }
  0x23   : > { %v1518_v56 = vld [vmem:[%s1821_s30 + $0x180] sm:$0xf]  ;;  %v1712_v57 = vld [vmem:[%s1821_s30 + $0x184] sm:$0xf0]  ;;  %v1681_v58 = vld [vmem:[%s1821_s30 + $0x94] sm:$0xf] }
  0x24   : > { %733 = vmatpush.bf16.msra.mxu0 %v1728_v16  ;;  %v1400_v59 = vld [vmem:[%s1821_s30 + $0x98] sm:$0xf0]  ;;  %v1715_v60 = vld [vmem:[%s1821_s30 + $0x1a4] sm:$0xf]  ;;  %v1536_v61 = vld [vmem:[%s1821_s30 + $0x1a8] sm:$0xf0] }
  0x25   : > { %1745 = vmatpush.bf16.msra.mxu2 %v1728_v16  ;;  %v1494_v16 = vld [vmem:[%s1821_s30 + $0x150] sm:$0xf]  ;;  %v1539_v5 = vor.u32 %v1715_v60, %v1536_v61  ;;  %v1714_v18 = vld [vmem:[%s1821_s30 + $0x194] sm:$0xf0]  ;;  %v1683_v20 = vld [vmem:[%s1821_s30 + $0xa4] sm:$0xf] }
  0x26   : > { %v1398_v15 = vld [vmem:[%s1821_s30 + $0x90] sm:$0xf]  ;;  %v1408_v21 = vld [vmem:[%s1821_s30 + $0xa8] sm:$0xf0] }
  0x28   : > { %734 = vmatpush.bf16.msra.mxu0 %v1727_v17 }
  0x29   : > { %1746 = vmatpush.bf16.msra.mxu2 %v1727_v17  ;;  %v1706_v17 = vld [vmem:[%s1821_s30 + $0x154] sm:$0xf0] }
  0x2a   : > { %v1495_v23 = vor.u32 %v1706_v17, %v1494_v16  ;;  %v1682_v16 = vld [vmem:[%s1821_s30 + $0x94] sm:$0xf0]  ;;  %v1526_v17 = vld [vmem:[%s1821_s30 + $0x190] sm:$0xf] }
  0x2b   : > { %735 = vmatmul.bf16.vlgmr.msra.gmra.mxu0 %v1327_v26  ;;  %v1374_v26 = vld [vmem:[%s1821_s30 + $0x60] sm:$0xf] }
  0x2c   : > { %815 = vmatmul.bf16.vlgmr.msra.gmra.mxu2 %v1455_v27  ;;  %1629 = vmatmul.msk.bf16.gmra.mxu1 %vm630_vm0, %v1339_v28  ;;  %v1676_v27 = vld [vmem:[%s1821_s30 + $0x64] sm:$0xf0]  ;;  %v1502_v28 = vld [vmem:[%s1821_s30 + $0x160] sm:$0xf] }
  0x2d   : > { %1646 = vmatmul.msk.bf16.gmra.mxu3 %vm630_vm0, %v1475_v29  ;;  %v1708_v29 = vld [vmem:[%s1821_s30 + $0x164] sm:$0xf0]  ;;  %v1375_v34 = vor.u32 %v1676_v27, %v1374_v26  ;;  %v1399_v26 = vor.u32 %v1682_v16, %v1398_v15 }
  0x2e   : > { %v1503_v35 = vor.u32 %v1708_v29, %v1502_v28  ;;  %v1527_v28 = vor.u32 %v1714_v18, %v1526_v17  ;;  %v1411_v29 = vor.u32 %v1683_v20, %v1408_v21  ;;  %v1414_v20 = vld [vmem:[%s1821_s30 + $0xb0] sm:$0xf]  ;;  %v1686_v21 = vld [vmem:[%s1821_s30 + $0xb4] sm:$0xf0] }
  0x3b   : > { %740 = vmatmul.bf16.gmra.mxu0 %v1335_v38  ;;  %v1382_v38 = vld [vmem:[%s1821_s30 + $0x70] sm:$0xf] }
  0x3c   : > { %820 = vmatmul.bf16.gmra.mxu2 %v1463_v39  ;;  %1630 = vmatmul.msk.bf16.gmra.mxu1 %vm630_vm0, %v1347_v40  ;;  %v1678_v39 = vld [vmem:[%s1821_s30 + $0x74] sm:$0xf0]  ;;  %v1510_v40 = vld [vmem:[%s1821_s30 + $0x170] sm:$0xf] }
  0x3d   : > { %1647 = vmatmul.msk.bf16.gmra.mxu3 %vm630_vm0, %v1483_v41  ;;  %v1710_v41 = vld [vmem:[%s1821_s30 + $0x174] sm:$0xf0]  ;;  %v1383_v46 = vor.u32 %v1678_v39, %v1382_v38 }
  0x3e   : > { %v1511_v47 = vor.u32 %v1710_v41, %v1510_v40 }
  0x4b   : > { %745 = vmatmul.bf16.gmra.mxu0 %v1343_v50  ;;  %v1531_v50 = vor.u32 %v1713_v44, %v1528_v45  ;;  %v1406_v45 = vld [vmem:[%s1821_s30 + $0xa0] sm:$0xf] }
  0x4c   : > { %825 = vmatmul.bf16.gmra.mxu2 %v1471_v51  ;;  %1631 = vmatmul.msk.bf16.gmra.mxu1 %vm630_vm0, %v1355_v52 }
  0x4d   : > { %1648 = vmatmul.msk.bf16.gmra.mxu3 %vm630_vm0, %v1491_v53  ;;  %v1932_v53 = vld [vmem:[%s2255_s2] ss:$0 sm:$0xff] }
  0x5b   : > { %750 = vmatmul.bf16.gmra.mxu0 %v1351_v62  ;;  %v1391_v62 = vor.u32 %v1680_v55, %v1390_v54  ;;  %v1416_v54 = vld [vmem:[%s1821_s30 + $0xb8] sm:$0xf0] }
  0x5c   : > { %830 = vmatmul.bf16.gmra.mxu2 %v1479_v63  ;;  %1632 = vmatmul.msk.bf16.gmra.mxu1 %vm630_vm0, %v1363_v0  ;;  %v1519_v0 = vor.u32 %v1712_v57, %v1518_v56  ;;  %v1719_v56 = vld [vmem:[%s1821_s30 + $0x1c4] sm:$0xf]  ;;  %v1552_v57 = vld [vmem:[%s1821_s30 + $0x1c8] sm:$0xf0] }
  0x5d   : > { %1649 = vmatmul.msk.bf16.gmra.mxu3 %vm630_vm0, %v1499_v1  ;;  %v1403_v1 = vor.u32 %v1681_v58, %v1400_v59 }
  0x6b   : > { %755 = vmatmul.bf16.gmra.mxu0 %v1359_v10 }
  0x6c   : > { %835 = vmatmul.bf16.gmra.mxu2 %v1487_v11  ;;  %1633 = vmatmul.msk.bf16.gmra.mxu1 %vm630_vm0, %v1371_v12 }
  0x6d   : > { %1650 = vmatmul.msk.bf16.gmra.mxu3 %vm630_vm0, %v1507_v13 }
  0x7b   : > { %760 = vmatmul.bf16.gmra.mxu0 %v1367_v22  ;;  %v1717_v22 = vld [vmem:[%s1821_s30 + $0x1b4] sm:$0xf] }
  0x7c   : > { %840 = vmatmul.bf16.gmra.mxu2 %v1495_v23  ;;  %1634 = vmatmul.msk.bf16.gmra.mxu1 %vm630_vm0, %v1379_v24  ;;  %v1544_v23 = vld [vmem:[%s1821_s30 + $0x1b8] sm:$0xf0] }
  0x7d   : > { %1651 = vmatmul.msk.bf16.gmra.mxu3 %vm630_vm0, %v1515_v25  ;;  %v1547_v33 = vor.u32 %v1717_v22, %v1544_v23  ;;  %v1542_v23 = vld [vmem:[%s1821_s30 + $0x1b0] sm:$0xf] }
  0x8b   : > { %765 = vmatmul.bf16.gmra.mxu0 %v1375_v34 }
  0x8c   : > { %845 = vmatmul.bf16.gmra.mxu2 %v1503_v35  ;;  %1635 = vmatmul.msk.bf16.gmra.mxu1 %vm630_vm0, %v1387_v36 }
  0x8d   : > { %1652 = vmatmul.msk.bf16.gmra.mxu3 %vm630_vm0, %v1523_v37 }
  0x99   : > { %v905_v49 = vpop.f32.mrf.mxu1 }
  0x9b   : > { %770 = vmatmul.bf16.gmra.mxu0 %v1383_v46  ;;  %v1684_v46 = vld [vmem:[%s1821_s30 + $0xa4] sm:$0xf0] }
  0x9c   : > { %850 = vmatmul.bf16.gmra.mxu2 %v1511_v47  ;;  %1636 = vmatmul.msk.bf16.gmra.mxu1 %vm630_vm0, %v1395_v48  ;;  %v1534_v48 = vld [vmem:[%s1821_s30 + $0x1a0] sm:$0xf]  ;;  %v1407_v60 = vor.u32 %v1684_v46, %v1406_v45 }
  0x9d   : > { %1653 = vmatmul.msk.bf16.gmra.mxu3 %vm630_vm0, %v1531_v50 }
  0xa0   : > { %v1927_v51 = vpop.f32.mrf.mxu3 }
  0xa1   : > { %v907_v52 = vpop.f32.mrf.mxu1 }
  0xa8   : > { %v736_v63 = vpop.f32.mrf.mxu0  ;;  %v1942_v2 = vpop.f32.mrf.mxu3 }
  0xa9   : > { %v737_v3 = vadd.f32 %v1932_v53, %v736_v63  ;;  %v910_v4 = vpop.f32.mrf.mxu1 }
  0xab   : > { %v906_v6 = vadd.f32 %v905_v49, %v737_v3  ;;  %775 = vmatmul.bf16.gmra.mxu0 %v1391_v62  ;;  %v1716_v49 = vld [vmem:[%s1821_s30 + $0x1a4] sm:$0xf0] }
  0xac   : > { %855 = vmatmul.bf16.gmra.mxu2 %v1519_v0  ;;  %1637 = vmatmul.msk.bf16.gmra.mxu1 %vm630_vm0, %v1403_v1  ;;  %v1535_v62 = vor.u32 %v1716_v49, %v1534_v48 }
  0xad   : > { %v1065_v7 = vmax.f32 %v906_v6, 0.0  ;;  %1654 = vmatmul.msk.bf16.gmra.mxu3 %vm630_vm0, %v1539_v5 }
  0xaf   : > { %v1129_v8 = vpack.c.bf16 %v1065_v7, %v1065_v7  ;;  %v1953_v9 = vpop.f32.mrf.mxu2 }
  0xb0   : > { %v738_v10 = vpop.f32.mrf.mxu0  ;;  %v1955_v11 = vpop.f32.mrf.mxu3 }
  0xb1   : > { %1194 = vst.msk [vmem:[%s1951_s23] sm:$0xf] %vm1193_vm1, %v1129_v8  ;;  %v739_v12 = vadd.f32 %v1932_v53, %v738_v10  ;;  %v912_v13 = vpop.f32.mrf.mxu1 }
  0xb3   : > { %v908_v14 = vadd.f32 %v907_v52, %v739_v12  ;;  %v1685_v52 = vld [vmem:[%s1821_s30 + $0xb4] sm:$0xf] }
  0xb4   : > { %v1419_v63 = vor.u32 %v1685_v52, %v1416_v54 }
  0xb5   : > { %v1066_v19 = vmax.f32 %v908_v14, 0.0 }
  0xb7   : > { %v1130_v24 = vpack.c.bf16 %v1066_v19, %v1066_v19  ;;  %v1968_v25 = vpop.f32.mrf.mxu2 }
  0xb8   : > { %v741_v27 = vpop.f32.mrf.mxu0  ;;  %v1970_v30 = vpop.f32.mrf.mxu3 }
  0xb9   : > { %1195 = vst.msk [vmem:[%s1951_s23 + $0x4] sm:$0xf] %vm1193_vm1, %v1130_v24  ;;  %v742_v31 = vadd.f32 %v1932_v53, %v741_v27  ;;  %v915_v32 = vpop.f32.mrf.mxu1  ;;  %v1718_v24 = vld [vmem:[%s1821_s30 + $0x1b4] sm:$0xf0]  ;;  %v1687_v27 = vld [vmem:[%s1821_s30 + $0xc4] sm:$0xf] }
  0xbb   : > { %v911_v34 = vadd.f32 %v910_v4, %v742_v31  ;;  %780 = vmatmul.bf16.gmra.mxu0 %v1399_v26  ;;  %v1555_v4 = vor.u32 %v1719_v56, %v1552_v57  ;;  %v1721_v31 = vld [vmem:[%s1821_s30 + $0x1d4] sm:$0xf] }
  0xbc   : > { %860 = vmatmul.bf16.gmra.mxu2 %v1527_v28  ;;  %1638 = vmatmul.msk.bf16.gmra.mxu1 %vm630_vm0, %v1411_v29  ;;  %v1424_v28 = vld [vmem:[%s1821_s30 + $0xc8] sm:$0xf0] }
  0xbd   : > { %v1067_v35 = vmax.f32 %v911_v34, 0.0  ;;  %1655 = vmatmul.msk.bf16.gmra.mxu3 %vm630_vm0, %v1547_v33 }
  0xbf   : > { %v1131_v36 = vpack.c.bf16 %v1067_v35, %v1067_v35  ;;  %v821_v37 = vpop.f32.mrf.mxu2  ;;  %v1415_v35 = vor.u32 %v1686_v21, %v1414_v20 }
  0xc0   : > { %v822_v38 = vadd.f32 %v1932_v53, %v821_v37  ;;  %v743_v39 = vpop.f32.mrf.mxu0  ;;  %v1978_v40 = vpop.f32.mrf.mxu3  ;;  %v1543_v37 = vor.u32 %v1718_v24, %v1542_v23 }
  0xc1   : > { %1196 = vst.msk [vmem:[%s1951_s23 + $0x8] sm:$0xf] %vm1193_vm1, %v1131_v36  ;;  %v744_v41 = vadd.f32 %v1932_v53, %v743_v39  ;;  %v917_v42 = vpop.f32.mrf.mxu1 }
  0xc2   : > { %v991_v43 = vadd.f32 %v1927_v51, %v822_v38  ;;  %v1427_v38 = vor.u32 %v1687_v27, %v1424_v28 }
  0xc3   : > { %v913_v44 = vadd.f32 %v912_v13, %v744_v41 }
  0xc4   : > { %v1099_v47 = vmax.f32 %v991_v43, 0.0 }
  0xc5   : > { %v1068_v50 = vmax.f32 %v913_v44, 0.0 }
  0xc6   : > { %v1163_v55 = vpack.c.bf16 %v1099_v47, %v1099_v47 }
  0xc7   : > { %v1132_v58 = vpack.c.bf16 %v1068_v50, %v1068_v50  ;;  %v823_v59 = vpop.f32.mrf.mxu2 }
  0xc8   : > { %1228 = vst.msk [vmem:[%s1951_s23 + $0x88] sm:$0xf] %vm1193_vm1, %v1163_v55  ;;  %v824_v51 = vadd.f32 %v1932_v53, %v823_v59  ;;  %v746_v61 = vpop.f32.mrf.mxu0  ;;  %v1995_v0 = vpop.f32.mrf.mxu3  ;;  %v1422_v59 = vld [vmem:[%s1821_s30 + $0xc0] sm:$0xf] }
  0xc9   : > { %1197 = vst.msk [vmem:[%s1951_s23 + $0xc] sm:$0xf] %vm1193_vm1, %v1132_v58  ;;  %v747_v1 = vadd.f32 %v1932_v53, %v746_v61  ;;  %v920_v3 = vpop.f32.mrf.mxu1  ;;  %v1550_v61 = vld [vmem:[%s1821_s30 + $0x1c0] sm:$0xf] }
  0xca   : > { %v993_v5 = vadd.f32 %v1942_v2, %v824_v51 }
  0xcb   : > { %v916_v6 = vadd.f32 %v915_v32, %v747_v1  ;;  %785 = vmatmul.bf16.gmra.mxu0 %v1407_v60  ;;  %v1560_v32 = vld [vmem:[%s1821_s30 + $0x1d8] sm:$0xf0]  ;;  %v1688_v60 = vld [vmem:[%s1821_s30 + $0xc4] sm:$0xf0]  ;;  %v1689_v1 = vld [vmem:[%s1821_s30 + $0xd4] sm:$0xf] }
  0xcc   : > { %v1100_v7 = vmax.f32 %v993_v5, 0.0  ;;  %865 = vmatmul.bf16.gmra.mxu2 %v1535_v62  ;;  %1639 = vmatmul.msk.bf16.gmra.mxu1 %vm630_vm0, %v1419_v63  ;;  %v1563_v43 = vor.u32 %v1721_v31, %v1560_v32  ;;  %v1720_v62 = vld [vmem:[%s1821_s30 + $0x1c4] sm:$0xf0]  ;;  %v1723_v5 = vld [vmem:[%s1821_s30 + $0x1e4] sm:$0xf] }
  0xcd   : > { %v1069_v8 = vmax.f32 %v916_v6, 0.0  ;;  %1656 = vmatmul.msk.bf16.gmra.mxu3 %vm630_vm0, %v1555_v4  ;;  %v1568_v6 = vld [vmem:[%s1821_s30 + $0x1e8] sm:$0xf0] }
  0xce   : > { %v1164_v10 = vpack.c.bf16 %v1100_v7, %v1100_v7 }
  0xcf   : > { %v1133_v12 = vpack.c.bf16 %v1069_v8, %v1069_v8  ;;  %v826_v13 = vpop.f32.mrf.mxu2 }
  0xd0   : > { %1229 = vst.msk [vmem:[%s1951_s23 + $0x8c] sm:$0xf] %vm1193_vm1, %v1164_v10  ;;  %v827_v2 = vadd.f32 %v1932_v53, %v826_v13  ;;  %v748_v14 = vpop.f32.mrf.mxu0  ;;  %v2006_v15 = vpop.f32.mrf.mxu3  ;;  %v1423_v10 = vor.u32 %v1688_v60, %v1422_v59  ;;  %v1551_v13 = vor.u32 %v1720_v62, %v1550_v61 }
  0xd1   : > { %1198 = vst.msk [vmem:[%s1951_s23 + $0x10] sm:$0xf] %vm1193_vm1, %v1133_v12  ;;  %v749_v16 = vadd.f32 %v1932_v53, %v748_v14  ;;  %v922_v17 = vpop.f32.mrf.mxu1 }
  0xd2   : > { %v996_v18 = vadd.f32 %v1955_v11, %v827_v2 }
  0xd3   : > { %v918_v19 = vadd.f32 %v917_v42, %v749_v16 }
  0xd4   : > { %v1101_v22 = vmax.f32 %v996_v18, 0.0  ;;  %v1571_v18 = vor.u32 %v1723_v5, %v1568_v6 }
  0xd5   : > { %v1070_v26 = vmax.f32 %v918_v19, 0.0 }
  0xd6   : > { %v1165_v29 = vpack.c.bf16 %v1101_v22, %v1101_v22 }
  0xd7   : > { %v1134_v33 = vpack.c.bf16 %v1070_v26, %v1070_v26  ;;  %v828_v34 = vpop.f32.mrf.mxu2 }
  0xd8   : > { %1230 = vst.msk [vmem:[%s1951_s23 + $0x90] sm:$0xf] %vm1193_vm1, %v1165_v29  ;;  %v829_v11 = vadd.f32 %v1932_v53, %v828_v34  ;;  %v751_v36 = vpop.f32.mrf.mxu0  ;;  %v2023_v39 = vpop.f32.mrf.mxu3  ;;  %v1430_v34 = vld [vmem:[%s1821_s30 + $0xd0] sm:$0xf] }
  0xd9   : > { %1199 = vst.msk [vmem:[%s1951_s23 + $0x14] sm:$0xf] %vm1193_vm1, %v1134_v33  ;;  %v752_v41 = vadd.f32 %v1932_v53, %v751_v36  ;;  %v925_v42 = vpop.f32.mrf.mxu1  ;;  %v1558_v36 = vld [vmem:[%s1821_s30 + $0x1d0] sm:$0xf] }
  0xda   : > { %v998_v44 = vadd.f32 %v1970_v30, %v829_v11 }
  0xdb   : > { %v921_v45 = vadd.f32 %v920_v3, %v752_v41  ;;  %790 = vmatmul.bf16.gmra.mxu0 %v1415_v35  ;;  %v1432_v3 = vld [vmem:[%s1821_s30 + $0xd8] sm:$0xf0]  ;;  %v1690_v35 = vld [vmem:[%s1821_s30 + $0xd4] sm:$0xf0]  ;;  %v1691_v41 = vld [vmem:[%s1821_s30 + $0xe4] sm:$0xf] }
  0xdc   : > { %v1102_v46 = vmax.f32 %v998_v44, 0.0  ;;  %870 = vmatmul.bf16.gmra.mxu2 %v1543_v37  ;;  %1640 = vmatmul.msk.bf16.gmra.mxu1 %vm630_vm0, %v1427_v38  ;;  %v1435_v2 = vor.u32 %v1689_v1, %v1432_v3  ;;  %v1722_v37 = vld [vmem:[%s1821_s30 + $0x1d4] sm:$0xf0]  ;;  %v1725_v44 = vld [vmem:[%s1821_s30 + $0x1f4] sm:$0xf] }
  0xdd   : > { %v1071_v47 = vmax.f32 %v921_v45, 0.0  ;;  %1657 = vmatmul.msk.bf16.gmra.mxu3 %vm630_vm0, %v1563_v43  ;;  %v1576_v45 = vld [vmem:[%s1821_s30 + $0x1f8] sm:$0xf0] }
  0xde   : > { %v1166_v48 = vpack.c.bf16 %v1102_v46, %v1102_v46 }
  0xdf   : > { %v1135_v49 = vpack.c.bf16 %v1071_v47, %v1071_v47  ;;  %v831_v50 = vpop.f32.mrf.mxu2 }
  0xe0   : > { %1231 = vst.msk [vmem:[%s1951_s23 + $0x94] sm:$0xf] %vm1193_vm1, %v1166_v48  ;;  %v832_v30 = vadd.f32 %v1932_v53, %v831_v50  ;;  %v753_v52 = vpop.f32.mrf.mxu0  ;;  %v2034_v54 = vpop.f32.mrf.mxu3  ;;  %v1431_v48 = vor.u32 %v1690_v35, %v1430_v34  ;;  %v1559_v50 = vor.u32 %v1722_v37, %v1558_v36 }
  0xe1   : > { %1200 = vst.msk [vmem:[%s1951_s23 + $0x18] sm:$0xf] %vm1193_vm1, %v1135_v49  ;;  %v754_v55 = vadd.f32 %v1932_v53, %v753_v52  ;;  %v927_v56 = vpop.f32.mrf.mxu1 }
  0xe2   : > { %v1001_v57 = vadd.f32 %v1978_v40, %v832_v30 }
  0xe3   : > { %v923_v58 = vadd.f32 %v922_v17, %v754_v55 }
  0xe4   : > { %v1103_v51 = vmax.f32 %v1001_v57, 0.0  ;;  %v1579_v57 = vor.u32 %v1725_v44, %v1576_v45  ;;  %v1694_v44 = vld [vmem:[%s1821_s30 + $0xf4] sm:$0xf0] }
  0xe5   : > { %v1072_v63 = vmax.f32 %v923_v58, 0.0 }
  0xe6   : > { %v1167_v4 = vpack.c.bf16 %v1103_v51, %v1103_v51 }
  0xe7   : > { %v1136_v7 = vpack.c.bf16 %v1072_v63, %v1072_v63  ;;  %v833_v8 = vpop.f32.mrf.mxu2 }
  0xe8   : > { %1232 = vst.msk [vmem:[%s1951_s23 + $0x98] sm:$0xf] %vm1193_vm1, %v1167_v4  ;;  %v834_v40 = vadd.f32 %v1932_v53, %v833_v8  ;;  %v756_v12 = vpop.f32.mrf.mxu0  ;;  %v2051_v14 = vpop.f32.mrf.mxu3  ;;  %v1438_v8 = vld [vmem:[%s1821_s30 + $0xe0] sm:$0xf] }
  0xe9   : > { %1201 = vst.msk [vmem:[%s1951_s23 + $0x1c] sm:$0xf] %vm1193_vm1, %v1136_v7  ;;  %v757_v16 = vadd.f32 %v1932_v53, %v756_v12  ;;  %v930_v17 = vpop.f32.mrf.mxu1  ;;  %v1566_v12 = vld [vmem:[%s1821_s30 + $0x1e0] sm:$0xf] }
  0xea   : > { %v1003_v19 = vadd.f32 %v1995_v0, %v834_v40 }
  0xeb   : > { %v926_v20 = vadd.f32 %v925_v42, %v757_v16  ;;  %795 = vmatmul.bf16.gmra.mxu0 %v1423_v10  ;;  %v1440_v42 = vld [vmem:[%s1821_s30 + $0xe8] sm:$0xf0]  ;;  %v1692_v10 = vld [vmem:[%s1821_s30 + $0xe4] sm:$0xf0]  ;;  %v1693_v16 = vld [vmem:[%s1821_s30 + $0xf4] sm:$0xf] }
  0xec   : > { %v1104_v21 = vmax.f32 %v1003_v19, 0.0  ;;  %875 = vmatmul.bf16.gmra.mxu2 %v1551_v13  ;;  %1641 = vmatmul.msk.bf16.gmra.mxu1 %vm630_vm0, %v1435_v2  ;;  %v1443_v30 = vor.u32 %v1691_v41, %v1440_v42  ;;  %v1724_v13 = vld [vmem:[%s1821_s30 + $0x1e4] sm:$0xf0] }
  0xed   : > { %v1073_v22 = vmax.f32 %v926_v20, 0.0  ;;  %1658 = vmatmul.msk.bf16.gmra.mxu3 %vm630_vm0, %v1571_v18 }
  0xee   : > { %v1168_v23 = vpack.c.bf16 %v1104_v21, %v1104_v21  ;;  %v1439_v21 = vor.u32 %v1692_v10, %v1438_v8 }
  0xef   : > { %v1137_v24 = vpack.c.bf16 %v1073_v22, %v1073_v22  ;;  %v836_v26 = vpop.f32.mrf.mxu2 }
  0xf0   : > { %1233 = vst.msk [vmem:[%s1951_s23 + $0x9c] sm:$0xf] %vm1193_vm1, %v1168_v23  ;;  %v837_v0 = vadd.f32 %v1932_v53, %v836_v26  ;;  %v758_v27 = vpop.f32.mrf.mxu0  ;;  %v2062_v28 = vpop.f32.mrf.mxu3 }
  0xf1   : > { %1202 = vst.msk [vmem:[%s1951_s23 + $0x20] sm:$0xf] %vm1193_vm1, %v1137_v24  ;;  %v759_v29 = vadd.f32 %v1932_v53, %v758_v27  ;;  %v932_v31 = vpop.f32.mrf.mxu1 }
  0xf2   : > { %v1006_v32 = vadd.f32 %v2006_v15, %v837_v0 }
  0xf3   : > { %v928_v33 = vadd.f32 %v927_v56, %v759_v29 }
  0xf4   : > { %v1105_v11 = vmax.f32 %v1006_v32, 0.0 }
  0xf5   : > { %v1074_v38 = vmax.f32 %v928_v33, 0.0 }
  0xf6   : > { %v1169_v43 = vpack.c.bf16 %v1105_v11, %v1105_v11 }
  0xf7   : > { %v1138_v46 = vpack.c.bf16 %v1074_v38, %v1074_v38  ;;  %v838_v47 = vpop.f32.mrf.mxu2 }
  0xf8   : > { %1234 = vst.msk [vmem:[%s1951_s23 + $0xa0] sm:$0xf] %vm1193_vm1, %v1169_v43  ;;  %v839_v15 = vadd.f32 %v1932_v53, %v838_v47  ;;  %v761_v49 = vpop.f32.mrf.mxu0  ;;  %v2079_v52 = vpop.f32.mrf.mxu3  ;;  %v1446_v43 = vld [vmem:[%s1821_s30 + $0xf0] sm:$0xf] }
  0xf9   : > { %1203 = vst.msk [vmem:[%s1951_s23 + $0x24] sm:$0xf] %vm1193_vm1, %v1138_v46  ;;  %v762_v55 = vadd.f32 %v1932_v53, %v761_v49  ;;  %v935_v56 = vpop.f32.mrf.mxu1  ;;  %v1574_v47 = vld [vmem:[%s1821_s30 + $0x1f0] sm:$0xf]  ;;  %v1695_v49 = vld [vmem:[%s1821_s30 + $0x104] sm:$0xf] }
  0xfa   : > { %v1008_v58 = vadd.f32 %v2023_v39, %v839_v15 }
  0xfb   : > { %v931_v59 = vadd.f32 %v930_v17, %v762_v55  ;;  %800 = vmatmul.bf16.gmra.mxu0 %v1431_v48  ;;  %v1448_v17 = vld [vmem:[%s1821_s30 + $0xf8] sm:$0xf0]  ;;  %v1726_v48 = vld [vmem:[%s1821_s30 + $0x1f4] sm:$0xf0] }
  0xfc   : > { %v1106_v60 = vmax.f32 %v1008_v58, 0.0  ;;  %880 = vmatmul.bf16.gmra.mxu2 %v1559_v50  ;;  %1642 = vmatmul.msk.bf16.gmra.mxu1 %vm630_vm0, %v1443_v30  ;;  %v1451_v24 = vor.u32 %v1693_v16, %v1448_v17  ;;  %v1456_v50 = vld [vmem:[%s1821_s30 + $0x108] sm:$0xf0] }
  0xfd   : > { %v1075_v51 = vmax.f32 %v931_v59, 0.0  ;;  %1659 = vmatmul.msk.bf16.gmra.mxu3 %vm630_vm0, %v1579_v57  ;;  %v1447_v57 = vor.u32 %v1694_v44, %v1446_v43  ;;  %v1575_v59 = vor.u32 %v1726_v48, %v1574_v47 }
  0xfe   : > { %v1170_v61 = vpack.c.bf16 %v1106_v60, %v1106_v60  ;;  %v1459_v60 = vor.u32 %v1695_v49, %v1456_v50 }
  0xff   : > { %v1139_v62 = vpack.c.bf16 %v1075_v51, %v1075_v51  ;;  %v841_v63 = vpop.f32.mrf.mxu2 }
 0x100   : > { %1235 = vst.msk [vmem:[%s1951_s23 + $0xa4] sm:$0xf] %vm1193_vm1, %v1170_v61  ;;  %v842_v39 = vadd.f32 %v1932_v53, %v841_v63  ;;  %v763_v1 = vpop.f32.mrf.mxu0  ;;  %v2090_v3 = vpop.f32.mrf.mxu3 }
 0x101   : > { %1204 = vst.msk [vmem:[%s1951_s23 + $0x28] sm:$0xf] %vm1193_vm1, %v1139_v62  ;;  %v764_v4 = vadd.f32 %v1932_v53, %v763_v1  ;;  %v937_v5 = vpop.f32.mrf.mxu1 }
 0x102   : > { %v1011_v6 = vadd.f32 %v2034_v54, %v842_v39  ;;  %v1567_v54 = vor.u32 %v1724_v13, %v1566_v12 }
 0x103   : > { %v933_v7 = vadd.f32 %v932_v31, %v764_v4 }
 0x104   : > { %v1107_v40 = vmax.f32 %v1011_v6, 0.0 }
 0x105   : > { %v1076_v2 = vmax.f32 %v933_v7, 0.0 }
 0x106   : > { %v1171_v18 = vpack.c.bf16 %v1107_v40, %v1107_v40 }
 0x107   : > { %v1140_v19 = vpack.c.bf16 %v1076_v2, %v1076_v2  ;;  %v843_v20 = vpop.f32.mrf.mxu2 }
 0x108   : > { %1236 = vst.msk [vmem:[%s1951_s23 + $0xa8] sm:$0xf] %vm1193_vm1, %v1171_v18  ;;  %v844_v22 = vadd.f32 %v1932_v53, %v843_v20  ;;  %v766_v23 = vpop.f32.mrf.mxu0  ;;  %v2108_v27 = vpop.f32.mrf.mxu3 }
 0x109   : > { %1205 = vst.msk [vmem:[%s1951_s23 + $0x2c] sm:$0xf] %vm1193_vm1, %v1140_v19  ;;  %v767_v26 = vadd.f32 %v1932_v53, %v766_v23  ;;  %v940_v0 = vpop.f32.mrf.mxu1 }
 0x10a   : > { %v1013_v29 = vadd.f32 %v2051_v14, %v844_v22 }
 0x10b   : > { %v936_v31 = vadd.f32 %v935_v56, %v767_v26  ;;  %805 = vmatmul.bf16.gmra.mxu0 %v1439_v21 }
 0x10c   : > { %v1108_v32 = vmax.f32 %v1013_v29, 0.0  ;;  %885 = vmatmul.bf16.gmra.mxu2 %v1567_v54  ;;  %1643 = vmatmul.msk.bf16.gmra.mxu1 %vm630_vm0, %v1451_v24 }
 0x10d   : > { %v1077_v33 = vmax.f32 %v936_v31, 0.0 }
 0x10e   : > { %v1172_v34 = vpack.c.bf16 %v1108_v32, %v1108_v32 }
 0x10f   : > { %v1141_v35 = vpack.c.bf16 %v1077_v33, %v1077_v33  ;;  %v846_v11 = vpop.f32.mrf.mxu2 }
 0x110   : > { %1237 = vst.msk [vmem:[%s1951_s23 + $0xac] sm:$0xf] %vm1193_vm1, %v1172_v34  ;;  %v847_v14 = vadd.f32 %v1932_v53, %v846_v11  ;;  %v768_v36 = vpop.f32.mrf.mxu0  ;;  %v2121_v45 = vpop.f32.mrf.mxu3 }
 0x111   : > { %1206 = vst.msk [vmem:[%s1951_s23 + $0x30] sm:$0xf] %vm1193_vm1, %v1141_v35  ;;  %v769_v37 = vadd.f32 %v1932_v53, %v768_v36  ;;  %v942_v38 = vpop.f32.mrf.mxu1 }
 0x112   : > { %v1016_v41 = vadd.f32 %v2062_v28, %v847_v14 }
 0x113   : > { %v938_v42 = vadd.f32 %v937_v5, %v769_v37 }
 0x114   : > { %v1109_v46 = vmax.f32 %v1016_v41, 0.0 }
 0x115   : > { %v1078_v15 = vmax.f32 %v938_v42, 0.0 }
 0x116   : > { %v1173_v30 = vpack.c.bf16 %v1109_v46, %v1109_v46 }
 0x117   : > { %v1142_v55 = vpack.c.bf16 %v1078_v15, %v1078_v15  ;;  %v848_v56 = vpop.f32.mrf.mxu2 }
 0x118   : > { %1238 = vst.msk [vmem:[%s1951_s23 + $0xb0] sm:$0xf] %vm1193_vm1, %v1173_v30  ;;  %v849_v28 = vadd.f32 %v1932_v53, %v848_v56  ;;  %v771_v58 = vpop.f32.mrf.mxu0  ;;  %v1027_v4 = vpop.f32.mrf.mxu3 }
 0x119   : > { %1207 = vst.msk [vmem:[%s1951_s23 + $0x34] sm:$0xf] %vm1193_vm1, %v1142_v55  ;;  %v772_v51 = vadd.f32 %v1932_v53, %v771_v58  ;;  %v945_v61 = vpop.f32.mrf.mxu1 }
 0x11a   : > { %v1018_v62 = vadd.f32 %v2079_v52, %v849_v28 }
 0x11b   : > { %v941_v63 = vadd.f32 %v940_v0, %v772_v51  ;;  %810 = vmatmul.bf16.gmra.mxu0 %v1447_v57 }
 0x11c   : > { %v1110_v39 = vmax.f32 %v1018_v62, 0.0  ;;  %890 = vmatmul.bf16.gmra.mxu2 %v1575_v59  ;;  %1644 = vmatmul.msk.bf16.gmra.mxu1 %vm630_vm0, %v1459_v60 }
 0x11d   : > { %v1079_v1 = vmax.f32 %v941_v63, 0.0 }
 0x11e   : > { %v1174_v5 = vpack.c.bf16 %v1110_v39, %v1110_v39 }
 0x11f   : > { %v1143_v6 = vpack.c.bf16 %v1079_v1, %v1079_v1  ;;  %v851_v7 = vpop.f32.mrf.mxu2 }
 0x120   : > { %1239 = vst.msk [vmem:[%s1951_s23 + $0xb4] sm:$0xf] %vm1193_vm1, %v1174_v5  ;;  %v852_v8 = vadd.f32 %v1932_v53, %v851_v7  ;;  %v773_v10 = vpop.f32.mrf.mxu0  ;;  %v1030_v20 = vpop.f32.mrf.mxu3 }
 0x121   : > { %1208 = vst.msk [vmem:[%s1951_s23 + $0x38] sm:$0xf] %vm1193_vm1, %v1143_v6  ;;  %v774_v52 = vadd.f32 %v1932_v53, %v773_v10  ;;  %v947_v40 = vpop.f32.mrf.mxu1 }
 0x122   : > { %v1021_v12 = vadd.f32 %v2090_v3, %v852_v8 }
 0x123   : > { %v943_v13 = vadd.f32 %v942_v38, %v774_v52 }
 0x124   : > { %v1111_v2 = vmax.f32 %v1021_v12, 0.0 }
 0x125   : > { %v1080_v16 = vmax.f32 %v943_v13, 0.0 }
 0x126   : > { %v1175_v17 = vpack.c.bf16 %v1111_v2, %v1111_v2 }
 0x127   : > { %v1144_v18 = vpack.c.bf16 %v1080_v16, %v1080_v16  ;;  %v853_v19 = vpop.f32.mrf.mxu2 }
 0x128   : > { %1240 = vst.msk [vmem:[%s1951_s23 + $0xb8] sm:$0xf] %vm1193_vm1, %v1175_v17  ;;  %v854_v21 = vadd.f32 %v1932_v53, %v853_v19  ;;  %v776_v22 = vpop.f32.mrf.mxu0  ;;  %v1032_v14 = vpop.f32.mrf.mxu3 }
 0x129   : > { %1209 = vst.msk [vmem:[%s1951_s23 + $0x3c] sm:$0xf] %vm1193_vm1, %v1144_v18  ;;  %v777_v23 = vadd.f32 %v1932_v53, %v776_v22  ;;  %v950_v54 = vpop.f32.mrf.mxu1 }
 0x12a   : > { %v1023_v3 = vadd.f32 %v2108_v27, %v854_v21 }
 0x12b   : > { %v946_v24 = vadd.f32 %v945_v61, %v777_v23 }
 0x12c   : > { %v1112_v26 = vmax.f32 %v1023_v3, 0.0 }
 0x12d   : > { %v1081_v0 = vmax.f32 %v946_v24, 0.0 }
 0x12e   : > { %v1176_v29 = vpack.c.bf16 %v1112_v26, %v1112_v26 }
 0x12f   : > { %v1145_v31 = vpack.c.bf16 %v1081_v0, %v1081_v0  ;;  %v856_v32 = vpop.f32.mrf.mxu2 }
 0x130   : > { %1241 = vst.msk [vmem:[%s1951_s23 + $0xbc] sm:$0xf] %vm1193_vm1, %v1176_v29  ;;  %v857_v33 = vadd.f32 %v1932_v53, %v856_v32  ;;  %v778_v34 = vpop.f32.mrf.mxu0  ;;  %v1035_v49 = vpop.f32.mrf.mxu3 }
 0x131   : > { %1210 = vst.msk [vmem:[%s1951_s23 + $0x40] sm:$0xf] %vm1193_vm1, %v1145_v31  ;;  %v779_v35 = vadd.f32 %v1932_v53, %v778_v34  ;;  %v952_v11 = vpop.f32.mrf.mxu1 }
 0x132   : > { %v1026_v27 = vadd.f32 %v2121_v45, %v857_v33 }
 0x133   : > { %v948_v36 = vadd.f32 %v947_v40, %v779_v35 }
 0x134   : > { %v1113_v37 = vmax.f32 %v1026_v27, 0.0 }
 0x135   : > { %v1082_v38 = vmax.f32 %v948_v36, 0.0 }
 0x136   : > { %v1177_v41 = vpack.c.bf16 %v1113_v37, %v1113_v37 }
 0x137   : > { %v1146_v42 = vpack.c.bf16 %v1082_v38, %v1082_v38  ;;  %v858_v43 = vpop.f32.mrf.mxu2 }
 0x138   : > { %1242 = vst.msk [vmem:[%s1951_s23 + $0xc0] sm:$0xf] %vm1193_vm1, %v1177_v41  ;;  %v859_v44 = vadd.f32 %v1932_v53, %v858_v43  ;;  %v781_v46 = vpop.f32.mrf.mxu0  ;;  %v1037_v39 = vpop.f32.mrf.mxu3 }
 0x139   : > { %1211 = vst.msk [vmem:[%s1951_s23 + $0x44] sm:$0xf] %vm1193_vm1, %v1146_v42  ;;  %v782_v47 = vadd.f32 %v1932_v53, %v781_v46  ;;  %v955_v48 = vpop.f32.mrf.mxu1 }
 0x13a   : > { %v1028_v15 = vadd.f32 %v1027_v4, %v859_v44 }
 0x13b   : > { %v951_v45 = vadd.f32 %v950_v54, %v782_v47 }
 0x13c   : > { %v1114_v50 = vmax.f32 %v1028_v15, 0.0 }
 0x13d   : > { %v1083_v30 = vmax.f32 %v951_v45, 0.0 }
 0x13e   : > { %v1178_v55 = vpack.c.bf16 %v1114_v50, %v1114_v50 }
 0x13f   : > { %v1147_v56 = vpack.c.bf16 %v1083_v30, %v1083_v30  ;;  %v861_v57 = vpop.f32.mrf.mxu2 }
 0x140   : > { %1243 = vst.msk [vmem:[%s1951_s23 + $0xc4] sm:$0xf] %vm1193_vm1, %v1178_v55  ;;  %v862_v28 = vadd.f32 %v1932_v53, %v861_v57  ;;  %v783_v58 = vpop.f32.mrf.mxu0  ;;  %v1040_v18 = vpop.f32.mrf.mxu3 }
 0x141   : > { %1212 = vst.msk [vmem:[%s1951_s23 + $0x48] sm:$0xf] %vm1193_vm1, %v1147_v56  ;;  %v784_v59 = vadd.f32 %v1932_v53, %v783_v58  ;;  %v957_v60 = vpop.f32.mrf.mxu1 }
 0x142   : > { %v1031_v51 = vadd.f32 %v1030_v20, %v862_v28 }
 0x143   : > { %v953_v61 = vadd.f32 %v952_v11, %v784_v59 }
 0x144   : > { %v1115_v62 = vmax.f32 %v1031_v51, 0.0 }
 0x145   : > { %v1084_v63 = vmax.f32 %v953_v61, 0.0 }
 0x146   : > { %v1179_v1 = vpack.c.bf16 %v1115_v62, %v1115_v62 }
 0x147   : > { %v1148_v4 = vpack.c.bf16 %v1084_v63, %v1084_v63  ;;  %v863_v5 = vpop.f32.mrf.mxu2 }
 0x148   : > { %1244 = vst.msk [vmem:[%s1951_s23 + $0xc8] sm:$0xf] %vm1193_vm1, %v1179_v1  ;;  %v864_v6 = vadd.f32 %v1932_v53, %v863_v5  ;;  %v786_v7 = vpop.f32.mrf.mxu0  ;;  %v1042_v35 = vpop.f32.mrf.mxu3 }
 0x149   : > { %1213 = vst.msk [vmem:[%s1951_s23 + $0x4c] sm:$0xf] %vm1193_vm1, %v1148_v4  ;;  %v787_v8 = vadd.f32 %v1932_v53, %v786_v7  ;;  %v960_v10 = vpop.f32.mrf.mxu1 }
 0x14a   : > { %v1033_v52 = vadd.f32 %v1032_v14, %v864_v6 }
 0x14b   : > { %v956_v40 = vadd.f32 %v955_v48, %v787_v8 }
 0x14c   : > { %v1116_v12 = vmax.f32 %v1033_v52, 0.0 }
 0x14d   : > { %v1085_v13 = vmax.f32 %v956_v40, 0.0 }
 0x14e   : > { %v1180_v2 = vpack.c.bf16 %v1116_v12, %v1116_v12 }
 0x14f   : > { %v1149_v16 = vpack.c.bf16 %v1085_v13, %v1085_v13  ;;  %v866_v17 = vpop.f32.mrf.mxu2 }
 0x150   : > { %1245 = vst.msk [vmem:[%s1951_s23 + $0xcc] sm:$0xf] %vm1193_vm1, %v1180_v2  ;;  %v867_v19 = vadd.f32 %v1932_v53, %v866_v17  ;;  %v788_v20 = vpop.f32.mrf.mxu0  ;;  %v1045_v15 = vpop.f32.mrf.mxu3 }
 0x151   : > { %1214 = vst.msk [vmem:[%s1951_s23 + $0x50] sm:$0xf] %vm1193_vm1, %v1149_v16  ;;  %v789_v21 = vadd.f32 %v1932_v53, %v788_v20  ;;  %v962_v22 = vpop.f32.mrf.mxu1 }
 0x152   : > { %v1036_v23 = vadd.f32 %v1035_v49, %v867_v19 }
 0x153   : > { %v958_v54 = vadd.f32 %v957_v60, %v789_v21 }
 0x154   : > { %v1117_v3 = vmax.f32 %v1036_v23, 0.0 }
 0x155   : > { %v1086_v24 = vmax.f32 %v958_v54, 0.0 }
 0x156   : > { %v1181_v26 = vpack.c.bf16 %v1117_v3, %v1117_v3 }
 0x157   : > { %v1150_v0 = vpack.c.bf16 %v1086_v24, %v1086_v24  ;;  %v868_v29 = vpop.f32.mrf.mxu2 }
 0x158   : > { %1246 = vst.msk [vmem:[%s1951_s23 + $0xd0] sm:$0xf] %vm1193_vm1, %v1181_v26  ;;  %v869_v31 = vadd.f32 %v1932_v53, %v868_v29  ;;  %v791_v32 = vpop.f32.mrf.mxu0  ;;  %v1047_v62 = vpop.f32.mrf.mxu3 }
 0x159   : > { %1215 = vst.msk [vmem:[%s1951_s23 + $0x54] sm:$0xf] %vm1193_vm1, %v1150_v0  ;;  %v792_v33 = vadd.f32 %v1932_v53, %v791_v32  ;;  %v965_v34 = vpop.f32.mrf.mxu1 }
 0x15a   : > { %v1038_v11 = vadd.f32 %v1037_v39, %v869_v31 }
 0x15b   : > { %v961_v14 = vadd.f32 %v960_v10, %v792_v33 }
 0x15c   : > { %v1118_v27 = vmax.f32 %v1038_v11, 0.0 }
 0x15d   : > { %v1087_v36 = vmax.f32 %v961_v14, 0.0 }
 0x15e   : > { %v1182_v37 = vpack.c.bf16 %v1118_v27, %v1118_v27 }
 0x15f   : > { %v1151_v38 = vpack.c.bf16 %v1087_v36, %v1087_v36  ;;  %v871_v41 = vpop.f32.mrf.mxu2 }
 0x160   : > { %1247 = vst.msk [vmem:[%s1951_s23 + $0xd4] sm:$0xf] %vm1193_vm1, %v1182_v37  ;;  %v872_v42 = vadd.f32 %v1932_v53, %v871_v41  ;;  %v793_v43 = vpop.f32.mrf.mxu0  ;;  %v1050_v16 = vpop.f32.mrf.mxu3 }
 0x161   : > { %1216 = vst.msk [vmem:[%s1951_s23 + $0x58] sm:$0xf] %vm1193_vm1, %v1151_v38  ;;  %v794_v44 = vadd.f32 %v1932_v53, %v793_v43  ;;  %v967_v46 = vpop.f32.mrf.mxu1 }
 0x162   : > { %v1041_v47 = vadd.f32 %v1040_v18, %v872_v42 }
 0x163   : > { %v963_v48 = vadd.f32 %v962_v22, %v794_v44 }
 0x164   : > { %v1119_v45 = vmax.f32 %v1041_v47, 0.0 }
 0x165   : > { %v1088_v49 = vmax.f32 %v963_v48, 0.0 }
 0x166   : > { %v1183_v50 = vpack.c.bf16 %v1119_v45, %v1119_v45 }
 0x167   : > { %v1152_v30 = vpack.c.bf16 %v1088_v49, %v1088_v49  ;;  %v873_v55 = vpop.f32.mrf.mxu2 }
 0x168   : > { %1248 = vst.msk [vmem:[%s1951_s23 + $0xd8] sm:$0xf] %vm1193_vm1, %v1183_v50  ;;  %v874_v56 = vadd.f32 %v1932_v53, %v873_v55  ;;  %v796_v57 = vpop.f32.mrf.mxu0  ;;  %v1052_v33 = vpop.f32.mrf.mxu3 }
 0x169   : > { %1217 = vst.msk [vmem:[%s1951_s23 + $0x5c] sm:$0xf] %vm1193_vm1, %v1152_v30  ;;  %v797_v28 = vadd.f32 %v1932_v53, %v796_v57  ;;  %v970_v58 = vpop.f32.mrf.mxu1 }
 0x16a   : > { %v1043_v59 = vadd.f32 %v1042_v35, %v874_v56  ;;  %v1760_v56 = vld [vmem:[%s2255_s2] ss:$0 sm:$0xff] }
 0x16b   : > { %v966_v60 = vadd.f32 %v965_v34, %v797_v28 }
 0x16c   : > { %v1120_v51 = vmax.f32 %v1043_v59, 0.0 }
 0x16d   : > { %v1089_v61 = vmax.f32 %v966_v60, 0.0 }
 0x16e   : > { %v1184_v63 = vpack.c.bf16 %v1120_v51, %v1120_v51 }
 0x16f   : > { %v1153_v39 = vpack.c.bf16 %v1089_v61, %v1089_v61  ;;  %v876_v1 = vpop.f32.mrf.mxu2 }
 0x170   : > { %1249 = vst.msk [vmem:[%s1951_s23 + $0xdc] sm:$0xf] %vm1193_vm1, %v1184_v63  ;;  %v877_v4 = vadd.f32 %v1932_v53, %v876_v1  ;;  %v798_v5 = vpop.f32.mrf.mxu0  ;;  %v1055_v47 = vpop.f32.mrf.mxu3 }
 0x171   : > { %1218 = vst.msk [vmem:[%s1951_s23 + $0x60] sm:$0xf] %vm1193_vm1, %v1153_v39  ;;  %v799_v6 = vadd.f32 %v1932_v53, %v798_v5  ;;  %v972_v7 = vpop.f32.mrf.mxu1 }
 0x172   : > { %v1046_v8 = vadd.f32 %v1045_v15, %v877_v4 }
 0x173   : > { %v968_v10 = vadd.f32 %v967_v46, %v799_v6 }
 0x174   : > { %v1121_v52 = vmax.f32 %v1046_v8, 0.0 }
 0x175   : > { %v1090_v40 = vmax.f32 %v968_v10, 0.0 }
 0x176   : > { %v1185_v12 = vpack.c.bf16 %v1121_v52, %v1121_v52 }
 0x177   : > { %v1154_v13 = vpack.c.bf16 %v1090_v40, %v1090_v40  ;;  %v878_v2 = vpop.f32.mrf.mxu2 }
 0x178   : > { %1250 = vst.msk [vmem:[%s1951_s23 + $0xe0] sm:$0xf] %vm1193_vm1, %v1185_v12  ;;  %v879_v17 = vadd.f32 %v1932_v53, %v878_v2  ;;  %v801_v18 = vpop.f32.mrf.mxu0  ;;  %v1057_v61 = vpop.f32.mrf.mxu3 }
 0x179   : > { %1219 = vst.msk [vmem:[%s1951_s23 + $0x64] sm:$0xf] %vm1193_vm1, %v1154_v13  ;;  %v802_v19 = vadd.f32 %v1932_v53, %v801_v18  ;;  %v975_v20 = vpop.f32.mrf.mxu1  ;;  %v819_v18 = vadd.f32 %v1760_v56, %v1968_v25 }
 0x17a   : > { %v1048_v21 = vadd.f32 %v1047_v62, %v879_v17 }
 0x17b   : > { %v971_v22 = vadd.f32 %v970_v58, %v802_v19 }
 0x17c   : > { %v1122_v23 = vmax.f32 %v1048_v21, 0.0 }
 0x17d   : > { %v1091_v54 = vmax.f32 %v971_v22, 0.0 }
 0x17e   : > { %v1186_v3 = vpack.c.bf16 %v1122_v23, %v1122_v23 }
 0x17f   : > { %v1155_v24 = vpack.c.bf16 %v1091_v54, %v1091_v54  ;;  %v881_v26 = vpop.f32.mrf.mxu2 }
 0x180   : > { %1251 = vst.msk [vmem:[%s1951_s23 + $0xe4] sm:$0xf] %vm1193_vm1, %v1186_v3  ;;  %v882_v0 = vadd.f32 %v1932_v53, %v881_v26  ;;  %v803_v29 = vpop.f32.mrf.mxu0 }
 0x181   : > { %1220 = vst.msk [vmem:[%s1951_s23 + $0x68] sm:$0xf] %vm1193_vm1, %v1155_v24  ;;  %v804_v31 = vadd.f32 %v1932_v53, %v803_v29  ;;  %v977_v32 = vpop.f32.mrf.mxu1 }
 0x182   : > { %v1051_v34 = vadd.f32 %v1050_v16, %v882_v0  ;;  %v1060_v16 = vpop.f32.mrf.mxu3 }
 0x183   : > { %v973_v35 = vadd.f32 %v972_v7, %v804_v31 }
 0x184   : > { %v1123_v11 = vmax.f32 %v1051_v34, 0.0 }
 0x185   : > { %v1092_v14 = vmax.f32 %v973_v35, 0.0 }
 0x186   : > { %v1187_v27 = vpack.c.bf16 %v1123_v11, %v1123_v11 }
 0x187   : > { %v1156_v36 = vpack.c.bf16 %v1092_v14, %v1092_v14  ;;  %v883_v37 = vpop.f32.mrf.mxu2 }
 0x188   : > { %1252 = vst.msk [vmem:[%s1951_s23 + $0xe8] sm:$0xf] %vm1193_vm1, %v1187_v27  ;;  %v884_v38 = vadd.f32 %v1932_v53, %v883_v37  ;;  %v806_v41 = vpop.f32.mrf.mxu0 }
 0x189   : > { %1221 = vst.msk [vmem:[%s1951_s23 + $0x6c] sm:$0xf] %vm1193_vm1, %v1156_v36  ;;  %v807_v42 = vadd.f32 %v1932_v53, %v806_v41  ;;  %v980_v43 = vpop.f32.mrf.mxu1 }
 0x18a   : > { %v1053_v44 = vadd.f32 %v1052_v33, %v884_v38  ;;  %v1062_v34 = vpop.f32.mrf.mxu3 }
 0x18b   : > { %v976_v46 = vadd.f32 %v975_v20, %v807_v42 }
 0x18c   : > { %v1124_v48 = vmax.f32 %v1053_v44, 0.0 }
 0x18d   : > { %v1093_v15 = vmax.f32 %v976_v46, 0.0 }
 0x18e   : > { %v1188_v45 = vpack.c.bf16 %v1124_v48, %v1124_v48 }
 0x18f   : > { %v1157_v49 = vpack.c.bf16 %v1093_v15, %v1093_v15  ;;  %v886_v50 = vpop.f32.mrf.mxu2 }
 0x190   : > { %1253 = vst.msk [vmem:[%s1951_s23 + $0xec] sm:$0xf] %vm1193_vm1, %v1188_v45  ;;  %v887_v30 = vadd.f32 %v1932_v53, %v886_v50  ;;  %v808_v55 = vpop.f32.mrf.mxu0  ;;  %v817_v53 = vadd.f32 %v1760_v56, %v1953_v9 }
 0x191   : > { %1222 = vst.msk [vmem:[%s1951_s23 + $0x70] sm:$0xf] %vm1193_vm1, %v1157_v49  ;;  %v809_v57 = vadd.f32 %v1760_v56, %v808_v55  ;;  %v982_v28 = vpop.f32.mrf.mxu1 }
 0x192   : > { %v1056_v58 = vadd.f32 %v1055_v47, %v887_v30 }
 0x193   : > { %v978_v59 = vadd.f32 %v977_v32, %v809_v57 }
 0x194   : > { %v1125_v60 = vmax.f32 %v1056_v58, 0.0 }
 0x195   : > { %v1094_v51 = vmax.f32 %v978_v59, 0.0 }
 0x196   : > { %v1189_v62 = vpack.c.bf16 %v1125_v60, %v1125_v60 }
 0x197   : > { %v1158_v63 = vpack.c.bf16 %v1094_v51, %v1094_v51  ;;  %v888_v39 = vpop.f32.mrf.mxu2 }
 0x198   : > { %1254 = vst.msk [vmem:[%s1951_s23 + $0xf0] sm:$0xf] %vm1193_vm1, %v1189_v62  ;;  %v889_v1 = vadd.f32 %v1760_v56, %v888_v39  ;;  %v811_v4 = vpop.f32.mrf.mxu0 }
 0x199   : > { %1223 = vst.msk [vmem:[%s1951_s23 + $0x74] sm:$0xf] %vm1193_vm1, %v1158_v63  ;;  %v812_v5 = vadd.f32 %v1760_v56, %v811_v4  ;;  %v985_v6 = vpop.f32.mrf.mxu1 }
 0x19a   : > { %v1058_v7 = vadd.f32 %v1057_v61, %v889_v1  ;;  %v986_v8 = vadd.f32 %v985_v6, %v817_v53 }
 0x19b   : > { %v981_v10 = vadd.f32 %v980_v43, %v812_v5 }
 0x19c   : > { %v1126_v52 = vmax.f32 %v1058_v7, 0.0  ;;  %v1097_v40 = vmax.f32 %v986_v8, 0.0 }
 0x19d   : > { %v1095_v12 = vmax.f32 %v981_v10, 0.0 }
 0x19e   : > { %v1190_v13 = vpack.c.bf16 %v1126_v52, %v1126_v52  ;;  %v1161_v2 = vpack.c.bf16 %v1097_v40, %v1097_v40 }
 0x19f   : > { %v1159_v9 = vpack.c.bf16 %v1095_v12, %v1095_v12  ;;  %v891_v17 = vpop.f32.mrf.mxu2 }
 0x1a0   : > { %1255 = vst.msk [vmem:[%s1951_s23 + $0xf4] sm:$0xf] %vm1193_vm1, %v1190_v13  ;;  %v892_v19 = vadd.f32 %v1760_v56, %v891_v17  ;;  %v813_v20 = vpop.f32.mrf.mxu0 }
 0x1a1   : > { %1224 = vst.msk [vmem:[%s1951_s23 + $0x78] sm:$0xf] %vm1193_vm1, %v1159_v9  ;;  %v814_v21 = vadd.f32 %v1760_v56, %v813_v20  ;;  %v987_v22 = vpop.f32.mrf.mxu1 }
 0x1a2   : > { %1226 = vst.msk [vmem:[%s1951_s23 + $0x80] sm:$0xf] %vm1193_vm1, %v1161_v2  ;;  %v1061_v23 = vadd.f32 %v1060_v16, %v892_v19  ;;  %v988_v54 = vadd.f32 %v987_v22, %v819_v18 }
 0x1a3   : > { %v983_v3 = vadd.f32 %v982_v28, %v814_v21 }
 0x1a4   : > { %v1127_v24 = vmax.f32 %v1061_v23, 0.0  ;;  %v1098_v26 = vmax.f32 %v988_v54, 0.0 }
 0x1a5   : > { %v1096_v25 = vmax.f32 %v983_v3, 0.0 }
 0x1a6   : > { %v1191_v0 = vpack.c.bf16 %v1127_v24, %v1127_v24  ;;  %v1162_v29 = vpack.c.bf16 %v1098_v26, %v1098_v26 }
 0x1a7   : > { %v1160_v31 = vpack.c.bf16 %v1096_v25, %v1096_v25  ;;  %v893_v32 = vpop.f32.mrf.mxu2 }
 0x1a8   : > { %1256 = vst.msk [vmem:[%s1951_s23 + $0xf8] sm:$0xf] %vm1193_vm1, %v1191_v0  ;;  %v894_v33 = vadd.f32 %v1760_v56, %v893_v32 }
 0x1a9   : > { %1225 = vst.msk [vmem:[%s1951_s23 + $0x7c] sm:$0xf] %vm1193_vm1, %v1160_v31 }
 0x1aa   : > { %1227 = vst.msk [vmem:[%s1951_s23 + $0x84] sm:$0xf] %vm1193_vm1, %v1162_v29  ;;  %v1063_v35 = vadd.f32 %v1062_v34, %v894_v33 }
 0x1ac   : > { %v1128_v11 = vmax.f32 %v1063_v35, 0.0 }
 0x1ae   : > { %v1192_v14 = vpack.c.bf16 %v1128_v11, %v1128_v11 }
 0x1b0   : > { %1257 = vst.msk [vmem:[%s1951_s23 + $0xfc] sm:$0xf] %vm1193_vm1, %v1192_v14 }
 0x1b1 PF: > { %s13_s12 = sadd.s32 1, %s1767_s12  }
 0x1b2   : > { %p10_p4 = scmp.ge.s32.totalorder %s13_s12, 4  }
 0x1b4   :  { %12 = sbr.rel (!%p10_p4) target bundleno = 1 (0x1), region = 62 }

// kernel: agent_forward.5
= control target key start
LH: loop header
LB: loop body
LE: loop exit
PB: predicated region body
PF: predicated region fallthrough
CT: control target
= control target key end

     0   :  { %vm598_vm0 = vcmask 519168   ;;  %s1221_s1 = inlined_call_operand.vmem [shape: bf16[512,64], index: 1, kind: input, shape index: {}]   ;;  %s1222_s2 = inlined_call_operand.vmem [shape: f32[1,64], index: 2, kind: input, shape index: {}]   ;;  %s1223_s0 = inlined_call_operand.vmem [shape: bf16[96,512], index: 0, kind: input, shape index: {}]   ;;  %s1224_s3 = inlined_call_operand.vmem [shape: bf16[96,64], index: 3, kind: output, shape index: {}]  }
   0x1   :  { %v870_v0 = vld [vmem:[%s1221_s1 + $0x38] sm:$0xff]  ;;  %v869_v4 = vld [vmem:[%s1221_s1 + $0x30] sm:$0xff]  ;;  %v868_v8 = vld [vmem:[%s1221_s1 + $0x28] sm:$0xff] }
   0x2   :  { %v878_v1 = vld [vmem:[%s1221_s1 + $0x78] sm:$0xff]  ;;  %418 = vmatpush.bf16.msra.mxu0 %v870_v0  ;;  %v877_v5 = vld [vmem:[%s1221_s1 + $0x70] sm:$0xff]  ;;  %v876_v9 = vld [vmem:[%s1221_s1 + $0x68] sm:$0xff] }
   0x3   :  { %v886_v2 = vld [vmem:[%s1221_s1 + $0xb8] sm:$0xff]  ;;  %457 = vmatpush.bf16.msra.mxu1 %v878_v1  ;;  %v885_v6 = vld [vmem:[%s1221_s1 + $0xb0] sm:$0xff]  ;;  %v884_v10 = vld [vmem:[%s1221_s1 + $0xa8] sm:$0xff] }
   0x4   :  { %v894_v3 = vld [vmem:[%s1221_s1 + $0xf8] sm:$0xff]  ;;  %496 = vmatpush.bf16.msra.mxu2 %v886_v2  ;;  %v893_v7 = vld [vmem:[%s1221_s1 + $0xf0] sm:$0xff]  ;;  %v892_v11 = vld [vmem:[%s1221_s1 + $0xe8] sm:$0xff] }
   0x5   :  { %535 = vmatpush.bf16.msra.mxu3 %v894_v3  ;;  %v867_v12 = vld [vmem:[%s1221_s1 + $0x20] sm:$0xff]  ;;  %v866_v16 = vld [vmem:[%s1221_s1 + $0x18] sm:$0xff]  ;;  %v865_v20 = vld [vmem:[%s1221_s1 + $0x10] sm:$0xff] }
   0x6   :  { %419 = vmatpush.bf16.msra.mxu0 %v869_v4  ;;  %v875_v13 = vld [vmem:[%s1221_s1 + $0x60] sm:$0xff]  ;;  %v874_v17 = vld [vmem:[%s1221_s1 + $0x58] sm:$0xff]  ;;  %v873_v21 = vld [vmem:[%s1221_s1 + $0x50] sm:$0xff] }
   0x7   :  { %458 = vmatpush.bf16.msra.mxu1 %v877_v5  ;;  %v883_v14 = vld [vmem:[%s1221_s1 + $0xa0] sm:$0xff]  ;;  %v882_v18 = vld [vmem:[%s1221_s1 + $0x98] sm:$0xff]  ;;  %v881_v22 = vld [vmem:[%s1221_s1 + $0x90] sm:$0xff] }
   0x8   :  { %497 = vmatpush.bf16.msra.mxu2 %v885_v6  ;;  %v891_v15 = vld [vmem:[%s1221_s1 + $0xe0] sm:$0xff]  ;;  %v890_v19 = vld [vmem:[%s1221_s1 + $0xd8] sm:$0xff]  ;;  %v889_v23 = vld [vmem:[%s1221_s1 + $0xd0] sm:$0xff] }
   0x9   :  { %536 = vmatpush.bf16.msra.mxu3 %v893_v7  ;;  %v864_v24 = vld [vmem:[%s1221_s1 + $0x8] sm:$0xff]  ;;  %v863_v28 = vld [vmem:[%s1221_s1] sm:$0xff]  ;;  %v841_v33 = vld [vmem:[%s1223_s0 + $0xc] sm:$0xf0] }
   0xa   :  { %420 = vmatpush.bf16.msra.mxu0 %v868_v8  ;;  %v872_v25 = vld [vmem:[%s1221_s1 + $0x48] sm:$0xff]  ;;  %v871_v29 = vld [vmem:[%s1221_s1 + $0x40] sm:$0xff]  ;;  %v619_v35 = vld [vmem:[%s1223_s0 + $0x10] sm:$0xf0] }
   0xb   :  { %459 = vmatpush.bf16.msra.mxu1 %v876_v9  ;;  %v880_v26 = vld [vmem:[%s1221_s1 + $0x88] sm:$0xff]  ;;  %v879_v30 = vld [vmem:[%s1221_s1 + $0x80] sm:$0xff]  ;;  %v842_v37 = vld [vmem:[%s1223_s0 + $0x14] sm:$0xf0] }
   0xc   :  { %498 = vmatpush.bf16.msra.mxu2 %v884_v10  ;;  %v888_v27 = vld [vmem:[%s1221_s1 + $0xc8] sm:$0xff]  ;;  %v887_v31 = vld [vmem:[%s1221_s1 + $0xc0] sm:$0xff]  ;;  %v627_v39 = vld [vmem:[%s1223_s0 + $0x18] sm:$0xf0] }
   0xd   :  { %537 = vmatpush.bf16.msra.mxu3 %v892_v11  ;;  %v617_v32 = vld [vmem:[%s1223_s0] sm:$0xf]  ;;  %v839_v34 = vld [vmem:[%s1223_s0 + $0x4] sm:$0xf]  ;;  %v625_v36 = vld [vmem:[%s1223_s0 + $0x8] sm:$0xf] }
   0xe   :  { %421 = vmatpush.bf16.msra.mxu0 %v867_v12  ;;  %v840_v38 = vld [vmem:[%s1223_s0 + $0xc] sm:$0xf]  ;;  %v618_v40 = vor.u32 %v841_v33, %v617_v32  ;;  %v622_v41 = vor.u32 %v839_v34, %v619_v35  ;;  %v626_v42 = vor.u32 %v842_v37, %v625_v36  ;;  %v633_v44 = vld [vmem:[%s1223_s0 + $0x20] sm:$0xf]  ;;  %v845_v45 = vld [vmem:[%s1223_s0 + $0x2c] sm:$0xf0] }
   0xf   :  { %460 = vmatpush.bf16.msra.mxu1 %v875_v13  ;;  %v630_v43 = vor.u32 %v840_v38, %v627_v39  ;;  %v843_v46 = vld [vmem:[%s1223_s0 + $0x24] sm:$0xf]  ;;  %v635_v47 = vld [vmem:[%s1223_s0 + $0x30] sm:$0xf0]  ;;  %v641_v48 = vld [vmem:[%s1223_s0 + $0x28] sm:$0xf]  ;;  %v634_v52 = vor.u32 %v845_v45, %v633_v44 }
  0x10   :  { %499 = vmatpush.bf16.msra.mxu2 %v883_v14  ;;  %v846_v49 = vld [vmem:[%s1223_s0 + $0x34] sm:$0xf0]  ;;  %v844_v50 = vld [vmem:[%s1223_s0 + $0x2c] sm:$0xf]  ;;  %v643_v51 = vld [vmem:[%s1223_s0 + $0x38] sm:$0xf0]  ;;  %v638_v53 = vor.u32 %v843_v46, %v635_v47 }
  0x11   :  { %538 = vmatpush.bf16.msra.mxu3 %v891_v15  ;;  %v642_v54 = vor.u32 %v846_v49, %v641_v48  ;;  %v646_v55 = vor.u32 %v844_v50, %v643_v51  ;;  %v649_v56 = vld [vmem:[%s1223_s0 + $0x40] sm:$0xf]  ;;  %v849_v57 = vld [vmem:[%s1223_s0 + $0x4c] sm:$0xf0]  ;;  %v847_v58 = vld [vmem:[%s1223_s0 + $0x44] sm:$0xf] }
  0x12   :  { %422 = vmatpush.bf16.msra.mxu0 %v866_v16  ;;  %v651_v59 = vld [vmem:[%s1223_s0 + $0x50] sm:$0xf0]  ;;  %v657_v60 = vld [vmem:[%s1223_s0 + $0x48] sm:$0xf]  ;;  %v850_v61 = vld [vmem:[%s1223_s0 + $0x54] sm:$0xf0]  ;;  %v650_v0 = vor.u32 %v849_v57, %v649_v56 }
  0x13   :  { %461 = vmatpush.bf16.msra.mxu1 %v874_v17  ;;  %v848_v62 = vld [vmem:[%s1223_s0 + $0x4c] sm:$0xf]  ;;  %v659_v63 = vld [vmem:[%s1223_s0 + $0x58] sm:$0xf0]  ;;  %v654_v1 = vor.u32 %v847_v58, %v651_v59  ;;  %v658_v2 = vor.u32 %v850_v61, %v657_v60  ;;  %v665_v4 = vld [vmem:[%s1223_s0 + $0x60] sm:$0xf] }
  0x14   :  { %500 = vmatpush.bf16.msra.mxu2 %v882_v18  ;;  %v662_v3 = vor.u32 %v848_v62, %v659_v63  ;;  %v853_v5 = vld [vmem:[%s1223_s0 + $0x6c] sm:$0xf0]  ;;  %v851_v6 = vld [vmem:[%s1223_s0 + $0x64] sm:$0xf]  ;;  %v667_v7 = vld [vmem:[%s1223_s0 + $0x70] sm:$0xf0] }
  0x15   :  { %539 = vmatpush.bf16.msra.mxu3 %v890_v19  ;;  %v673_v8 = vld [vmem:[%s1223_s0 + $0x68] sm:$0xf]  ;;  %v854_v9 = vld [vmem:[%s1223_s0 + $0x74] sm:$0xf0]  ;;  %v852_v10 = vld [vmem:[%s1223_s0 + $0x6c] sm:$0xf]  ;;  %v666_v12 = vor.u32 %v853_v5, %v665_v4  ;;  %v670_v13 = vor.u32 %v851_v6, %v667_v7 }
  0x16   :  { %423 = vmatpush.bf16.msra.mxu0 %v865_v20  ;;  %v675_v11 = vld [vmem:[%s1223_s0 + $0x78] sm:$0xf0]  ;;  %v674_v14 = vor.u32 %v854_v9, %v673_v8  ;;  %v681_v16 = vld [vmem:[%s1223_s0 + $0x80] sm:$0xf]  ;;  %v857_v17 = vld [vmem:[%s1223_s0 + $0x8c] sm:$0xf0] }
  0x17   :  { %462 = vmatpush.bf16.msra.mxu1 %v873_v21  ;;  %v678_v15 = vor.u32 %v852_v10, %v675_v11  ;;  %v855_v18 = vld [vmem:[%s1223_s0 + $0x84] sm:$0xf]  ;;  %v683_v19 = vld [vmem:[%s1223_s0 + $0x90] sm:$0xf0]  ;;  %v689_v20 = vld [vmem:[%s1223_s0 + $0x88] sm:$0xf] }
  0x18   :  { %501 = vmatpush.bf16.msra.mxu2 %v881_v22  ;;  %v858_v21 = vld [vmem:[%s1223_s0 + $0x94] sm:$0xf0]  ;;  %v856_v22 = vld [vmem:[%s1223_s0 + $0x8c] sm:$0xf]  ;;  %v705_v32 = vld [vmem:[%s1223_s0 + $0xa8] sm:$0xf] }
  0x19   :  { %540 = vmatpush.bf16.msra.mxu3 %v889_v23  ;;  %v691_v23 = vld [vmem:[%s1223_s0 + $0x98] sm:$0xf0]  ;;  %v862_v33 = vld [vmem:[%s1223_s0 + $0xb4] sm:$0xf0]  ;;  %v860_v34 = vld [vmem:[%s1223_s0 + $0xac] sm:$0xf] }
  0x1a   :  { %424 = vmatpush.bf16.msra.mxu0 %v864_v24  ;;  %v682_v24 = vor.u32 %v857_v17, %v681_v16  ;;  %v707_v35 = vld [vmem:[%s1223_s0 + $0xb8] sm:$0xf0]  ;;  %v706_v38 = vor.u32 %v862_v33, %v705_v32 }
  0x1b   :  { %463 = vmatpush.bf16.msra.mxu1 %v872_v25  ;;  %v686_v25 = vor.u32 %v855_v18, %v683_v19  ;;  %v710_v39 = vor.u32 %v860_v34, %v707_v35 }
  0x1c   :  { %502 = vmatpush.bf16.msra.mxu2 %v880_v26  ;;  %v690_v26 = vor.u32 %v858_v21, %v689_v20 }
  0x1d   :  { %541 = vmatpush.bf16.msra.mxu3 %v888_v27  ;;  %v694_v27 = vor.u32 %v856_v22, %v691_v23 }
  0x1e   :  { %425 = vmatpush.bf16.msra.mxu0 %v863_v28  ;;  %v697_v28 = vld [vmem:[%s1223_s0 + $0xa0] sm:$0xf] }
  0x1f   :  { %464 = vmatpush.bf16.msra.mxu1 %v871_v29  ;;  %v861_v29 = vld [vmem:[%s1223_s0 + $0xac] sm:$0xf0] }
  0x20   :  { %503 = vmatpush.bf16.msra.mxu2 %v879_v30  ;;  %v859_v30 = vld [vmem:[%s1223_s0 + $0xa4] sm:$0xf]  ;;  %v698_v36 = vor.u32 %v861_v29, %v697_v28 }
  0x21   :  { %542 = vmatpush.bf16.msra.mxu3 %v887_v31  ;;  %426 = vmatmul.bf16.vlgmr.msra.gmra.mxu0 %v618_v40  ;;  %v699_v31 = vld [vmem:[%s1223_s0 + $0xb0] sm:$0xf0]  ;;  %v1159_v40 = vld [vmem:[%s1222_s2] ss:$0 sm:$0xff] }
  0x22   :  { %465 = vmatmul.bf16.vlgmr.msra.gmra.mxu1 %v622_v41  ;;  %v702_v37 = vor.u32 %v859_v30, %v699_v31 }
  0x23   :  { %504 = vmatmul.bf16.vlgmr.msra.gmra.mxu2 %v626_v42 }
  0x24   :  { %543 = vmatmul.bf16.vlgmr.msra.gmra.mxu3 %v630_v43 }
  0x31   :  { %431 = vmatmul.bf16.gmra.mxu0 %v634_v52 }
  0x32   :  { %470 = vmatmul.bf16.gmra.mxu1 %v638_v53 }
  0x33   :  { %509 = vmatmul.bf16.gmra.mxu2 %v642_v54 }
  0x34   :  { %548 = vmatmul.bf16.gmra.mxu3 %v646_v55 }
  0x41   :  { %436 = vmatmul.bf16.gmra.mxu0 %v650_v0 }
  0x42   :  { %475 = vmatmul.bf16.gmra.mxu1 %v654_v1 }
  0x43   :  { %514 = vmatmul.bf16.gmra.mxu2 %v658_v2 }
  0x44   :  { %553 = vmatmul.bf16.gmra.mxu3 %v662_v3 }
  0x51   :  { %441 = vmatmul.bf16.gmra.mxu0 %v666_v12 }
  0x52   :  { %480 = vmatmul.bf16.gmra.mxu1 %v670_v13 }
  0x53   :  { %519 = vmatmul.bf16.gmra.mxu2 %v674_v14 }
  0x54   :  { %558 = vmatmul.bf16.gmra.mxu3 %v678_v15 }
  0x61   :  { %446 = vmatmul.bf16.gmra.mxu0 %v682_v24 }
  0x62   :  { %485 = vmatmul.bf16.gmra.mxu1 %v686_v25 }
  0x63   :  { %524 = vmatmul.bf16.gmra.mxu2 %v690_v26 }
  0x64   :  { %563 = vmatmul.bf16.gmra.mxu3 %v694_v27 }
  0x71   :  { %451 = vmatmul.bf16.gmra.mxu0 %v698_v36 }
  0x72   :  { %490 = vmatmul.bf16.gmra.mxu1 %v702_v37 }
  0x73   :  { %529 = vmatmul.bf16.gmra.mxu2 %v706_v38 }
  0x74   :  { %568 = vmatmul.bf16.gmra.mxu3 %v710_v39 }
  0x9e   :  { %v427_v41 = vpop.f32.mrf.mxu0 }
  0x9f   :  { %v466_v42 = vpop.f32.mrf.mxu1  ;;  %v428_v43 = vadd.f32 %v1159_v40, %v427_v41 }
  0xa1   :  { %v467_v44 = vadd.f32 %v466_v42, %v428_v43 }
  0xa6   :  { %v505_v45 = vpop.f32.mrf.mxu2  ;;  %v429_v48 = vpop.f32.mrf.mxu0 }
  0xa7   :  { %v544_v46 = vpop.f32.mrf.mxu3  ;;  %v506_v47 = vadd.f32 %v505_v45, %v467_v44  ;;  %v468_v49 = vpop.f32.mrf.mxu1  ;;  %v430_v51 = vadd.f32 %v1159_v40, %v429_v48 }
  0xa9   :  { %v545_v50 = vadd.f32 %v544_v46, %v506_v47  ;;  %v469_v54 = vadd.f32 %v468_v49, %v430_v51 }
  0xab   :  { %v574_v52 = vmax.f32 %v545_v50, 0.0 }
  0xad   :  { %v586_v53 = vpack.c.bf16 %v574_v52, %v574_v52 }
  0xae   :  { %v507_v55 = vpop.f32.mrf.mxu2  ;;  %v432_v58 = vpop.f32.mrf.mxu0 }
  0xaf   :  { %v546_v56 = vpop.f32.mrf.mxu3  ;;  %599 = vst.msk [vmem:[%s1224_s3] sm:$0xf] %vm598_vm0, %v586_v53  ;;  %v508_v57 = vadd.f32 %v507_v55, %v469_v54  ;;  %v471_v59 = vpop.f32.mrf.mxu1  ;;  %v433_v60 = vadd.f32 %v1159_v40, %v432_v58 }
  0xb1   :  { %v547_v61 = vadd.f32 %v546_v56, %v508_v57  ;;  %v472_v63 = vadd.f32 %v471_v59, %v433_v60 }
  0xb3   :  { %v575_v62 = vmax.f32 %v547_v61, 0.0 }
  0xb5   :  { %v587_v0 = vpack.c.bf16 %v575_v62, %v575_v62 }
  0xb6   :  { %v510_v1 = vpop.f32.mrf.mxu2  ;;  %v434_v4 = vpop.f32.mrf.mxu0 }
  0xb7   :  { %v549_v2 = vpop.f32.mrf.mxu3  ;;  %600 = vst.msk [vmem:[%s1224_s3 + $0x4] sm:$0xf] %vm598_vm0, %v587_v0  ;;  %v511_v3 = vadd.f32 %v510_v1, %v472_v63  ;;  %v473_v5 = vpop.f32.mrf.mxu1  ;;  %v435_v7 = vadd.f32 %v1159_v40, %v434_v4 }
  0xb9   :  { %v550_v6 = vadd.f32 %v549_v2, %v511_v3  ;;  %v474_v10 = vadd.f32 %v473_v5, %v435_v7 }
  0xbb   :  { %v576_v8 = vmax.f32 %v550_v6, 0.0 }
  0xbd   :  { %v588_v9 = vpack.c.bf16 %v576_v8, %v576_v8 }
  0xbe   :  { %v512_v11 = vpop.f32.mrf.mxu2  ;;  %v437_v14 = vpop.f32.mrf.mxu0 }
  0xbf   :  { %v551_v12 = vpop.f32.mrf.mxu3  ;;  %601 = vst.msk [vmem:[%s1224_s3 + $0x8] sm:$0xf] %vm598_vm0, %v588_v9  ;;  %v513_v13 = vadd.f32 %v512_v11, %v474_v10  ;;  %v476_v15 = vpop.f32.mrf.mxu1  ;;  %v438_v16 = vadd.f32 %v1159_v40, %v437_v14 }
  0xc1   :  { %v552_v17 = vadd.f32 %v551_v12, %v513_v13  ;;  %v477_v19 = vadd.f32 %v476_v15, %v438_v16 }
  0xc3   :  { %v577_v18 = vmax.f32 %v552_v17, 0.0 }
  0xc5   :  { %v589_v20 = vpack.c.bf16 %v577_v18, %v577_v18 }
  0xc6   :  { %v515_v21 = vpop.f32.mrf.mxu2  ;;  %v439_v24 = vpop.f32.mrf.mxu0 }
  0xc7   :  { %v554_v22 = vpop.f32.mrf.mxu3  ;;  %602 = vst.msk [vmem:[%s1224_s3 + $0xc] sm:$0xf] %vm598_vm0, %v589_v20  ;;  %v516_v23 = vadd.f32 %v515_v21, %v477_v19  ;;  %v478_v25 = vpop.f32.mrf.mxu1  ;;  %v440_v27 = vadd.f32 %v1159_v40, %v439_v24 }
  0xc9   :  { %v555_v26 = vadd.f32 %v554_v22, %v516_v23  ;;  %v479_v30 = vadd.f32 %v478_v25, %v440_v27 }
  0xcb   :  { %v578_v28 = vmax.f32 %v555_v26, 0.0 }
  0xcd   :  { %v590_v29 = vpack.c.bf16 %v578_v28, %v578_v28 }
  0xce   :  { %v517_v31 = vpop.f32.mrf.mxu2  ;;  %v442_v34 = vpop.f32.mrf.mxu0 }
  0xcf   :  { %v556_v32 = vpop.f32.mrf.mxu3  ;;  %603 = vst.msk [vmem:[%s1224_s3 + $0x10] sm:$0xf] %vm598_vm0, %v590_v29  ;;  %v518_v33 = vadd.f32 %v517_v31, %v479_v30  ;;  %v481_v35 = vpop.f32.mrf.mxu1  ;;  %v443_v36 = vadd.f32 %v1159_v40, %v442_v34 }
  0xd1   :  { %v557_v37 = vadd.f32 %v556_v32, %v518_v33  ;;  %v482_v39 = vadd.f32 %v481_v35, %v443_v36 }
  0xd3   :  { %v579_v38 = vmax.f32 %v557_v37, 0.0 }
  0xd5   :  { %v591_v41 = vpack.c.bf16 %v579_v38, %v579_v38 }
  0xd6   :  { %v520_v42 = vpop.f32.mrf.mxu2  ;;  %v444_v45 = vpop.f32.mrf.mxu0 }
  0xd7   :  { %v559_v43 = vpop.f32.mrf.mxu3  ;;  %604 = vst.msk [vmem:[%s1224_s3 + $0x14] sm:$0xf] %vm598_vm0, %v591_v41  ;;  %v521_v44 = vadd.f32 %v520_v42, %v482_v39  ;;  %v483_v46 = vpop.f32.mrf.mxu1  ;;  %v445_v48 = vadd.f32 %v1159_v40, %v444_v45 }
  0xd9   :  { %v560_v47 = vadd.f32 %v559_v43, %v521_v44  ;;  %v484_v51 = vadd.f32 %v483_v46, %v445_v48 }
  0xdb   :  { %v580_v49 = vmax.f32 %v560_v47, 0.0 }
  0xdd   :  { %v592_v50 = vpack.c.bf16 %v580_v49, %v580_v49 }
  0xde   :  { %v522_v52 = vpop.f32.mrf.mxu2  ;;  %v447_v55 = vpop.f32.mrf.mxu0 }
  0xdf   :  { %v561_v53 = vpop.f32.mrf.mxu3  ;;  %605 = vst.msk [vmem:[%s1224_s3 + $0x18] sm:$0xf] %vm598_vm0, %v592_v50  ;;  %v523_v54 = vadd.f32 %v522_v52, %v484_v51  ;;  %v486_v56 = vpop.f32.mrf.mxu1  ;;  %v448_v57 = vadd.f32 %v1159_v40, %v447_v55 }
  0xe1   :  { %v562_v58 = vadd.f32 %v561_v53, %v523_v54  ;;  %v487_v60 = vadd.f32 %v486_v56, %v448_v57 }
  0xe3   :  { %v581_v59 = vmax.f32 %v562_v58, 0.0 }
  0xe5   :  { %v593_v61 = vpack.c.bf16 %v581_v59, %v581_v59 }
  0xe6   :  { %v525_v62 = vpop.f32.mrf.mxu2  ;;  %v449_v1 = vpop.f32.mrf.mxu0 }
  0xe7   :  { %v564_v63 = vpop.f32.mrf.mxu3  ;;  %606 = vst.msk [vmem:[%s1224_s3 + $0x1c] sm:$0xf] %vm598_vm0, %v593_v61  ;;  %v526_v0 = vadd.f32 %v525_v62, %v487_v60  ;;  %v488_v2 = vpop.f32.mrf.mxu1  ;;  %v450_v4 = vadd.f32 %v1159_v40, %v449_v1 }
  0xe9   :  { %v565_v3 = vadd.f32 %v564_v63, %v526_v0  ;;  %v489_v7 = vadd.f32 %v488_v2, %v450_v4 }
  0xeb   :  { %v582_v5 = vmax.f32 %v565_v3, 0.0 }
  0xed   :  { %v594_v6 = vpack.c.bf16 %v582_v5, %v582_v5 }
  0xee   :  { %v527_v8 = vpop.f32.mrf.mxu2  ;;  %v452_v11 = vpop.f32.mrf.mxu0 }
  0xef   :  { %v566_v9 = vpop.f32.mrf.mxu3  ;;  %607 = vst.msk [vmem:[%s1224_s3 + $0x20] sm:$0xf] %vm598_vm0, %v594_v6  ;;  %v528_v10 = vadd.f32 %v527_v8, %v489_v7  ;;  %v453_v12 = vadd.f32 %v1159_v40, %v452_v11  ;;  %v491_v14 = vpop.f32.mrf.mxu1 }
  0xf1   :  { %v567_v13 = vadd.f32 %v566_v9, %v528_v10  ;;  %v492_v16 = vadd.f32 %v491_v14, %v453_v12 }
  0xf3   :  { %v583_v15 = vmax.f32 %v567_v13, 0.0 }
  0xf5   :  { %v595_v17 = vpack.c.bf16 %v583_v15, %v583_v15 }
  0xf6   :  { %v530_v18 = vpop.f32.mrf.mxu2  ;;  %v454_v21 = vpop.f32.mrf.mxu0 }
  0xf7   :  { %v569_v19 = vpop.f32.mrf.mxu3  ;;  %608 = vst.msk [vmem:[%s1224_s3 + $0x24] sm:$0xf] %vm598_vm0, %v595_v17  ;;  %v531_v20 = vadd.f32 %v530_v18, %v492_v16  ;;  %v455_v23 = vadd.f32 %v1159_v40, %v454_v21  ;;  %v493_v25 = vpop.f32.mrf.mxu1 }
  0xf9   :  { %v570_v22 = vadd.f32 %v569_v19, %v531_v20  ;;  %v494_v27 = vadd.f32 %v493_v25, %v455_v23 }
  0xfb   :  { %v584_v24 = vmax.f32 %v570_v22, 0.0 }
  0xfd   :  { %v596_v26 = vpack.c.bf16 %v584_v24, %v584_v24 }
  0xfe   :  { %v532_v28 = vpop.f32.mrf.mxu2 }
  0xff   :  { %609 = vst.msk [vmem:[%s1224_s3 + $0x28] sm:$0xf] %vm598_vm0, %v596_v26  ;;  %v533_v29 = vadd.f32 %v532_v28, %v494_v27  ;;  %v571_v30 = vpop.f32.mrf.mxu3 }
 0x101   :  { %v572_v31 = vadd.f32 %v571_v30, %v533_v29 }
 0x103   :  { %v585_v32 = vmax.f32 %v572_v31, 0.0 }
 0x105   :  { %v597_v33 = vpack.c.bf16 %v585_v32, %v585_v32 }
 0x107   :  { %610 = vst.msk [vmem:[%s1224_s3 + $0x2c] sm:$0xf] %vm598_vm0, %v597_v33 }

// kernel: agent_forward.6
= control target key start
LH: loop header
LB: loop body
LE: loop exit
PB: predicated region body
PF: predicated region fallthrough
CT: control target
= control target key end

     0   :  { %vm400_vm0 = vcmask 523264   ;;  %vm542_vm1 = vcmask 519168   ;;  %s1068_s1 = inlined_call_operand.vmem [shape: bf16[576,64], index: 1, kind: input, shape index: {}]   ;;  %s1069_s2 = inlined_call_operand.vmem [shape: f32[1,64], index: 2, kind: input, shape index: {}]   ;;  %s1070_s0 = inlined_call_operand.vmem [shape: bf16[48,576], index: 0, kind: input, shape index: {}]   ;;  %s1071_s3 = inlined_call_operand.vmem [shape: bf16[48,64], index: 3, kind: output, shape index: {}]  }
   0x1   :  { %v782_v0 = vld [vmem:[%s1068_s1 + $0x38] sm:$0xff]  ;;  %v781_v1 = vld [vmem:[%s1068_s1 + $0x30] sm:$0xff]  ;;  %v780_v6 = vld [vmem:[%s1068_s1 + $0x28] sm:$0xff] }
   0x2   :  { %811 = vmatpush.bf16.msra.mxu1 %v782_v0  ;;  %410 = vmatpush.bf16.msra.mxu0 %v782_v0  ;;  %v798_v2 = vld [vmem:[%s1068_s1 + $0xb8] sm:$0xff]  ;;  %v797_v4 = vld [vmem:[%s1068_s1 + $0xb0] sm:$0xff]  ;;  %v796_v7 = vld [vmem:[%s1068_s1 + $0xa8] sm:$0xff] }
   0x3   :  { %v806_v3 = vld [vmem:[%s1068_s1 + $0xf8] sm:$0xff]  ;;  %458 = vmatpush.bf16.msra.mxu2 %v798_v2  ;;  %v805_v5 = vld [vmem:[%s1068_s1 + $0xf0] sm:$0xff]  ;;  %v804_v8 = vld [vmem:[%s1068_s1 + $0xe8] sm:$0xff] }
   0x4   :  { %482 = vmatpush.bf16.msra.mxu3 %v806_v3  ;;  %v779_v9 = vld [vmem:[%s1068_s1 + $0x20] sm:$0xff]  ;;  %v778_v12 = vld [vmem:[%s1068_s1 + $0x18] sm:$0xff]  ;;  %v777_v15 = vld [vmem:[%s1068_s1 + $0x10] sm:$0xff] }
   0x5   :  { %v795_v10 = vld [vmem:[%s1068_s1 + $0xa0] sm:$0xff]  ;;  %v794_v13 = vld [vmem:[%s1068_s1 + $0x98] sm:$0xff]  ;;  %v793_v16 = vld [vmem:[%s1068_s1 + $0x90] sm:$0xff] }
   0x6   :  { %812 = vmatpush.bf16.msra.mxu1 %v781_v1  ;;  %411 = vmatpush.bf16.msra.mxu0 %v781_v1  ;;  %v803_v11 = vld [vmem:[%s1068_s1 + $0xe0] sm:$0xff]  ;;  %v802_v14 = vld [vmem:[%s1068_s1 + $0xd8] sm:$0xff]  ;;  %v801_v17 = vld [vmem:[%s1068_s1 + $0xd0] sm:$0xff] }
   0x7   :  { %459 = vmatpush.bf16.msra.mxu2 %v797_v4  ;;  %v776_v18 = vld [vmem:[%s1068_s1 + $0x8] sm:$0xff]  ;;  %v775_v21 = vld [vmem:[%s1068_s1] sm:$0xff]  ;;  %v767_v23 = vld [vmem:[%s1070_s0 + $0x38] sm:$0xf0] }
   0x8   :  { %483 = vmatpush.bf16.msra.mxu3 %v805_v5  ;;  %v792_v19 = vld [vmem:[%s1068_s1 + $0x88] sm:$0xff]  ;;  %v555_v24 = vld [vmem:[%s1070_s0] sm:$0xf]  ;;  %v762_v25 = vld [vmem:[%s1070_s0 + $0x10] sm:$0xf0] }
   0x9   :  { %v800_v20 = vld [vmem:[%s1068_s1 + $0xc8] sm:$0xff]  ;;  %v790_v26 = vld [vmem:[%s1068_s1 + $0x78] sm:$0xff]  ;;  %v791_v28 = vld [vmem:[%s1068_s1 + $0x80] sm:$0xff]  ;;  %v556_v32 = vor.u32 %v762_v25, %v555_v24 }
   0xa   :  { %813 = vmatpush.bf16.msra.mxu1 %v780_v6  ;;  %412 = vmatpush.bf16.msra.mxu0 %v780_v6  ;;  %v575_v22 = vld [vmem:[%s1070_s0 + $0x28] sm:$0xf]  ;;  %v810_v27 = vld [vmem:[%s1068_s1 + $0x118] sm:$0xff]  ;;  %v799_v29 = vld [vmem:[%s1068_s1 + $0xc0] sm:$0xff] }
   0xb   :  { %460 = vmatpush.bf16.msra.mxu2 %v796_v7  ;;  %v563_v30 = vld [vmem:[%s1070_s0 + $0x8] sm:$0xf]  ;;  %v576_v31 = vor.u32 %v767_v23, %v575_v22  ;;  %v763_v33 = vld [vmem:[%s1070_s0 + $0x18] sm:$0xf0]  ;;  %v761_v34 = vld [vmem:[%s1070_s0 + $0xc] sm:$0xf] }
   0xc   :  { %484 = vmatpush.bf16.msra.mxu3 %v804_v8  ;;  %v565_v35 = vld [vmem:[%s1070_s0 + $0x1c] sm:$0xf0]  ;;  %v789_v36 = vld [vmem:[%s1068_s1 + $0x70] sm:$0xff]  ;;  %v564_v38 = vor.u32 %v763_v33, %v563_v30  ;;  %v788_v40 = vld [vmem:[%s1068_s1 + $0x68] sm:$0xff] }
   0xd   :  { %v809_v37 = vld [vmem:[%s1068_s1 + $0x110] sm:$0xff]  ;;  %v568_v39 = vor.u32 %v761_v34, %v565_v35  ;;  %v808_v41 = vld [vmem:[%s1068_s1 + $0x108] sm:$0xff]  ;;  %v787_v42 = vld [vmem:[%s1068_s1 + $0x60] sm:$0xff] }
   0xe   :  { %814 = vmatpush.bf16.msra.mxu1 %v779_v9  ;;  %413 = vmatpush.bf16.msra.mxu0 %v779_v9  ;;  %v807_v43 = vld [vmem:[%s1068_s1 + $0x100] sm:$0xff]  ;;  %v595_v44 = vld [vmem:[%s1070_s0 + $0x50] sm:$0xf]  ;;  %v786_v48 = vld [vmem:[%s1068_s1 + $0x58] sm:$0xff] }
   0xf   :  { %461 = vmatpush.bf16.msra.mxu2 %v795_v10  ;;  %v772_v45 = vld [vmem:[%s1070_s0 + $0x60] sm:$0xf0]  ;;  %v571_v46 = vld [vmem:[%s1070_s0 + $0x10] sm:$0xf]  ;;  %v766_v53 = vld [vmem:[%s1070_s0 + $0x34] sm:$0xf] }
  0x10   :  { %485 = vmatpush.bf16.msra.mxu3 %v803_v11  ;;  %v764_v47 = vld [vmem:[%s1070_s0 + $0x20] sm:$0xf0]  ;;  %v583_v49 = vld [vmem:[%s1070_s0 + $0x30] sm:$0xf]  ;;  %v596_v50 = vor.u32 %v772_v45, %v595_v44  ;;  %v585_v54 = vld [vmem:[%s1070_s0 + $0x44] sm:$0xf0] }
  0x11   :  { %v572_v51 = vor.u32 %v764_v47, %v571_v46  ;;  %v768_v52 = vld [vmem:[%s1070_s0 + $0x40] sm:$0xf0]  ;;  %v785_v55 = vld [vmem:[%s1068_s1 + $0x50] sm:$0xff]  ;;  %v588_v57 = vor.u32 %v766_v53, %v585_v54  ;;  %v784_v58 = vld [vmem:[%s1068_s1 + $0x48] sm:$0xff] }
  0x12   :  { %815 = vmatpush.bf16.msra.mxu1 %v778_v12  ;;  %414 = vmatpush.bf16.msra.mxu0 %v778_v12  ;;  %v584_v56 = vor.u32 %v768_v52, %v583_v49  ;;  %v783_v59 = vld [vmem:[%s1068_s1 + $0x40] sm:$0xff]  ;;  %v557_v61 = vld [vmem:[%s1070_s0 + $0x14] sm:$0xf0]  ;;  %v769_v63 = vld [vmem:[%s1070_s0 + $0x48] sm:$0xf0] }
  0x13   :  { %462 = vmatpush.bf16.msra.mxu2 %v794_v13  ;;  %v760_v60 = vld [vmem:[%s1070_s0 + $0x4] sm:$0xf]  ;;  %v591_v62 = vld [vmem:[%s1070_s0 + $0x38] sm:$0xf]  ;;  %v773_v3 = vld [vmem:[%s1070_s0 + $0x68] sm:$0xf0] }
  0x14   :  { %486 = vmatpush.bf16.msra.mxu3 %v802_v14  ;;  %v603_v0 = vld [vmem:[%s1070_s0 + $0x58] sm:$0xf]  ;;  %v560_v1 = vor.u32 %v760_v60, %v557_v61  ;;  %v592_v2 = vor.u32 %v769_v63, %v591_v62  ;;  %v771_v4 = vld [vmem:[%s1070_s0 + $0x5c] sm:$0xf]  ;;  %v605_v5 = vld [vmem:[%s1070_s0 + $0x6c] sm:$0xf0] }
  0x15   :  { %v604_v6 = vor.u32 %v773_v3, %v603_v0  ;;  %v608_v7 = vor.u32 %v771_v4, %v605_v5  ;;  %v765_v8 = vld [vmem:[%s1070_s0 + $0x2c] sm:$0xf]  ;;  %v577_v9 = vld [vmem:[%s1070_s0 + $0x3c] sm:$0xf0]  ;;  %v774_v11 = vld [vmem:[%s1070_s0 + $0x70] sm:$0xf0] }
  0x16   :  { %816 = vmatpush.bf16.msra.mxu1 %v777_v15  ;;  %415 = vmatpush.bf16.msra.mxu0 %v777_v15  ;;  %v611_v10 = vld [vmem:[%s1070_s0 + $0x60] sm:$0xf]  ;;  %v580_v12 = vor.u32 %v765_v8, %v577_v9  ;;  %v770_v14 = vld [vmem:[%s1070_s0 + $0x54] sm:$0xf]  ;;  %v597_v15 = vld [vmem:[%s1070_s0 + $0x64] sm:$0xf0] }
  0x17   :  { %463 = vmatpush.bf16.msra.mxu2 %v793_v16  ;;  %v612_v13 = vor.u32 %v774_v11, %v611_v10  ;;  %v600_v16 = vor.u32 %v770_v14, %v597_v15 }
  0x18   :  { %487 = vmatpush.bf16.msra.mxu3 %v801_v17 }
  0x1a   :  { %817 = vmatpush.bf16.msra.mxu1 %v776_v18  ;;  %416 = vmatpush.bf16.msra.mxu0 %v776_v18 }
  0x1b   :  { %464 = vmatpush.bf16.msra.mxu2 %v792_v19 }
  0x1c   :  { %488 = vmatpush.bf16.msra.mxu3 %v800_v20 }
  0x1e   :  { %818 = vmatpush.bf16.msra.mxu1 %v775_v21  ;;  %417 = vmatpush.bf16.msra.mxu0 %v775_v21 }
  0x1f   :  { %465 = vmatpush.bf16.msra.mxu2 %v791_v28 }
  0x20   :  { %489 = vmatpush.bf16.msra.mxu3 %v799_v29 }
  0x21   :  { %423 = vmatmul.bf16.vlgmr.msra.gmra.mxu1 %v576_v31  ;;  %418 = vmatmul.bf16.vlgmr.msra.gmra.mxu0 %v556_v32 }
  0x22   :  { %434 = vmatpush.bf16.msrb.mxu1 %v790_v26  ;;  %510 = vmatpush.bf16.msrb.mxu0 %v810_v27  ;;  %v819_v26 = vld [vmem:[%s1069_s2] ss:$0 sm:$0xff] }
  0x23   :  { %466 = vmatmul.bf16.vlgmr.msra.gmra.mxu2 %v564_v38  ;;  %490 = vmatmul.bf16.vlgmr.msra.gmra.mxu3 %v568_v39 }
  0x26   :  { %435 = vmatpush.bf16.msrb.mxu1 %v789_v36  ;;  %511 = vmatpush.bf16.msrb.mxu0 %v809_v37 }
  0x2a   :  { %436 = vmatpush.bf16.msrb.mxu1 %v788_v40  ;;  %512 = vmatpush.bf16.msrb.mxu0 %v808_v41 }
  0x2e   :  { %437 = vmatpush.bf16.msrb.mxu1 %v787_v42  ;;  %513 = vmatpush.bf16.msrb.mxu0 %v807_v43 }
  0x31   :  { %428 = vmatmul.bf16.gmra.mxu1 %v596_v50  ;;  %757 = vmatmul.msk.bf16.vlgmr.msrb.gmra.mxu0 %vm400_vm0, %v572_v51 }
  0x32   :  { %438 = vmatpush.bf16.msrb.mxu1 %v786_v48 }
  0x33   :  { %471 = vmatmul.bf16.gmra.mxu2 %v584_v56  ;;  %495 = vmatmul.bf16.gmra.mxu3 %v588_v57 }
  0x36   :  { %439 = vmatpush.bf16.msrb.mxu1 %v785_v55 }
  0x3a   :  { %440 = vmatpush.bf16.msrb.mxu1 %v784_v58 }
  0x3e   :  { %441 = vmatpush.bf16.msrb.mxu1 %v783_v59 }
  0x41   :  { %442 = vmatmul.bf16.vlgmr.msrb.gmra.mxu1 %v560_v1  ;;  %758 = vmatmul.msk.bf16.gmra.mxu0 %vm400_vm0, %v592_v2 }
  0x43   :  { %476 = vmatmul.bf16.gmra.mxu2 %v604_v6  ;;  %500 = vmatmul.bf16.gmra.mxu3 %v608_v7 }
  0x51   :  { %447 = vmatmul.bf16.gmra.mxu1 %v580_v12  ;;  %759 = vmatmul.msk.bf16.gmra.mxu0 %vm400_vm0, %v612_v13 }
  0x61   :  { %452 = vmatmul.bf16.gmra.mxu1 %v600_v16 }
  0x9e   :  { %v424_v17 = vpop.f32.mrf.mxu1  ;;  %v419_v19 = vpop.f32.mrf.mxu0 }
  0x9f   :  { %v420_v27 = vadd.f32 %v819_v26, %v419_v19  ;;  %v425_v45 = vadd.f32 %v819_v26, %v424_v17 }
  0xa6   :  { %v426_v18 = vpop.f32.mrf.mxu1  ;;  %v421_v21 = vpop.f32.mrf.mxu0 }
  0xa7   :  { %v467_v23 = vpop.f32.mrf.mxu2  ;;  %v491_v24 = vpop.f32.mrf.mxu3  ;;  %v422_v35 = vadd.f32 %v819_v26, %v421_v21  ;;  %v427_v55 = vadd.f32 %v819_v26, %v426_v18 }
  0xae   :  { %v429_v20 = vpop.f32.mrf.mxu1  ;;  %v515_v25 = vpop.f32.mrf.mxu0 }
  0xaf   :  { %v469_v30 = vpop.f32.mrf.mxu2  ;;  %v493_v32 = vpop.f32.mrf.mxu3  ;;  %v430_v1 = vadd.f32 %v819_v26, %v429_v20 }
  0xb6   :  { %v431_v22 = vpop.f32.mrf.mxu1  ;;  %v517_v34 = vpop.f32.mrf.mxu0 }
  0xb7   :  { %v472_v42 = vpop.f32.mrf.mxu2  ;;  %v496_v44 = vpop.f32.mrf.mxu3  ;;  %v432_v12 = vadd.f32 %v819_v26, %v431_v22 }
  0xbe   :  { %v443_v28 = vpop.f32.mrf.mxu1  ;;  %v520_v47 = vpop.f32.mrf.mxu0 }
  0xbf   :  { %v444_v29 = vadd.f32 %v443_v28, %v420_v27  ;;  %v474_v54 = vpop.f32.mrf.mxu2  ;;  %v498_v57 = vpop.f32.mrf.mxu3 }
  0xc1   :  { %v468_v31 = vadd.f32 %v467_v23, %v444_v29 }
  0xc3   :  { %v492_v33 = vadd.f32 %v491_v24, %v468_v31 }
  0xc5   :  { %v516_v36 = vadd.f32 %v515_v25, %v492_v33 }
  0xc6   :  { %v445_v37 = vpop.f32.mrf.mxu1  ;;  %v522_v61 = vpop.f32.mrf.mxu0 }
  0xc7   :  { %v530_v38 = vmax.f32 %v516_v36, 0.0  ;;  %v446_v39 = vadd.f32 %v445_v37, %v422_v35  ;;  %v477_v3 = vpop.f32.mrf.mxu2  ;;  %v501_v7 = vpop.f32.mrf.mxu3 }
  0xc9   :  { %v536_v40 = vpack.c.bf16 %v530_v38, %v530_v38  ;;  %v470_v41 = vadd.f32 %v469_v30, %v446_v39 }
  0xcb   :  { %543 = vst.msk [vmem:[%s1071_s3] sm:$0xf] %vm542_vm1, %v536_v40  ;;  %v494_v43 = vadd.f32 %v493_v32, %v470_v41 }
  0xcd   :  { %v518_v46 = vadd.f32 %v517_v34, %v494_v43 }
  0xce   :  { %v448_v48 = vpop.f32.mrf.mxu1  ;;  %v525_v10 = vpop.f32.mrf.mxu0 }
  0xcf   :  { %v531_v49 = vmax.f32 %v518_v46, 0.0  ;;  %v449_v50 = vadd.f32 %v448_v48, %v425_v45  ;;  %v479_v17 = vpop.f32.mrf.mxu2  ;;  %v503_v20 = vpop.f32.mrf.mxu3 }
  0xd1   :  { %v537_v51 = vpack.c.bf16 %v531_v49, %v531_v49  ;;  %v473_v52 = vadd.f32 %v472_v42, %v449_v50 }
  0xd3   :  { %544 = vst.msk [vmem:[%s1071_s3 + $0x4] sm:$0xf] %vm542_vm1, %v537_v51  ;;  %v497_v53 = vadd.f32 %v496_v44, %v473_v52 }
  0xd5   :  { %v521_v56 = vadd.f32 %v520_v47, %v497_v53 }
  0xd6   :  { %v450_v58 = vpop.f32.mrf.mxu1  ;;  %v527_v23 = vpop.f32.mrf.mxu0 }
  0xd7   :  { %v532_v59 = vmax.f32 %v521_v56, 0.0  ;;  %v451_v60 = vadd.f32 %v450_v58, %v427_v55 }
  0xd9   :  { %v538_v62 = vpack.c.bf16 %v532_v59, %v532_v59  ;;  %v475_v63 = vadd.f32 %v474_v54, %v451_v60 }
  0xdb   :  { %545 = vst.msk [vmem:[%s1071_s3 + $0x8] sm:$0xf] %vm542_vm1, %v538_v62  ;;  %v499_v0 = vadd.f32 %v498_v57, %v475_v63 }
  0xdd   :  { %v523_v2 = vadd.f32 %v522_v61, %v499_v0 }
  0xde   :  { %v453_v4 = vpop.f32.mrf.mxu1 }
  0xdf   :  { %v533_v5 = vmax.f32 %v523_v2, 0.0  ;;  %v454_v6 = vadd.f32 %v453_v4, %v430_v1 }
  0xe1   :  { %v539_v8 = vpack.c.bf16 %v533_v5, %v533_v5  ;;  %v478_v9 = vadd.f32 %v477_v3, %v454_v6 }
  0xe3   :  { %546 = vst.msk [vmem:[%s1071_s3 + $0xc] sm:$0xf] %vm542_vm1, %v539_v8  ;;  %v502_v11 = vadd.f32 %v501_v7, %v478_v9 }
  0xe5   :  { %v526_v13 = vadd.f32 %v525_v10, %v502_v11 }
  0xe6   :  { %v455_v14 = vpop.f32.mrf.mxu1 }
  0xe7   :  { %v534_v15 = vmax.f32 %v526_v13, 0.0  ;;  %v456_v16 = vadd.f32 %v455_v14, %v432_v12 }
  0xe9   :  { %v540_v18 = vpack.c.bf16 %v534_v15, %v534_v15  ;;  %v480_v19 = vadd.f32 %v479_v17, %v456_v16 }
  0xeb   :  { %547 = vst.msk [vmem:[%s1071_s3 + $0x10] sm:$0xf] %vm542_vm1, %v540_v18  ;;  %v504_v21 = vadd.f32 %v503_v20, %v480_v19 }
  0xed   :  { %v528_v24 = vadd.f32 %v527_v23, %v504_v21 }
  0xef   :  { %v535_v25 = vmax.f32 %v528_v24, 0.0 }
  0xf1   :  { %v541_v27 = vpack.c.bf16 %v535_v25, %v535_v25 }
  0xf3   :  { %548 = vst.msk [vmem:[%s1071_s3 + $0x14] sm:$0xf] %vm542_vm1, %v541_v27 }

// kernel: agent_forward.7
= control target key start
LH: loop header
LB: loop body
LE: loop exit
PB: predicated region body
PF: predicated region fallthrough
CT: control target
= control target key end

     0   :  { %s7429_s1 = inlined_call_operand.vmem [shape: bf16[1536,512], index: 1, kind: input, shape index: {}]   ;;  %s7430_s0 = inlined_call_operand.vmem [shape: bf16[8,1536], index: 0, kind: input, shape index: {}]   ;;  %s7431_s2 = inlined_call_operand.vmem [shape: f32[1,512], index: 2, kind: input, shape index: {}]   ;;  %s7432_s3 = inlined_call_operand.vmem [shape: f32[8,512], index: 3, kind: output, shape index: {}]  }
   0x1   :  { %v3126_v0 = vld [vmem:[%s7429_s1 + $0xe0] sm:$0xf]  ;;  %v4578_v1 = vld [vmem:[%s7429_s1 + $0xec] sm:$0xf0] }
   0x2   :  { %v3254_v2 = vld [vmem:[%s7429_s1 + $0x1e0] sm:$0xf]  ;;  %v3127_v3 = vor.u32 %v4578_v1, %v3126_v0  ;;  %v4610_v4 = vld [vmem:[%s7429_s1 + $0x1ec] sm:$0xf0] }
   0x3   :  { %v3382_v5 = vld [vmem:[%s7429_s1 + $0x2e0] sm:$0xf]  ;;  %v4642_v6 = vld [vmem:[%s7429_s1 + $0x2ec] sm:$0xf0]  ;;  %v3255_v7 = vor.u32 %v4610_v4, %v3254_v2 }
   0x4   :  { %v3383_v8 = vor.u32 %v4642_v6, %v3382_v5  ;;  %v3510_v9 = vld [vmem:[%s7429_s1 + $0x3e0] sm:$0xf]  ;;  %v4674_v10 = vld [vmem:[%s7429_s1 + $0x3ec] sm:$0xf0]  ;;  %2376 = vmatpush.bf16.msra.mxu0 %v3127_v3 }
   0x5   :  { %v3110_v11 = vld [vmem:[%s7429_s1 + $0xc0] sm:$0xf]  ;;  %v3511_v12 = vor.u32 %v4674_v10, %v3510_v9  ;;  %v4574_v13 = vld [vmem:[%s7429_s1 + $0xcc] sm:$0xf0]  ;;  %2389 = vmatpush.bf16.msra.mxu1 %v3255_v7 }
   0x6   :  { %v3238_v14 = vld [vmem:[%s7429_s1 + $0x1c0] sm:$0xf]  ;;  %v4606_v15 = vld [vmem:[%s7429_s1 + $0x1cc] sm:$0xf0]  ;;  %2402 = vmatpush.bf16.msra.mxu2 %v3383_v8  ;;  %v3111_v16 = vor.u32 %v4574_v13, %v3110_v11 }
   0x7   :  { %v3239_v17 = vor.u32 %v4606_v15, %v3238_v14  ;;  %v3366_v18 = vld [vmem:[%s7429_s1 + $0x2c0] sm:$0xf]  ;;  %v4638_v19 = vld [vmem:[%s7429_s1 + $0x2cc] sm:$0xf0]  ;;  %2415 = vmatpush.bf16.msra.mxu3 %v3511_v12 }
   0x8   :  { %v3494_v20 = vld [vmem:[%s7429_s1 + $0x3c0] sm:$0xf]  ;;  %v3367_v21 = vor.u32 %v4638_v19, %v3366_v18  ;;  %v4670_v22 = vld [vmem:[%s7429_s1 + $0x3cc] sm:$0xf0]  ;;  %2377 = vmatpush.bf16.msra.mxu0 %v3111_v16 }
   0x9   :  { %v3094_v23 = vld [vmem:[%s7429_s1 + $0xa0] sm:$0xf]  ;;  %v4570_v24 = vld [vmem:[%s7429_s1 + $0xac] sm:$0xf0]  ;;  %v3495_v25 = vor.u32 %v4670_v22, %v3494_v20  ;;  %2390 = vmatpush.bf16.msra.mxu1 %v3239_v17 }
   0xa   :  { %v3222_v26 = vld [vmem:[%s7429_s1 + $0x1a0] sm:$0xf]  ;;  %v4602_v27 = vld [vmem:[%s7429_s1 + $0x1ac] sm:$0xf0]  ;;  %v3095_v29 = vor.u32 %v4570_v24, %v3094_v23  ;;  %2403 = vmatpush.bf16.msra.mxu2 %v3367_v21 }
   0xb   :  { %v3350_v28 = vld [vmem:[%s7429_s1 + $0x2a0] sm:$0xf]  ;;  %v4634_v30 = vld [vmem:[%s7429_s1 + $0x2ac] sm:$0xf0]  ;;  %v3223_v33 = vor.u32 %v4602_v27, %v3222_v26  ;;  %2416 = vmatpush.bf16.msra.mxu3 %v3495_v25 }
   0xc   :  { %v3478_v31 = vld [vmem:[%s7429_s1 + $0x3a0] sm:$0xf]  ;;  %v4666_v32 = vld [vmem:[%s7429_s1 + $0x3ac] sm:$0xf0]  ;;  %v3351_v34 = vor.u32 %v4634_v30, %v3350_v28  ;;  %2378 = vmatpush.bf16.msra.mxu0 %v3095_v29 }
   0xd   :  { %v3078_v35 = vld [vmem:[%s7429_s1 + $0x80] sm:$0xf]  ;;  %v4566_v36 = vld [vmem:[%s7429_s1 + $0x8c] sm:$0xf0]  ;;  %v3479_v38 = vor.u32 %v4666_v32, %v3478_v31  ;;  %2391 = vmatpush.bf16.msra.mxu1 %v3223_v33 }
   0xe   :  { %v3206_v37 = vld [vmem:[%s7429_s1 + $0x180] sm:$0xf]  ;;  %v4598_v39 = vld [vmem:[%s7429_s1 + $0x18c] sm:$0xf0]  ;;  %v3079_v44 = vor.u32 %v4566_v36, %v3078_v35  ;;  %2404 = vmatpush.bf16.msra.mxu2 %v3351_v34 }
   0xf   :  { %v3334_v40 = vld [vmem:[%s7429_s1 + $0x280] sm:$0xf]  ;;  %v4630_v41 = vld [vmem:[%s7429_s1 + $0x28c] sm:$0xf0]  ;;  %v3207_v45 = vor.u32 %v4598_v39, %v3206_v37  ;;  %2417 = vmatpush.bf16.msra.mxu3 %v3479_v38 }
  0x10   :  { %v3462_v42 = vld [vmem:[%s7429_s1 + $0x380] sm:$0xf]  ;;  %v4662_v43 = vld [vmem:[%s7429_s1 + $0x38c] sm:$0xf0]  ;;  %v3335_v46 = vor.u32 %v4630_v41, %v3334_v40  ;;  %2379 = vmatpush.bf16.msra.mxu0 %v3079_v44 }
  0x11   :  { %v3062_v47 = vld [vmem:[%s7429_s1 + $0x60] sm:$0xf]  ;;  %v4562_v48 = vld [vmem:[%s7429_s1 + $0x6c] sm:$0xf0]  ;;  %v3463_v50 = vor.u32 %v4662_v43, %v3462_v42  ;;  %2392 = vmatpush.bf16.msra.mxu1 %v3207_v45 }
  0x12   :  { %v3190_v49 = vld [vmem:[%s7429_s1 + $0x160] sm:$0xf]  ;;  %v4594_v51 = vld [vmem:[%s7429_s1 + $0x16c] sm:$0xf0]  ;;  %v3063_v56 = vor.u32 %v4562_v48, %v3062_v47  ;;  %2405 = vmatpush.bf16.msra.mxu2 %v3335_v46 }
  0x13   :  { %v3318_v52 = vld [vmem:[%s7429_s1 + $0x260] sm:$0xf]  ;;  %v4626_v53 = vld [vmem:[%s7429_s1 + $0x26c] sm:$0xf0]  ;;  %v3191_v57 = vor.u32 %v4594_v51, %v3190_v49  ;;  %2418 = vmatpush.bf16.msra.mxu3 %v3463_v50 }
  0x14   :  { %v3446_v54 = vld [vmem:[%s7429_s1 + $0x360] sm:$0xf]  ;;  %v4658_v55 = vld [vmem:[%s7429_s1 + $0x36c] sm:$0xf0]  ;;  %v3319_v58 = vor.u32 %v4626_v53, %v3318_v52  ;;  %2380 = vmatpush.bf16.msra.mxu0 %v3063_v56 }
  0x15   :  { %v3046_v59 = vld [vmem:[%s7429_s1 + $0x40] sm:$0xf]  ;;  %v4558_v60 = vld [vmem:[%s7429_s1 + $0x4c] sm:$0xf0]  ;;  %v3447_v62 = vor.u32 %v4658_v55, %v3446_v54  ;;  %2393 = vmatpush.bf16.msra.mxu1 %v3191_v57 }
  0x16   :  { %v3174_v61 = vld [vmem:[%s7429_s1 + $0x140] sm:$0xf]  ;;  %v4590_v63 = vld [vmem:[%s7429_s1 + $0x14c] sm:$0xf0]  ;;  %v3047_v4 = vor.u32 %v4558_v60, %v3046_v59  ;;  %2406 = vmatpush.bf16.msra.mxu2 %v3319_v58  ;;  %v15_v58 = vld [vmem:[%s7430_s0 + $0x8] sm:$0xff] }
  0x17   :  { %v3302_v0 = vld [vmem:[%s7429_s1 + $0x240] sm:$0xf]  ;;  %v4622_v1 = vld [vmem:[%s7429_s1 + $0x24c] sm:$0xf0]  ;;  %v3175_v5 = vor.u32 %v4590_v63, %v3174_v61  ;;  %2419 = vmatpush.bf16.msra.mxu3 %v3447_v62  ;;  %v422_v63 = vunpack.c.l.b16 %v15_v58 }
  0x18   :  { %v3430_v2 = vld [vmem:[%s7429_s1 + $0x340] sm:$0xf]  ;;  %v4654_v3 = vld [vmem:[%s7429_s1 + $0x34c] sm:$0xf0]  ;;  %v3303_v6 = vor.u32 %v4622_v1, %v3302_v0  ;;  %2381 = vmatpush.bf16.msra.mxu0 %v3047_v4  ;;  %v423_v0 = vunpack.c.h.b16 %v15_v58 }
  0x19   :  { %v3030_v7 = vld [vmem:[%s7429_s1 + $0x20] sm:$0xf]  ;;  %v4554_v8 = vld [vmem:[%s7429_s1 + $0x2c] sm:$0xf0]  ;;  %v3431_v10 = vor.u32 %v4654_v3, %v3430_v2  ;;  %2394 = vmatpush.bf16.msra.mxu1 %v3175_v5  ;;  %v5220_v4 = vpack.c.b16 %v422_v63, %v422_v63 }
  0x1a   :  { %v3158_v9 = vld [vmem:[%s7429_s1 + $0x120] sm:$0xf]  ;;  %v4586_v11 = vld [vmem:[%s7429_s1 + $0x12c] sm:$0xf0]  ;;  %v3031_v16 = vor.u32 %v4554_v8, %v3030_v7  ;;  %2407 = vmatpush.bf16.msra.mxu2 %v3303_v6  ;;  %v5225_v6 = vpack.c.b16 %v423_v0, %v423_v0 }
  0x1b   :  { %v3286_v12 = vld [vmem:[%s7429_s1 + $0x220] sm:$0xf]  ;;  %v4618_v13 = vld [vmem:[%s7429_s1 + $0x22c] sm:$0xf0]  ;;  %v3159_v19 = vor.u32 %v4586_v11, %v3158_v9  ;;  %2420 = vmatpush.bf16.msra.mxu3 %v3431_v10 }
  0x1c   :  { %v3414_v14 = vld [vmem:[%s7429_s1 + $0x320] sm:$0xf]  ;;  %v4650_v15 = vld [vmem:[%s7429_s1 + $0x32c] sm:$0xf0]  ;;  %v3287_v20 = vor.u32 %v4618_v13, %v3286_v12  ;;  %2382 = vmatpush.bf16.msra.mxu0 %v3031_v16 }
  0x1d   :  { %v3014_v17 = vld [vmem:[%s7429_s1] sm:$0xf]  ;;  %v4550_v18 = vld [vmem:[%s7429_s1 + $0xc] sm:$0xf0]  ;;  %v3415_v24 = vor.u32 %v4650_v15, %v3414_v14  ;;  %2395 = vmatpush.bf16.msra.mxu1 %v3159_v19 }
  0x1e   :  { %v3142_v21 = vld [vmem:[%s7429_s1 + $0x100] sm:$0xf]  ;;  %v4582_v22 = vld [vmem:[%s7429_s1 + $0x10c] sm:$0xf0]  ;;  %v3015_v31 = vor.u32 %v4550_v18, %v3014_v17  ;;  %2408 = vmatpush.bf16.msra.mxu2 %v3287_v20 }
  0x1f   :  { %v3270_v23 = vld [vmem:[%s7429_s1 + $0x200] sm:$0xf]  ;;  %v4614_v25 = vld [vmem:[%s7429_s1 + $0x20c] sm:$0xf0]  ;;  %v3143_v35 = vor.u32 %v4582_v22, %v3142_v21  ;;  %2421 = vmatpush.bf16.msra.mxu3 %v3415_v24 }
  0x20   :  { %v3398_v26 = vld [vmem:[%s7429_s1 + $0x300] sm:$0xf]  ;;  %v4646_v27 = vld [vmem:[%s7429_s1 + $0x30c] sm:$0xf0]  ;;  %v3271_v36 = vor.u32 %v4614_v25, %v3270_v23  ;;  %2383 = vmatpush.bf16.msra.mxu0 %v3015_v31 }
  0x21   :  { %v3638_v28 = vld [vmem:[%s7429_s1 + $0x4e0] sm:$0xf]  ;;  %v4706_v29 = vld [vmem:[%s7429_s1 + $0x4ec] sm:$0xf0]  ;;  %v3399_v39 = vor.u32 %v4646_v27, %v3398_v26  ;;  %2396 = vmatpush.bf16.msra.mxu1 %v3143_v35 }
  0x22   :  { %v3766_v30 = vld [vmem:[%s7429_s1 + $0x5e0] sm:$0xf]  ;;  %v4738_v32 = vld [vmem:[%s7429_s1 + $0x5ec] sm:$0xf0]  ;;  %v3639_v40 = vor.u32 %v4706_v29, %v3638_v28  ;;  %2409 = vmatpush.bf16.msra.mxu2 %v3271_v36 }
  0x23   :  { %v3894_v33 = vld [vmem:[%s7429_s1 + $0x6e0] sm:$0xf]  ;;  %v4770_v34 = vld [vmem:[%s7429_s1 + $0x6ec] sm:$0xf0]  ;;  %v3767_v41 = vor.u32 %v4738_v32, %v3766_v30  ;;  %2422 = vmatpush.bf16.msra.mxu3 %v3399_v39 }
  0x24   :  { %v4022_v37 = vld [vmem:[%s7429_s1 + $0x7e0] sm:$0xf]  ;;  %v4802_v38 = vld [vmem:[%s7429_s1 + $0x7ec] sm:$0xf0]  ;;  %v3895_v42 = vor.u32 %v4770_v34, %v3894_v33  ;;  %2428 = vmatpush.bf16.msrb.mxu0 %v3639_v40 }
  0x25   :  { %v3622_v43 = vld [vmem:[%s7429_s1 + $0x4c0] sm:$0xf]  ;;  %v4702_v44 = vld [vmem:[%s7429_s1 + $0x4cc] sm:$0xf0]  ;;  %v4023_v46 = vor.u32 %v4802_v38, %v4022_v37  ;;  %2441 = vmatpush.bf16.msrb.mxu1 %v3767_v41  ;;  %2410 = vmatmul.bf16.vlgmr.msra.gmra.mxu2 %v5220_v4 }
  0x26   :  { %v3750_v45 = vld [vmem:[%s7429_s1 + $0x5c0] sm:$0xf]  ;;  %v4734_v47 = vld [vmem:[%s7429_s1 + $0x5cc] sm:$0xf0]  ;;  %v3623_v52 = vor.u32 %v4702_v44, %v3622_v43  ;;  %2454 = vmatpush.bf16.msrb.mxu2 %v3895_v42  ;;  %2423 = vmatmul.bf16.vlgmr.msra.gmra.mxu3 %v5225_v6 }
  0x27   :  { %v3878_v48 = vld [vmem:[%s7429_s1 + $0x6c0] sm:$0xf]  ;;  %v4766_v49 = vld [vmem:[%s7429_s1 + $0x6cc] sm:$0xf0]  ;;  %v3751_v54 = vor.u32 %v4734_v47, %v3750_v45  ;;  %2467 = vmatpush.bf16.msrb.mxu3 %v4023_v46 }
  0x28   :  { %v4006_v50 = vld [vmem:[%s7429_s1 + $0x7c0] sm:$0xf]  ;;  %v4798_v51 = vld [vmem:[%s7429_s1 + $0x7cc] sm:$0xf0]  ;;  %v3879_v55 = vor.u32 %v4766_v49, %v3878_v48  ;;  %2429 = vmatpush.bf16.msrb.mxu0 %v3623_v52 }
  0x29   :  { %v3606_v53 = vld [vmem:[%s7429_s1 + $0x4a0] sm:$0xf]  ;;  %v4698_v56 = vld [vmem:[%s7429_s1 + $0x4ac] sm:$0xf0]  ;;  %v4007_v59 = vor.u32 %v4798_v51, %v4006_v50  ;;  %2442 = vmatpush.bf16.msrb.mxu1 %v3751_v54 }
  0x2a   :  { %v3734_v57 = vld [vmem:[%s7429_s1 + $0x5a0] sm:$0xf]  ;;  %v4730_v60 = vld [vmem:[%s7429_s1 + $0x5ac] sm:$0xf0]  ;;  %v3607_v3 = vor.u32 %v4698_v56, %v3606_v53  ;;  %2455 = vmatpush.bf16.msrb.mxu2 %v3879_v55 }
  0x2b   :  { %v3862_v61 = vld [vmem:[%s7429_s1 + $0x6a0] sm:$0xf]  ;;  %v4762_v62 = vld [vmem:[%s7429_s1 + $0x6ac] sm:$0xf0]  ;;  %v3735_v7 = vor.u32 %v4730_v60, %v3734_v57  ;;  %2468 = vmatpush.bf16.msrb.mxu3 %v4007_v59 }
  0x2c   :  { %v3990_v1 = vld [vmem:[%s7429_s1 + $0x7a0] sm:$0xf]  ;;  %v4794_v2 = vld [vmem:[%s7429_s1 + $0x7ac] sm:$0xf0]  ;;  %v3863_v8 = vor.u32 %v4762_v62, %v3862_v61  ;;  %2430 = vmatpush.bf16.msrb.mxu0 %v3607_v3  ;;  %v17_v3 = vld [vmem:[%s7430_s0 + $0x18] sm:$0xff] }
  0x2d   :  { %v14_v5 = vld [vmem:[%s7430_s0] sm:$0xff]  ;;  %v4694_v10 = vld [vmem:[%s7429_s1 + $0x48c] sm:$0xf0]  ;;  %v3991_v14 = vor.u32 %v4794_v2, %v3990_v1  ;;  %2443 = vmatpush.bf16.msrb.mxu1 %v3735_v7 }
  0x2e   :  { %v3590_v9 = vld [vmem:[%s7429_s1 + $0x480] sm:$0xf]  ;;  %v420_v12 = vunpack.c.l.b16 %v14_v5  ;;  %v421_v13 = vunpack.c.h.b16 %v14_v5  ;;  %v4726_v15 = vld [vmem:[%s7429_s1 + $0x58c] sm:$0xf0]  ;;  %2456 = vmatpush.bf16.msrb.mxu2 %v3863_v8 }
  0x2f   :  { %v3718_v11 = vld [vmem:[%s7429_s1 + $0x580] sm:$0xf]  ;;  %v4758_v17 = vld [vmem:[%s7429_s1 + $0x68c] sm:$0xf0]  ;;  %v3591_v22 = vor.u32 %v4694_v10, %v3590_v9  ;;  %2469 = vmatpush.bf16.msrb.mxu3 %v3991_v14 }
  0x30   :  { %v3846_v16 = vld [vmem:[%s7429_s1 + $0x680] sm:$0xf]  ;;  %v4790_v19 = vld [vmem:[%s7429_s1 + $0x78c] sm:$0xf0]  ;;  %v5252_v20 = vpack.c.b16 %v420_v12, %v420_v12  ;;  %v5255_v21 = vpack.c.b16 %v421_v13, %v421_v13  ;;  %v3719_v23 = vor.u32 %v4726_v15, %v3718_v11 }
  0x31   :  { %v3974_v18 = vld [vmem:[%s7429_s1 + $0x780] sm:$0xf]  ;;  %v3847_v24 = vor.u32 %v4758_v17, %v3846_v16  ;;  %v4690_v26 = vld [vmem:[%s7429_s1 + $0x46c] sm:$0xf0]  ;;  %2431 = vmatpush.bf16.msrb.mxu0 %v3591_v22  ;;  %v426_v17 = vunpack.c.l.b16 %v17_v3 }
  0x32   :  { %v3574_v25 = vld [vmem:[%s7429_s1 + $0x460] sm:$0xf]  ;;  %v3975_v28 = vor.u32 %v4790_v19, %v3974_v18  ;;  %v4722_v29 = vld [vmem:[%s7429_s1 + $0x56c] sm:$0xf0]  ;;  %2384 = vmatmul.bf16.vlgmr.msra.gmra.mxu0 %v5252_v20  ;;  %2397 = vmatmul.bf16.vlgmr.msra.gmra.mxu1 %v5255_v21 }
  0x33   :  { %v3702_v27 = vld [vmem:[%s7429_s1 + $0x560] sm:$0xf]  ;;  %v4754_v31 = vld [vmem:[%s7429_s1 + $0x66c] sm:$0xf0]  ;;  %v3575_v34 = vor.u32 %v4690_v26, %v3574_v25  ;;  %2444 = vmatpush.bf16.msrb.mxu1 %v3719_v23  ;;  %2457 = vmatpush.bf16.msrb.mxu2 %v3847_v24  ;;  %v427_v25 = vunpack.c.h.b16 %v17_v3 }
  0x34   :  { %v3830_v30 = vld [vmem:[%s7429_s1 + $0x660] sm:$0xf]  ;;  %v4786_v33 = vld [vmem:[%s7429_s1 + $0x76c] sm:$0xf0]  ;;  %v3703_v35 = vor.u32 %v4722_v29, %v3702_v27  ;;  %2470 = vmatpush.bf16.msrb.mxu3 %v3975_v28 }
  0x35   :  { %v3958_v32 = vld [vmem:[%s7429_s1 + $0x760] sm:$0xf]  ;;  %v3831_v36 = vor.u32 %v4754_v31, %v3830_v30  ;;  %v4686_v38 = vld [vmem:[%s7429_s1 + $0x44c] sm:$0xf0]  ;;  %2432 = vmatpush.bf16.msrb.mxu0 %v3575_v34 }
  0x36   :  { %v3558_v37 = vld [vmem:[%s7429_s1 + $0x440] sm:$0xf]  ;;  %v3959_v40 = vor.u32 %v4786_v33, %v3958_v32  ;;  %v4718_v41 = vld [vmem:[%s7429_s1 + $0x54c] sm:$0xf0] }
  0x37   :  { %v3686_v39 = vld [vmem:[%s7429_s1 + $0x540] sm:$0xf]  ;;  %v4750_v43 = vld [vmem:[%s7429_s1 + $0x64c] sm:$0xf0]  ;;  %v3559_v46 = vor.u32 %v4686_v38, %v3558_v37  ;;  %2445 = vmatpush.bf16.msrb.mxu1 %v3703_v35  ;;  %2458 = vmatpush.bf16.msrb.mxu2 %v3831_v36  ;;  %v5403_v38 = vpack.c.b16 %v426_v17, %v426_v17 }
  0x38   :  { %v3814_v42 = vld [vmem:[%s7429_s1 + $0x640] sm:$0xf]  ;;  %v4782_v45 = vld [vmem:[%s7429_s1 + $0x74c] sm:$0xf0]  ;;  %v3687_v47 = vor.u32 %v4718_v41, %v3686_v39  ;;  %2471 = vmatpush.bf16.msrb.mxu3 %v3959_v40 }
  0x39   :  { %v3942_v44 = vld [vmem:[%s7429_s1 + $0x740] sm:$0xf]  ;;  %v3815_v48 = vor.u32 %v4750_v43, %v3814_v42  ;;  %v4682_v50 = vld [vmem:[%s7429_s1 + $0x42c] sm:$0xf0]  ;;  %2433 = vmatpush.bf16.msrb.mxu0 %v3559_v46  ;;  %v5413_v42 = vpack.c.b16 %v427_v25, %v427_v25 }
  0x3a   :  { %v3542_v49 = vld [vmem:[%s7429_s1 + $0x420] sm:$0xf]  ;;  %v3943_v52 = vor.u32 %v4782_v45, %v3942_v44  ;;  %v4714_v53 = vld [vmem:[%s7429_s1 + $0x52c] sm:$0xf0] }
  0x3b   :  { %v3670_v51 = vld [vmem:[%s7429_s1 + $0x520] sm:$0xf]  ;;  %v4746_v55 = vld [vmem:[%s7429_s1 + $0x62c] sm:$0xf0]  ;;  %v3543_v59 = vor.u32 %v4682_v50, %v3542_v49  ;;  %2446 = vmatpush.bf16.msrb.mxu1 %v3687_v47  ;;  %2459 = vmatpush.bf16.msrb.mxu2 %v3815_v48 }
  0x3c   :  { %v3798_v54 = vld [vmem:[%s7429_s1 + $0x620] sm:$0xf]  ;;  %v4778_v57 = vld [vmem:[%s7429_s1 + $0x72c] sm:$0xf0]  ;;  %v3671_v63 = vor.u32 %v4714_v53, %v3670_v51  ;;  %2472 = vmatpush.bf16.msrb.mxu3 %v3943_v52 }
  0x3d   :  { %v3926_v56 = vld [vmem:[%s7429_s1 + $0x720] sm:$0xf]  ;;  %v4678_v60 = vld [vmem:[%s7429_s1 + $0x40c] sm:$0xf0]  ;;  %v3799_v0 = vor.u32 %v4746_v55, %v3798_v54  ;;  %2434 = vmatpush.bf16.msrb.mxu0 %v3543_v59 }
  0x3e   :  { %v3526_v58 = vld [vmem:[%s7429_s1 + $0x400] sm:$0xf]  ;;  %v4710_v62 = vld [vmem:[%s7429_s1 + $0x50c] sm:$0xf0]  ;;  %v3927_v5 = vor.u32 %v4778_v57, %v3926_v56 }
  0x3f   :  { %v3654_v61 = vld [vmem:[%s7429_s1 + $0x500] sm:$0xf]  ;;  %v4742_v2 = vld [vmem:[%s7429_s1 + $0x60c] sm:$0xf0]  ;;  %v3527_v13 = vor.u32 %v4678_v60, %v3526_v58  ;;  %2447 = vmatpush.bf16.msrb.mxu1 %v3671_v63  ;;  %2460 = vmatpush.bf16.msrb.mxu2 %v3799_v0 }
  0x40   :  { %v3782_v1 = vld [vmem:[%s7429_s1 + $0x600] sm:$0xf]  ;;  %v4774_v8 = vld [vmem:[%s7429_s1 + $0x70c] sm:$0xf0]  ;;  %v3655_v18 = vor.u32 %v4710_v62, %v3654_v61  ;;  %2473 = vmatpush.bf16.msrb.mxu3 %v3927_v5 }
  0x41   :  { %v3910_v7 = vld [vmem:[%s7429_s1 + $0x700] sm:$0xf]  ;;  %v16_v9 = vld [vmem:[%s7430_s0 + $0x10] sm:$0xff]  ;;  %v3783_v19 = vor.u32 %v4742_v2, %v3782_v1  ;;  %2435 = vmatpush.bf16.msrb.mxu0 %v3527_v13 }
  0x42   :  { %v4150_v10 = vld [vmem:[%s7429_s1 + $0x8e0] sm:$0xf]  ;;  %v4834_v11 = vld [vmem:[%s7429_s1 + $0x8ec] sm:$0xf0]  ;;  %v424_v24 = vunpack.c.l.b16 %v16_v9  ;;  %v3911_v26 = vor.u32 %v4774_v8, %v3910_v7  ;;  %v425_v28 = vunpack.c.h.b16 %v16_v9 }
  0x43   :  { %v4278_v12 = vld [vmem:[%s7429_s1 + $0x9e0] sm:$0xf]  ;;  %v4866_v14 = vld [vmem:[%s7429_s1 + $0x9ec] sm:$0xf0]  ;;  %v4151_v27 = vor.u32 %v4834_v11, %v4150_v10  ;;  %2448 = vmatpush.bf16.msrb.mxu1 %v3655_v18  ;;  %2461 = vmatpush.bf16.msrb.mxu2 %v3783_v19 }
  0x44   :  { %v4406_v15 = vld [vmem:[%s7429_s1 + $0xae0] sm:$0xf]  ;;  %v4898_v16 = vld [vmem:[%s7429_s1 + $0xaec] sm:$0xf0]  ;;  %v4279_v29 = vor.u32 %v4866_v14, %v4278_v12  ;;  %v5411_v41 = vpack.c.b16 %v424_v24, %v424_v24  ;;  %2474 = vmatpush.bf16.msrb.mxu3 %v3911_v26  ;;  %v5415_v44 = vpack.c.b16 %v425_v28, %v425_v28 }
  0x45   :  { %v4534_v22 = vld [vmem:[%s7429_s1 + $0xbe0] sm:$0xf]  ;;  %v4930_v23 = vld [vmem:[%s7429_s1 + $0xbec] sm:$0xf0]  ;;  %v4407_v30 = vor.u32 %v4898_v16, %v4406_v15  ;;  %2480 = vmatpush.bf16.msra.mxu0 %v4151_v27 }
  0x46   :  { %v4134_v31 = vld [vmem:[%s7429_s1 + $0x8c0] sm:$0xf]  ;;  %v4830_v32 = vld [vmem:[%s7429_s1 + $0x8cc] sm:$0xf0]  ;;  %v4535_v34 = vor.u32 %v4930_v23, %v4534_v22  ;;  %2462 = vmatmul.bf16.vlgmr.msrb.gmra.mxu2 %v5403_v38  ;;  %2436 = vmatmul.bf16.vlgmr.msrb.gmra.mxu0 %v5411_v41 }
  0x47   :  { %v4262_v33 = vld [vmem:[%s7429_s1 + $0x9c0] sm:$0xf]  ;;  %v4862_v35 = vld [vmem:[%s7429_s1 + $0x9cc] sm:$0xf0]  ;;  %v4135_v43 = vor.u32 %v4830_v32, %v4134_v31  ;;  %2493 = vmatpush.bf16.msra.mxu1 %v4279_v29  ;;  %2506 = vmatpush.bf16.msra.mxu2 %v4407_v30 }
  0x48   :  { %v4390_v36 = vld [vmem:[%s7429_s1 + $0xac0] sm:$0xf]  ;;  %v4894_v37 = vld [vmem:[%s7429_s1 + $0xacc] sm:$0xf0]  ;;  %v4263_v45 = vor.u32 %v4862_v35, %v4262_v33  ;;  %2519 = vmatpush.bf16.msra.mxu3 %v4535_v34  ;;  %2449 = vmatmul.bf16.vlgmr.msrb.gmra.mxu1 %v5415_v44 }
  0x49   :  { %v4518_v39 = vld [vmem:[%s7429_s1 + $0xbc0] sm:$0xf]  ;;  %v4926_v40 = vld [vmem:[%s7429_s1 + $0xbcc] sm:$0xf0]  ;;  %v4391_v46 = vor.u32 %v4894_v37, %v4390_v36  ;;  %2475 = vmatmul.bf16.vlgmr.msrb.gmra.mxu3 %v5413_v42  ;;  %2481 = vmatpush.bf16.msra.mxu0 %v4135_v43 }
  0x4a   :  { %v4118_v47 = vld [vmem:[%s7429_s1 + $0x8a0] sm:$0xf]  ;;  %v4826_v48 = vld [vmem:[%s7429_s1 + $0x8ac] sm:$0xf0]  ;;  %v4519_v50 = vor.u32 %v4926_v40, %v4518_v39 }
  0x4b   :  { %v4246_v49 = vld [vmem:[%s7429_s1 + $0x9a0] sm:$0xf]  ;;  %v4858_v51 = vld [vmem:[%s7429_s1 + $0x9ac] sm:$0xf0]  ;;  %v4119_v56 = vor.u32 %v4826_v48, %v4118_v47  ;;  %2494 = vmatpush.bf16.msra.mxu1 %v4263_v45  ;;  %2507 = vmatpush.bf16.msra.mxu2 %v4391_v46 }
  0x4c   :  { %v4374_v52 = vld [vmem:[%s7429_s1 + $0xaa0] sm:$0xf]  ;;  %v4890_v53 = vld [vmem:[%s7429_s1 + $0xaac] sm:$0xf0]  ;;  %v4247_v57 = vor.u32 %v4858_v51, %v4246_v49  ;;  %2520 = vmatpush.bf16.msra.mxu3 %v4519_v50 }
  0x4d   :  { %v4502_v54 = vld [vmem:[%s7429_s1 + $0xba0] sm:$0xf]  ;;  %v4922_v55 = vld [vmem:[%s7429_s1 + $0xbac] sm:$0xf0]  ;;  %v4375_v58 = vor.u32 %v4890_v53, %v4374_v52  ;;  %2482 = vmatpush.bf16.msra.mxu0 %v4119_v56 }
  0x4e   :  { %v4102_v59 = vld [vmem:[%s7429_s1 + $0x880] sm:$0xf]  ;;  %v4822_v60 = vld [vmem:[%s7429_s1 + $0x88c] sm:$0xf0]  ;;  %v4503_v62 = vor.u32 %v4922_v55, %v4502_v54 }
  0x4f   :  { %v4230_v61 = vld [vmem:[%s7429_s1 + $0x980] sm:$0xf]  ;;  %v4854_v63 = vld [vmem:[%s7429_s1 + $0x98c] sm:$0xf0]  ;;  %v4103_v5 = vor.u32 %v4822_v60, %v4102_v59  ;;  %2495 = vmatpush.bf16.msra.mxu1 %v4247_v57  ;;  %2508 = vmatpush.bf16.msra.mxu2 %v4375_v58 }
  0x50   :  { %v4358_v0 = vld [vmem:[%s7429_s1 + $0xa80] sm:$0xf]  ;;  %v4886_v1 = vld [vmem:[%s7429_s1 + $0xa8c] sm:$0xf0]  ;;  %v4231_v7 = vor.u32 %v4854_v63, %v4230_v61  ;;  %2521 = vmatpush.bf16.msra.mxu3 %v4503_v62  ;;  %v19_v61 = vld [vmem:[%s7430_s0 + $0x28] sm:$0xff] }
  0x51   :  { %v4486_v2 = vld [vmem:[%s7429_s1 + $0xb80] sm:$0xf]  ;;  %v4918_v3 = vld [vmem:[%s7429_s1 + $0xb8c] sm:$0xf0]  ;;  %v4359_v8 = vor.u32 %v4886_v1, %v4358_v0  ;;  %2483 = vmatpush.bf16.msra.mxu0 %v4103_v5  ;;  %v4576_v62 = vld [vmem:[%s7429_s1 + $0xe4] sm:$0xf] }
  0x52   :  { %v4086_v9 = vld [vmem:[%s7429_s1 + $0x860] sm:$0xf]  ;;  %v4818_v10 = vld [vmem:[%s7429_s1 + $0x86c] sm:$0xf0]  ;;  %v4487_v12 = vor.u32 %v4918_v3, %v4486_v2  ;;  %v3128_v63 = vld [vmem:[%s7429_s1 + $0xf0] sm:$0xf0] }
  0x53   :  { %v4214_v11 = vld [vmem:[%s7429_s1 + $0x960] sm:$0xf]  ;;  %v4850_v13 = vld [vmem:[%s7429_s1 + $0x96c] sm:$0xf0]  ;;  %v4087_v18 = vor.u32 %v4818_v10, %v4086_v9  ;;  %2496 = vmatpush.bf16.msra.mxu1 %v4231_v7  ;;  %2509 = vmatpush.bf16.msra.mxu2 %v4359_v8  ;;  %v4608_v0 = vld [vmem:[%s7429_s1 + $0x1e4] sm:$0xf] }
  0x54   :  { %v4342_v14 = vld [vmem:[%s7429_s1 + $0xa60] sm:$0xf]  ;;  %v4882_v15 = vld [vmem:[%s7429_s1 + $0xa6c] sm:$0xf0]  ;;  %v4215_v19 = vor.u32 %v4850_v13, %v4214_v11  ;;  %2522 = vmatpush.bf16.msra.mxu3 %v4487_v12  ;;  %v3256_v2 = vld [vmem:[%s7429_s1 + $0x1f0] sm:$0xf0]  ;;  %v430_v12 = vunpack.c.l.b16 %v19_v61 }
  0x55   :  { %v4470_v16 = vld [vmem:[%s7429_s1 + $0xb60] sm:$0xf]  ;;  %v4914_v17 = vld [vmem:[%s7429_s1 + $0xb6c] sm:$0xf0]  ;;  %v4343_v22 = vor.u32 %v4882_v15, %v4342_v14  ;;  %2484 = vmatpush.bf16.msra.mxu0 %v4087_v18  ;;  %v4640_v3 = vld [vmem:[%s7429_s1 + $0x2e4] sm:$0xf]  ;;  %v3131_v15 = vor.u32 %v4576_v62, %v3128_v63 }
  0x56   :  { %v4070_v23 = vld [vmem:[%s7429_s1 + $0x840] sm:$0xf]  ;;  %v4814_v24 = vld [vmem:[%s7429_s1 + $0x84c] sm:$0xf0]  ;;  %v4471_v26 = vor.u32 %v4914_v17, %v4470_v16  ;;  %v3384_v5 = vld [vmem:[%s7429_s1 + $0x2f0] sm:$0xf0]  ;;  %v431_v16 = vunpack.c.h.b16 %v19_v61  ;;  %v3259_v17 = vor.u32 %v4608_v0, %v3256_v2 }
  0x57   :  { %v4198_v25 = vld [vmem:[%s7429_s1 + $0x940] sm:$0xf]  ;;  %v4846_v27 = vld [vmem:[%s7429_s1 + $0x94c] sm:$0xf0]  ;;  %v4071_v32 = vor.u32 %v4814_v24, %v4070_v23  ;;  %2497 = vmatpush.bf16.msra.mxu1 %v4215_v19  ;;  %2510 = vmatpush.bf16.msra.mxu2 %v4343_v22  ;;  %v4672_v10 = vld [vmem:[%s7429_s1 + $0x3e4] sm:$0xf]  ;;  %v3387_v18 = vor.u32 %v4640_v3, %v3384_v5 }
  0x58   :  { %v4326_v28 = vld [vmem:[%s7429_s1 + $0xa40] sm:$0xf]  ;;  %v4878_v29 = vld [vmem:[%s7429_s1 + $0xa4c] sm:$0xf0]  ;;  %v4199_v33 = vor.u32 %v4846_v27, %v4198_v25  ;;  %2523 = vmatpush.bf16.msra.mxu3 %v4471_v26  ;;  %v3512_v11 = vld [vmem:[%s7429_s1 + $0x3f0] sm:$0xf0] }
  0x59   :  { %v4454_v30 = vld [vmem:[%s7429_s1 + $0xb40] sm:$0xf]  ;;  %v4910_v31 = vld [vmem:[%s7429_s1 + $0xb4c] sm:$0xf0]  ;;  %v4327_v34 = vor.u32 %v4878_v29, %v4326_v28  ;;  %2485 = vmatpush.bf16.msra.mxu0 %v4071_v32  ;;  %v4572_v19 = vld [vmem:[%s7429_s1 + $0xc4] sm:$0xf]  ;;  %v3515_v24 = vor.u32 %v4672_v10, %v3512_v11  ;;  %v5615_v29 = vpack.c.b16 %v430_v12, %v430_v12 }
  0x5a   :  { %v4054_v35 = vld [vmem:[%s7429_s1 + $0x820] sm:$0xf]  ;;  %v4810_v36 = vld [vmem:[%s7429_s1 + $0x82c] sm:$0xf0]  ;;  %v4455_v39 = vor.u32 %v4910_v31, %v4454_v30  ;;  %v3112_v22 = vld [vmem:[%s7429_s1 + $0xd0] sm:$0xf0] }
  0x5b   :  { %v4182_v37 = vld [vmem:[%s7429_s1 + $0x920] sm:$0xf]  ;;  %v4842_v40 = vld [vmem:[%s7429_s1 + $0x92c] sm:$0xf0]  ;;  %v4055_v49 = vor.u32 %v4810_v36, %v4054_v35  ;;  %2498 = vmatpush.bf16.msra.mxu1 %v4199_v33  ;;  %2511 = vmatpush.bf16.msra.mxu2 %v4327_v34  ;;  %v4604_v23 = vld [vmem:[%s7429_s1 + $0x1c4] sm:$0xf]  ;;  %v5625_v33 = vpack.c.b16 %v431_v16, %v431_v16  ;;  %v3115_v34 = vor.u32 %v4572_v19, %v3112_v22 }
  0x5c   :  { %v4310_v43 = vld [vmem:[%s7429_s1 + $0xa20] sm:$0xf]  ;;  %v4874_v45 = vld [vmem:[%s7429_s1 + $0xa2c] sm:$0xf0]  ;;  %v4183_v53 = vor.u32 %v4842_v40, %v4182_v37  ;;  %2524 = vmatpush.bf16.msra.mxu3 %v4455_v39  ;;  %v3240_v26 = vld [vmem:[%s7429_s1 + $0x1d0] sm:$0xf0] }
  0x5d   :  { %v4438_v46 = vld [vmem:[%s7429_s1 + $0xb20] sm:$0xf]  ;;  %v4906_v47 = vld [vmem:[%s7429_s1 + $0xb2c] sm:$0xf0]  ;;  %v4311_v54 = vor.u32 %v4874_v45, %v4310_v43  ;;  %2486 = vmatpush.bf16.msra.mxu0 %v4055_v49  ;;  %v4636_v27 = vld [vmem:[%s7429_s1 + $0x2c4] sm:$0xf]  ;;  %v3243_v35 = vor.u32 %v4604_v23, %v3240_v26 }
  0x5e   :  { %v4038_v48 = vld [vmem:[%s7429_s1 + $0x800] sm:$0xf]  ;;  %v4806_v50 = vld [vmem:[%s7429_s1 + $0x80c] sm:$0xf0]  ;;  %v4439_v58 = vor.u32 %v4906_v47, %v4438_v46  ;;  %v3368_v28 = vld [vmem:[%s7429_s1 + $0x2d0] sm:$0xf0] }
  0x5f   :  { %v4166_v51 = vld [vmem:[%s7429_s1 + $0x900] sm:$0xf]  ;;  %v4838_v52 = vld [vmem:[%s7429_s1 + $0x90c] sm:$0xf0]  ;;  %v4039_v1 = vor.u32 %v4806_v50, %v4038_v48  ;;  %2499 = vmatpush.bf16.msra.mxu1 %v4183_v53  ;;  %2512 = vmatpush.bf16.msra.mxu2 %v4311_v54  ;;  %v4668_v31 = vld [vmem:[%s7429_s1 + $0x3c4] sm:$0xf]  ;;  %v3371_v36 = vor.u32 %v4636_v27, %v3368_v28 }
  0x60   :  { %v4294_v55 = vld [vmem:[%s7429_s1 + $0xa00] sm:$0xf]  ;;  %v4870_v56 = vld [vmem:[%s7429_s1 + $0xa0c] sm:$0xf0]  ;;  %v4167_v8 = vor.u32 %v4838_v52, %v4166_v51  ;;  %2525 = vmatpush.bf16.msra.mxu3 %v4439_v58  ;;  %v3496_v32 = vld [vmem:[%s7429_s1 + $0x3d0] sm:$0xf0] }
  0x61   :  { %v18_v57 = vld [vmem:[%s7430_s0 + $0x20] sm:$0xff]  ;;  %v4902_v60 = vld [vmem:[%s7429_s1 + $0xb0c] sm:$0xf0]  ;;  %v4295_v9 = vor.u32 %v4870_v56, %v4294_v55  ;;  %2487 = vmatpush.bf16.msra.mxu0 %v4039_v1  ;;  %v3096_v39 = vld [vmem:[%s7429_s1 + $0xb0] sm:$0xf0]  ;;  %v3499_v43 = vor.u32 %v4668_v31, %v3496_v32 }
  0x62   :  { %v4422_v59 = vld [vmem:[%s7429_s1 + $0xb00] sm:$0xf]  ;;  %v428_v7 = vunpack.c.l.b16 %v18_v57  ;;  %v429_v13 = vunpack.c.h.b16 %v18_v57  ;;  %v4568_v37 = vld [vmem:[%s7429_s1 + $0xa4] sm:$0xf]  ;;  %v3224_v45 = vld [vmem:[%s7429_s1 + $0x1b0] sm:$0xf0] }
  0x63   :  { %v4423_v14 = vor.u32 %v4902_v60, %v4422_v59  ;;  %2500 = vmatpush.bf16.msra.mxu1 %v4167_v8  ;;  %2513 = vmatpush.bf16.msra.mxu2 %v4295_v9  ;;  %v4600_v40 = vld [vmem:[%s7429_s1 + $0x1a4] sm:$0xf]  ;;  %v3352_v47 = vld [vmem:[%s7429_s1 + $0x2b0] sm:$0xf0]  ;;  %v3099_v50 = vor.u32 %v4568_v37, %v3096_v39 }
  0x64   :  { %v5604_v25 = vpack.c.b16 %v428_v7, %v428_v7  ;;  %v5617_v30 = vpack.c.b16 %v429_v13, %v429_v13  ;;  %v4632_v46 = vld [vmem:[%s7429_s1 + $0x2a4] sm:$0xf]  ;;  %v3480_v49 = vld [vmem:[%s7429_s1 + $0x3b0] sm:$0xf0]  ;;  %v3227_v51 = vor.u32 %v4600_v40, %v3224_v45 }
  0x65   :  { %2526 = vmatpush.bf16.msra.mxu3 %v4423_v14  ;;  %2532 = vmatpush.bf16.msrb.mxu0 %v3131_v15  ;;  %v4664_v48 = vld [vmem:[%s7429_s1 + $0x3a4] sm:$0xf]  ;;  %v3355_v52 = vor.u32 %v4632_v46, %v3352_v47  ;;  %v3080_v54 = vld [vmem:[%s7429_s1 + $0x90] sm:$0xf0] }
  0x66   :  { %2488 = vmatmul.bf16.vlgmr.msra.gmra.mxu0 %v5604_v25  ;;  %2514 = vmatmul.bf16.vlgmr.msra.gmra.mxu2 %v5615_v29  ;;  %v4564_v53 = vld [vmem:[%s7429_s1 + $0x84] sm:$0xf]  ;;  %v3483_v56 = vor.u32 %v4664_v48, %v3480_v49  ;;  %v3208_v57 = vld [vmem:[%s7429_s1 + $0x190] sm:$0xf0] }
  0x67   :  { %2545 = vmatpush.bf16.msrb.mxu1 %v3259_v17  ;;  %2558 = vmatpush.bf16.msrb.mxu2 %v3387_v18  ;;  %v4596_v55 = vld [vmem:[%s7429_s1 + $0x184] sm:$0xf]  ;;  %v3336_v59 = vld [vmem:[%s7429_s1 + $0x290] sm:$0xf0]  ;;  %v3083_v62 = vor.u32 %v4564_v53, %v3080_v54 }
  0x68   :  { %2501 = vmatmul.bf16.vlgmr.msra.gmra.mxu1 %v5617_v30  ;;  %2527 = vmatmul.bf16.vlgmr.msra.gmra.mxu3 %v5625_v33  ;;  %v4628_v58 = vld [vmem:[%s7429_s1 + $0x284] sm:$0xf]  ;;  %v3464_v61 = vld [vmem:[%s7429_s1 + $0x390] sm:$0xf0]  ;;  %v3211_v63 = vor.u32 %v4596_v55, %v3208_v57 }
  0x69   :  { %2571 = vmatpush.bf16.msrb.mxu3 %v3515_v24  ;;  %2533 = vmatpush.bf16.msrb.mxu0 %v3115_v34  ;;  %v4660_v60 = vld [vmem:[%s7429_s1 + $0x384] sm:$0xf]  ;;  %v3339_v0 = vor.u32 %v4628_v58, %v3336_v59  ;;  %v3064_v2 = vld [vmem:[%s7429_s1 + $0x70] sm:$0xf0] }
  0x6a   :  { %v4560_v1 = vld [vmem:[%s7429_s1 + $0x64] sm:$0xf]  ;;  %v3467_v5 = vor.u32 %v4660_v60, %v3464_v61  ;;  %v3192_v7 = vld [vmem:[%s7429_s1 + $0x170] sm:$0xf0] }
  0x6b   :  { %2546 = vmatpush.bf16.msrb.mxu1 %v3243_v35  ;;  %2559 = vmatpush.bf16.msrb.mxu2 %v3371_v36  ;;  %v4592_v3 = vld [vmem:[%s7429_s1 + $0x164] sm:$0xf]  ;;  %v3320_v9 = vld [vmem:[%s7429_s1 + $0x270] sm:$0xf0]  ;;  %v3067_v12 = vor.u32 %v4560_v1, %v3064_v2 }
  0x6c   :  { %v4624_v8 = vld [vmem:[%s7429_s1 + $0x264] sm:$0xf]  ;;  %v3448_v11 = vld [vmem:[%s7429_s1 + $0x370] sm:$0xf0]  ;;  %v3195_v13 = vor.u32 %v4592_v3, %v3192_v7 }
  0x6d   :  { %2572 = vmatpush.bf16.msrb.mxu3 %v3499_v43  ;;  %2534 = vmatpush.bf16.msrb.mxu0 %v3099_v50  ;;  %v4656_v10 = vld [vmem:[%s7429_s1 + $0x364] sm:$0xf]  ;;  %v3323_v14 = vor.u32 %v4624_v8, %v3320_v9  ;;  %v3048_v16 = vld [vmem:[%s7429_s1 + $0x50] sm:$0xf0] }
  0x6e   :  { %v4556_v15 = vld [vmem:[%s7429_s1 + $0x44] sm:$0xf]  ;;  %v3451_v18 = vor.u32 %v4656_v10, %v3448_v11  ;;  %v3176_v19 = vld [vmem:[%s7429_s1 + $0x150] sm:$0xf0] }
  0x6f   :  { %2547 = vmatpush.bf16.msrb.mxu1 %v3227_v51  ;;  %2560 = vmatpush.bf16.msrb.mxu2 %v3355_v52  ;;  %v4588_v17 = vld [vmem:[%s7429_s1 + $0x144] sm:$0xf]  ;;  %v3304_v23 = vld [vmem:[%s7429_s1 + $0x250] sm:$0xf0]  ;;  %v3051_v27 = vor.u32 %v4556_v15, %v3048_v16 }
  0x70   :  { %v4620_v22 = vld [vmem:[%s7429_s1 + $0x244] sm:$0xf]  ;;  %v3432_v26 = vld [vmem:[%s7429_s1 + $0x350] sm:$0xf0]  ;;  %v3179_v28 = vor.u32 %v4588_v17, %v3176_v19 }
  0x71   :  { %2573 = vmatpush.bf16.msrb.mxu3 %v3483_v56  ;;  %2535 = vmatpush.bf16.msrb.mxu0 %v3083_v62  ;;  %v4652_v24 = vld [vmem:[%s7429_s1 + $0x344] sm:$0xf]  ;;  %v3307_v31 = vor.u32 %v4620_v22, %v3304_v23  ;;  %v3032_v34 = vld [vmem:[%s7429_s1 + $0x30] sm:$0xf0] }
  0x72   :  { %v4552_v32 = vld [vmem:[%s7429_s1 + $0x24] sm:$0xf]  ;;  %v3435_v36 = vor.u32 %v4652_v24, %v3432_v26  ;;  %v3160_v37 = vld [vmem:[%s7429_s1 + $0x130] sm:$0xf0] }
  0x73   :  { %2548 = vmatpush.bf16.msrb.mxu1 %v3211_v63  ;;  %2561 = vmatpush.bf16.msrb.mxu2 %v3339_v0  ;;  %v4584_v35 = vld [vmem:[%s7429_s1 + $0x124] sm:$0xf]  ;;  %v3288_v40 = vld [vmem:[%s7429_s1 + $0x230] sm:$0xf0]  ;;  %v3035_v46 = vor.u32 %v4552_v32, %v3032_v34 }
  0x74   :  { %v4616_v39 = vld [vmem:[%s7429_s1 + $0x224] sm:$0xf]  ;;  %v3416_v45 = vld [vmem:[%s7429_s1 + $0x330] sm:$0xf0]  ;;  %v3163_v49 = vor.u32 %v4584_v35, %v3160_v37 }
  0x75   :  { %2574 = vmatpush.bf16.msrb.mxu3 %v3467_v5  ;;  %2536 = vmatpush.bf16.msrb.mxu0 %v3067_v12  ;;  %v4648_v43 = vld [vmem:[%s7429_s1 + $0x324] sm:$0xf]  ;;  %v3016_v48 = vld [vmem:[%s7429_s1 + $0x10] sm:$0xf0]  ;;  %v3291_v50 = vor.u32 %v4616_v39, %v3288_v40 }
  0x76   :  { %v4548_v47 = vld [vmem:[%s7429_s1 + $0x4] sm:$0xf]  ;;  %v3144_v52 = vld [vmem:[%s7429_s1 + $0x110] sm:$0xf0]  ;;  %v3419_v54 = vor.u32 %v4648_v43, %v3416_v45 }
  0x77   :  { %2549 = vmatpush.bf16.msrb.mxu1 %v3195_v13  ;;  %2562 = vmatpush.bf16.msrb.mxu2 %v3323_v14  ;;  %v4580_v51 = vld [vmem:[%s7429_s1 + $0x104] sm:$0xf]  ;;  %v3272_v55 = vld [vmem:[%s7429_s1 + $0x210] sm:$0xf0]  ;;  %v3019_v61 = vor.u32 %v4548_v47, %v3016_v48 }
  0x78   :  { %v4612_v53 = vld [vmem:[%s7429_s1 + $0x204] sm:$0xf]  ;;  %v3400_v57 = vld [vmem:[%s7429_s1 + $0x310] sm:$0xf0]  ;;  %v3147_v1 = vor.u32 %v4580_v51, %v3144_v52 }
  0x79   :  { %2575 = vmatpush.bf16.msrb.mxu3 %v3451_v18  ;;  %2537 = vmatpush.bf16.msrb.mxu0 %v3051_v27  ;;  %v4644_v56 = vld [vmem:[%s7429_s1 + $0x304] sm:$0xf]  ;;  %v3640_v59 = vld [vmem:[%s7429_s1 + $0x4f0] sm:$0xf0]  ;;  %v3275_v2 = vor.u32 %v4612_v53, %v3272_v55 }
  0x7a   :  { %v4704_v58 = vld [vmem:[%s7429_s1 + $0x4e4] sm:$0xf]  ;;  %v3768_v62 = vld [vmem:[%s7429_s1 + $0x5f0] sm:$0xf0]  ;;  %v3403_v7 = vor.u32 %v4644_v56, %v3400_v57 }
  0x7b   :  { %2550 = vmatpush.bf16.msrb.mxu1 %v3179_v28  ;;  %2563 = vmatpush.bf16.msrb.mxu2 %v3307_v31  ;;  %v4736_v60 = vld [vmem:[%s7429_s1 + $0x5e4] sm:$0xf]  ;;  %v3896_v0 = vld [vmem:[%s7429_s1 + $0x6f0] sm:$0xf0]  ;;  %v3643_v8 = vor.u32 %v4704_v58, %v3640_v59 }
  0x7c   :  { %v4768_v63 = vld [vmem:[%s7429_s1 + $0x6e4] sm:$0xf]  ;;  %v4024_v5 = vld [vmem:[%s7429_s1 + $0x7f0] sm:$0xf0]  ;;  %v3771_v9 = vor.u32 %v4736_v60, %v3768_v62 }
  0x7d   :  { %2576 = vmatpush.bf16.msrb.mxu3 %v3435_v36  ;;  %2538 = vmatpush.bf16.msrb.mxu0 %v3035_v46  ;;  %v4800_v3 = vld [vmem:[%s7429_s1 + $0x7e4] sm:$0xf]  ;;  %v3899_v10 = vor.u32 %v4768_v63, %v3896_v0  ;;  %v3624_v12 = vld [vmem:[%s7429_s1 + $0x4d0] sm:$0xf0] }
  0x7e   :  { %v4700_v11 = vld [vmem:[%s7429_s1 + $0x4c4] sm:$0xf]  ;;  %v4027_v14 = vor.u32 %v4800_v3, %v4024_v5  ;;  %v3752_v15 = vld [vmem:[%s7429_s1 + $0x5d0] sm:$0xf0] }
  0x7f   :  { %2551 = vmatpush.bf16.msrb.mxu1 %v3163_v49  ;;  %2564 = vmatpush.bf16.msrb.mxu2 %v3291_v50  ;;  %v4732_v13 = vld [vmem:[%s7429_s1 + $0x5c4] sm:$0xf]  ;;  %v3880_v17 = vld [vmem:[%s7429_s1 + $0x6d0] sm:$0xf0]  ;;  %v3627_v22 = vor.u32 %v4700_v11, %v3624_v12 }
  0x80   :  { %v4764_v16 = vld [vmem:[%s7429_s1 + $0x6c4] sm:$0xf]  ;;  %v4008_v19 = vld [vmem:[%s7429_s1 + $0x7d0] sm:$0xf0]  ;;  %v3755_v23 = vor.u32 %v4732_v13, %v3752_v15 }
  0x81   :  { %2577 = vmatpush.bf16.msrb.mxu3 %v3419_v54  ;;  %2539 = vmatpush.bf16.msrb.mxu0 %v3019_v61  ;;  %v4796_v18 = vld [vmem:[%s7429_s1 + $0x7c4] sm:$0xf]  ;;  %v3883_v24 = vor.u32 %v4764_v16, %v3880_v17  ;;  %v3608_v27 = vld [vmem:[%s7429_s1 + $0x4b0] sm:$0xf0] }
  0x82   :  { %v4696_v26 = vld [vmem:[%s7429_s1 + $0x4a4] sm:$0xf]  ;;  %v4011_v31 = vor.u32 %v4796_v18, %v4008_v19  ;;  %v3736_v32 = vld [vmem:[%s7429_s1 + $0x5b0] sm:$0xf0] }
  0x83   :  { %2552 = vmatpush.bf16.msrb.mxu1 %v3147_v1  ;;  %2565 = vmatpush.bf16.msrb.mxu2 %v3275_v2  ;;  %v4728_v28 = vld [vmem:[%s7429_s1 + $0x5a4] sm:$0xf]  ;;  %v3864_v35 = vld [vmem:[%s7429_s1 + $0x6b0] sm:$0xf0]  ;;  %v3611_v39 = vor.u32 %v4696_v26, %v3608_v27 }
  0x84   :  { %v4760_v34 = vld [vmem:[%s7429_s1 + $0x6a4] sm:$0xf]  ;;  %v3992_v37 = vld [vmem:[%s7429_s1 + $0x7b0] sm:$0xf0]  ;;  %2540 = vmatmul.bf16.vlgmr.msrb.gmra.mxu0 %v5252_v20  ;;  %v3739_v40 = vor.u32 %v4728_v28, %v3736_v32 }
  0x85   :  { %2578 = vmatpush.bf16.msrb.mxu3 %v3403_v7  ;;  %2584 = vmatpush.bf16.msra.mxu0 %v3643_v8  ;;  %v4792_v36 = vld [vmem:[%s7429_s1 + $0x7a4] sm:$0xf]  ;;  %v3867_v43 = vor.u32 %v4760_v34, %v3864_v35  ;;  %v3592_v46 = vld [vmem:[%s7429_s1 + $0x490] sm:$0xf0] }
  0x86   :  { %2566 = vmatmul.bf16.vlgmr.msrb.gmra.mxu2 %v5220_v4  ;;  %2553 = vmatmul.bf16.vlgmr.msrb.gmra.mxu1 %v5255_v21  ;;  %v4692_v45 = vld [vmem:[%s7429_s1 + $0x484] sm:$0xf]  ;;  %v3995_v48 = vor.u32 %v4792_v36, %v3992_v37  ;;  %v3720_v49 = vld [vmem:[%s7429_s1 + $0x590] sm:$0xf0] }
  0x87   :  { %2597 = vmatpush.bf16.msra.mxu1 %v3771_v9  ;;  %2610 = vmatpush.bf16.msra.mxu2 %v3899_v10  ;;  %v4724_v47 = vld [vmem:[%s7429_s1 + $0x584] sm:$0xf]  ;;  %v3848_v51 = vld [vmem:[%s7429_s1 + $0x690] sm:$0xf0]  ;;  %v3595_v54 = vor.u32 %v4692_v45, %v3592_v46 }
  0x88   :  { %2579 = vmatmul.bf16.vlgmr.msrb.gmra.mxu3 %v5225_v6  ;;  %v4756_v50 = vld [vmem:[%s7429_s1 + $0x684] sm:$0xf]  ;;  %v3976_v53 = vld [vmem:[%s7429_s1 + $0x790] sm:$0xf0]  ;;  %v3723_v55 = vor.u32 %v4724_v47, %v3720_v49 }
  0x89   :  { %2623 = vmatpush.bf16.msra.mxu3 %v4027_v14  ;;  %2585 = vmatpush.bf16.msra.mxu0 %v3627_v22  ;;  %v4788_v52 = vld [vmem:[%s7429_s1 + $0x784] sm:$0xf]  ;;  %v3851_v56 = vor.u32 %v4756_v50, %v3848_v51  ;;  %v3576_v58 = vld [vmem:[%s7429_s1 + $0x470] sm:$0xf0] }
  0x8a   :  { %v4688_v57 = vld [vmem:[%s7429_s1 + $0x464] sm:$0xf]  ;;  %v3979_v60 = vor.u32 %v4788_v52, %v3976_v53  ;;  %v3704_v61 = vld [vmem:[%s7429_s1 + $0x570] sm:$0xf0] }
  0x8b   :  { %2598 = vmatpush.bf16.msra.mxu1 %v3755_v23  ;;  %2611 = vmatpush.bf16.msra.mxu2 %v3883_v24  ;;  %v4720_v59 = vld [vmem:[%s7429_s1 + $0x564] sm:$0xf]  ;;  %v3832_v63 = vld [vmem:[%s7429_s1 + $0x670] sm:$0xf0]  ;;  %v3579_v2 = vor.u32 %v4688_v57, %v3576_v58 }
  0x8c   :  { %v4752_v62 = vld [vmem:[%s7429_s1 + $0x664] sm:$0xf]  ;;  %v3960_v1 = vld [vmem:[%s7429_s1 + $0x770] sm:$0xf0]  ;;  %v3707_v3 = vor.u32 %v4720_v59, %v3704_v61 }
  0x8d   :  { %2624 = vmatpush.bf16.msra.mxu3 %v4011_v31  ;;  %2586 = vmatpush.bf16.msra.mxu0 %v3611_v39  ;;  %v4784_v0 = vld [vmem:[%s7429_s1 + $0x764] sm:$0xf]  ;;  %v3835_v5 = vor.u32 %v4752_v62, %v3832_v63  ;;  %v3560_v8 = vld [vmem:[%s7429_s1 + $0x450] sm:$0xf0] }
  0x8e   :  { %v4684_v7 = vld [vmem:[%s7429_s1 + $0x444] sm:$0xf]  ;;  %v3963_v10 = vor.u32 %v4784_v0, %v3960_v1  ;;  %v3688_v11 = vld [vmem:[%s7429_s1 + $0x550] sm:$0xf0] }
  0x8f   :  { %2599 = vmatpush.bf16.msra.mxu1 %v3739_v40  ;;  %2612 = vmatpush.bf16.msra.mxu2 %v3867_v43  ;;  %v4716_v9 = vld [vmem:[%s7429_s1 + $0x544] sm:$0xf]  ;;  %v3816_v13 = vld [vmem:[%s7429_s1 + $0x650] sm:$0xf0]  ;;  %v3563_v16 = vor.u32 %v4684_v7, %v3560_v8 }
  0x90   :  { %v4748_v12 = vld [vmem:[%s7429_s1 + $0x644] sm:$0xf]  ;;  %v3944_v15 = vld [vmem:[%s7429_s1 + $0x750] sm:$0xf0]  ;;  %v3691_v17 = vor.u32 %v4716_v9, %v3688_v11 }
  0x91   :  { %2625 = vmatpush.bf16.msra.mxu3 %v3995_v48  ;;  %2587 = vmatpush.bf16.msra.mxu0 %v3595_v54  ;;  %v4780_v14 = vld [vmem:[%s7429_s1 + $0x744] sm:$0xf]  ;;  %v3819_v18 = vor.u32 %v4748_v12, %v3816_v13  ;;  %v3544_v22 = vld [vmem:[%s7429_s1 + $0x430] sm:$0xf0] }
  0x92   :  { %v4680_v19 = vld [vmem:[%s7429_s1 + $0x424] sm:$0xf]  ;;  %v3947_v24 = vor.u32 %v4780_v14, %v3944_v15  ;;  %v3672_v26 = vld [vmem:[%s7429_s1 + $0x530] sm:$0xf0] }
  0x93   :  { %2600 = vmatpush.bf16.msra.mxu1 %v3723_v55  ;;  %2613 = vmatpush.bf16.msra.mxu2 %v3851_v56  ;;  %v4712_v23 = vld [vmem:[%s7429_s1 + $0x524] sm:$0xf]  ;;  %v3800_v28 = vld [vmem:[%s7429_s1 + $0x630] sm:$0xf0]  ;;  %v3547_v34 = vor.u32 %v4680_v19, %v3544_v22 }
  0x94   :  { %v4744_v27 = vld [vmem:[%s7429_s1 + $0x624] sm:$0xf]  ;;  %v3928_v32 = vld [vmem:[%s7429_s1 + $0x730] sm:$0xf0]  ;;  %v3675_v37 = vor.u32 %v4712_v23, %v3672_v26 }
  0x95   :  { %2626 = vmatpush.bf16.msra.mxu3 %v3979_v60  ;;  %2588 = vmatpush.bf16.msra.mxu0 %v3579_v2  ;;  %v4776_v31 = vld [vmem:[%s7429_s1 + $0x724] sm:$0xf]  ;;  %v3528_v36 = vld [vmem:[%s7429_s1 + $0x410] sm:$0xf0]  ;;  %v3803_v39 = vor.u32 %v4744_v27, %v3800_v28 }
  0x96   :  { %v4676_v35 = vld [vmem:[%s7429_s1 + $0x404] sm:$0xf]  ;;  %v3656_v43 = vld [vmem:[%s7429_s1 + $0x510] sm:$0xf0]  ;;  %v3931_v46 = vor.u32 %v4776_v31, %v3928_v32 }
  0x97   :  { %2601 = vmatpush.bf16.msra.mxu1 %v3707_v3  ;;  %2614 = vmatpush.bf16.msra.mxu2 %v3835_v5  ;;  %v4708_v40 = vld [vmem:[%s7429_s1 + $0x504] sm:$0xf]  ;;  %v3784_v47 = vld [vmem:[%s7429_s1 + $0x610] sm:$0xf0]  ;;  %v3531_v53 = vor.u32 %v4676_v35, %v3528_v36 }
  0x98   :  { %v4740_v45 = vld [vmem:[%s7429_s1 + $0x604] sm:$0xf]  ;;  %v3912_v49 = vld [vmem:[%s7429_s1 + $0x710] sm:$0xf0]  ;;  %v3659_v57 = vor.u32 %v4708_v40, %v3656_v43 }
  0x99   :  { %2627 = vmatpush.bf16.msra.mxu3 %v3963_v10  ;;  %2589 = vmatpush.bf16.msra.mxu0 %v3563_v16  ;;  %v4772_v48 = vld [vmem:[%s7429_s1 + $0x704] sm:$0xf]  ;;  %v4152_v51 = vld [vmem:[%s7429_s1 + $0x8f0] sm:$0xf0]  ;;  %v3787_v58 = vor.u32 %v4740_v45, %v3784_v47 }
  0x9a   :  { %v4832_v50 = vld [vmem:[%s7429_s1 + $0x8e4] sm:$0xf]  ;;  %v4280_v54 = vld [vmem:[%s7429_s1 + $0x9f0] sm:$0xf0]  ;;  %v3915_v61 = vor.u32 %v4772_v48, %v3912_v49 }
  0x9b   :  { %2602 = vmatpush.bf16.msra.mxu1 %v3691_v17  ;;  %2615 = vmatpush.bf16.msra.mxu2 %v3819_v18  ;;  %v4864_v52 = vld [vmem:[%s7429_s1 + $0x9e4] sm:$0xf]  ;;  %v4408_v56 = vld [vmem:[%s7429_s1 + $0xaf0] sm:$0xf0]  ;;  %v4155_v62 = vor.u32 %v4832_v50, %v4152_v51 }
  0x9c   :  { %v4896_v55 = vld [vmem:[%s7429_s1 + $0xae4] sm:$0xf]  ;;  %v4536_v60 = vld [vmem:[%s7429_s1 + $0xbf0] sm:$0xf0]  ;;  %v4283_v63 = vor.u32 %v4864_v52, %v4280_v54 }
  0x9d   :  { %2628 = vmatpush.bf16.msra.mxu3 %v3947_v24  ;;  %2590 = vmatpush.bf16.msra.mxu0 %v3547_v34  ;;  %v4928_v59 = vld [vmem:[%s7429_s1 + $0xbe4] sm:$0xf]  ;;  %v4411_v0 = vor.u32 %v4896_v55, %v4408_v56  ;;  %v4136_v2 = vld [vmem:[%s7429_s1 + $0x8d0] sm:$0xf0] }
  0x9e   :  { %v4828_v1 = vld [vmem:[%s7429_s1 + $0x8c4] sm:$0xf]  ;;  %v4539_v5 = vor.u32 %v4928_v59, %v4536_v60  ;;  %v4264_v7 = vld [vmem:[%s7429_s1 + $0x9d0] sm:$0xf0] }
  0x9f   :  { %2603 = vmatpush.bf16.msra.mxu1 %v3675_v37  ;;  %2616 = vmatpush.bf16.msra.mxu2 %v3803_v39  ;;  %v4860_v3 = vld [vmem:[%s7429_s1 + $0x9c4] sm:$0xf]  ;;  %v4392_v9 = vld [vmem:[%s7429_s1 + $0xad0] sm:$0xf0]  ;;  %v4139_v12 = vor.u32 %v4828_v1, %v4136_v2 }
  0xa0   :  { %v4892_v8 = vld [vmem:[%s7429_s1 + $0xac4] sm:$0xf]  ;;  %v4520_v11 = vld [vmem:[%s7429_s1 + $0xbd0] sm:$0xf0]  ;;  %v4267_v13 = vor.u32 %v4860_v3, %v4264_v7 }
  0xa1   :  { %2629 = vmatpush.bf16.msra.mxu3 %v3931_v46  ;;  %2591 = vmatpush.bf16.msra.mxu0 %v3531_v53  ;;  %v4924_v10 = vld [vmem:[%s7429_s1 + $0xbc4] sm:$0xf]  ;;  %v4395_v14 = vor.u32 %v4892_v8, %v4392_v9  ;;  %v4120_v16 = vld [vmem:[%s7429_s1 + $0x8b0] sm:$0xf0] }
  0xa2   :  { %v4824_v15 = vld [vmem:[%s7429_s1 + $0x8a4] sm:$0xf]  ;;  %v4523_v18 = vor.u32 %v4924_v10, %v4520_v11  ;;  %v4248_v19 = vld [vmem:[%s7429_s1 + $0x9b0] sm:$0xf0] }
  0xa3   :  { %2604 = vmatpush.bf16.msra.mxu1 %v3659_v57  ;;  %2617 = vmatpush.bf16.msra.mxu2 %v3787_v58  ;;  %v4856_v17 = vld [vmem:[%s7429_s1 + $0x9a4] sm:$0xf]  ;;  %v4376_v23 = vld [vmem:[%s7429_s1 + $0xab0] sm:$0xf0]  ;;  %v4123_v27 = vor.u32 %v4824_v15, %v4120_v16 }
  0xa4   :  { %v4888_v22 = vld [vmem:[%s7429_s1 + $0xaa4] sm:$0xf]  ;;  %2592 = vmatmul.bf16.vlgmr.msra.gmra.mxu0 %v5411_v41  ;;  %v4504_v26 = vld [vmem:[%s7429_s1 + $0xbb0] sm:$0xf0]  ;;  %v4251_v28 = vor.u32 %v4856_v17, %v4248_v19 }
  0xa5   :  { %2630 = vmatpush.bf16.msra.mxu3 %v3915_v61  ;;  %2636 = vmatpush.bf16.msrb.mxu0 %v4155_v62  ;;  %v4920_v24 = vld [vmem:[%s7429_s1 + $0xba4] sm:$0xf]  ;;  %v4379_v31 = vor.u32 %v4888_v22, %v4376_v23  ;;  %v4104_v34 = vld [vmem:[%s7429_s1 + $0x890] sm:$0xf0] }
  0xa6   :  { %2618 = vmatmul.bf16.vlgmr.msra.gmra.mxu2 %v5403_v38  ;;  %2605 = vmatmul.bf16.vlgmr.msra.gmra.mxu1 %v5415_v44  ;;  %v4820_v32 = vld [vmem:[%s7429_s1 + $0x884] sm:$0xf]  ;;  %v4507_v36 = vor.u32 %v4920_v24, %v4504_v26  ;;  %v4232_v37 = vld [vmem:[%s7429_s1 + $0x990] sm:$0xf0] }
  0xa7   :  { %2649 = vmatpush.bf16.msrb.mxu1 %v4283_v63  ;;  %2662 = vmatpush.bf16.msrb.mxu2 %v4411_v0  ;;  %v4852_v35 = vld [vmem:[%s7429_s1 + $0x984] sm:$0xf]  ;;  %v4360_v40 = vld [vmem:[%s7429_s1 + $0xa90] sm:$0xf0]  ;;  %v4107_v46 = vor.u32 %v4820_v32, %v4104_v34 }
  0xa8   :  { %2631 = vmatmul.bf16.vlgmr.msra.gmra.mxu3 %v5413_v42  ;;  %v4884_v39 = vld [vmem:[%s7429_s1 + $0xa84] sm:$0xf]  ;;  %v4488_v45 = vld [vmem:[%s7429_s1 + $0xb90] sm:$0xf0]  ;;  %v4235_v47 = vor.u32 %v4852_v35, %v4232_v37  ;;  %v6132_v16 = vpop.f32.mrf.mxu2 }
  0xa9   :  { %2675 = vmatpush.bf16.msrb.mxu3 %v4539_v5  ;;  %2637 = vmatpush.bf16.msrb.mxu0 %v4139_v12  ;;  %v4916_v43 = vld [vmem:[%s7429_s1 + $0xb84] sm:$0xf]  ;;  %v4363_v48 = vor.u32 %v4884_v39, %v4360_v40  ;;  %v4088_v50 = vld [vmem:[%s7429_s1 + $0x870] sm:$0xf0]  ;;  %v6143_v23 = vpop.f32.mrf.mxu3 }
  0xaa   :  { %v4816_v49 = vld [vmem:[%s7429_s1 + $0x864] sm:$0xf]  ;;  %v4491_v52 = vor.u32 %v4916_v43, %v4488_v45  ;;  %v4216_v53 = vld [vmem:[%s7429_s1 + $0x970] sm:$0xf0] }
  0xab   :  { %2650 = vmatpush.bf16.msrb.mxu1 %v4267_v13  ;;  %2663 = vmatpush.bf16.msrb.mxu2 %v4395_v14  ;;  %v4848_v51 = vld [vmem:[%s7429_s1 + $0x964] sm:$0xf]  ;;  %v4344_v55 = vld [vmem:[%s7429_s1 + $0xa70] sm:$0xf0]  ;;  %v4091_v58 = vor.u32 %v4816_v49, %v4088_v50 }
  0xac   :  { %v4880_v54 = vld [vmem:[%s7429_s1 + $0xa64] sm:$0xf]  ;;  %v4472_v57 = vld [vmem:[%s7429_s1 + $0xb70] sm:$0xf0]  ;;  %v4219_v59 = vor.u32 %v4848_v51, %v4216_v53  ;;  %v4611_v51 = vld [vmem:[%s7429_s1 + $0x1f4] sm:$0xf0] }
  0xad   :  { %2676 = vmatpush.bf16.msrb.mxu3 %v4523_v18  ;;  %2638 = vmatpush.bf16.msrb.mxu0 %v4123_v27  ;;  %v4912_v56 = vld [vmem:[%s7429_s1 + $0xb64] sm:$0xf]  ;;  %v4347_v60 = vor.u32 %v4880_v54, %v4344_v55  ;;  %v4072_v62 = vld [vmem:[%s7429_s1 + $0x850] sm:$0xf0]  ;;  %v4643_v53 = vld [vmem:[%s7429_s1 + $0x2f4] sm:$0xf0] }
  0xae   :  { %v4812_v61 = vld [vmem:[%s7429_s1 + $0x844] sm:$0xf]  ;;  %v4475_v0 = vor.u32 %v4912_v56, %v4472_v57  ;;  %v4200_v1 = vld [vmem:[%s7429_s1 + $0x950] sm:$0xf0]  ;;  %v3518_v57 = vld [vmem:[%s7429_s1 + $0x3e8] sm:$0xf] }
  0xaf   :  { %2651 = vmatpush.bf16.msrb.mxu1 %v4251_v28  ;;  %2664 = vmatpush.bf16.msrb.mxu2 %v4379_v31  ;;  %v4844_v63 = vld [vmem:[%s7429_s1 + $0x944] sm:$0xf]  ;;  %v4328_v3 = vld [vmem:[%s7429_s1 + $0xa50] sm:$0xf0]  ;;  %v6119_v8 = vpop.f32.mrf.mxu0  ;;  %v4075_v9 = vor.u32 %v4812_v61, %v4072_v62  ;;  %v6121_v10 = vpop.f32.mrf.mxu1 }
  0xb0   :  { %v4876_v2 = vld [vmem:[%s7429_s1 + $0xa44] sm:$0xf]  ;;  %v4456_v7 = vld [vmem:[%s7429_s1 + $0xb50] sm:$0xf0]  ;;  %v4203_v11 = vor.u32 %v4844_v63, %v4200_v1  ;;  %v3118_v1 = vld [vmem:[%s7429_s1 + $0xc8] sm:$0xf] }
  0xb1   :  { %2677 = vmatpush.bf16.msrb.mxu3 %v4507_v36  ;;  %2639 = vmatpush.bf16.msrb.mxu0 %v4107_v46  ;;  %v4908_v5 = vld [vmem:[%s7429_s1 + $0xb44] sm:$0xf]  ;;  %v4331_v12 = vor.u32 %v4876_v2, %v4328_v3  ;;  %v4056_v14 = vld [vmem:[%s7429_s1 + $0x830] sm:$0xf0]  ;;  %v3134_v46 = vld [vmem:[%s7429_s1 + $0xe8] sm:$0xf]  ;;  %v2426_v62 = vpop.f32.mrf.mxu3 }
  0xb2   :  { %v4808_v13 = vld [vmem:[%s7429_s1 + $0x824] sm:$0xf]  ;;  %v4459_v17 = vor.u32 %v4908_v5, %v4456_v7  ;;  %v4184_v18 = vld [vmem:[%s7429_s1 + $0x930] sm:$0xf0]  ;;  %v4575_v2 = vld [vmem:[%s7429_s1 + $0xd4] sm:$0xf0] }
  0xb3   :  { %2652 = vmatpush.bf16.msrb.mxu1 %v4235_v47  ;;  %2665 = vmatpush.bf16.msrb.mxu2 %v4363_v48  ;;  %v4840_v15 = vld [vmem:[%s7429_s1 + $0x924] sm:$0xf]  ;;  %v4312_v22 = vld [vmem:[%s7429_s1 + $0xa30] sm:$0xf0]  ;;  %v4059_v27 = vor.u32 %v4808_v13, %v4056_v14  ;;  %v4579_v47 = vld [vmem:[%s7429_s1 + $0xf4] sm:$0xf0] }
  0xb4   :  { %v4872_v19 = vld [vmem:[%s7429_s1 + $0xa24] sm:$0xf]  ;;  %v4440_v26 = vld [vmem:[%s7429_s1 + $0xb30] sm:$0xf0]  ;;  %v4187_v32 = vor.u32 %v4840_v15, %v4184_v18  ;;  %v3262_v48 = vld [vmem:[%s7429_s1 + $0x1e8] sm:$0xf]  ;;  %v3135_v61 = vor.u32 %v4579_v47, %v3134_v46  ;;  %v3119_v15 = vor.u32 %v4575_v2, %v3118_v1 }
  0xb5   :  { %2678 = vmatpush.bf16.msrb.mxu3 %v4491_v52  ;;  %2640 = vmatpush.bf16.msrb.mxu0 %v4091_v58  ;;  %v4904_v24 = vld [vmem:[%s7429_s1 + $0xb24] sm:$0xf]  ;;  %v4040_v31 = vld [vmem:[%s7429_s1 + $0x810] sm:$0xf0]  ;;  %v4315_v34 = vor.u32 %v4872_v19, %v4312_v22  ;;  %v3390_v52 = vld [vmem:[%s7429_s1 + $0x2e8] sm:$0xf]  ;;  %v3263_v63 = vor.u32 %v4611_v51, %v3262_v48 }
  0xb6   :  { %v4804_v28 = vld [vmem:[%s7429_s1 + $0x804] sm:$0xf]  ;;  %v4168_v36 = vld [vmem:[%s7429_s1 + $0x910] sm:$0xf0]  ;;  %v4443_v39 = vor.u32 %v4904_v24, %v4440_v26  ;;  %v4675_v58 = vld [vmem:[%s7429_s1 + $0x3f4] sm:$0xf0] }
  0xb7   :  { %2653 = vmatpush.bf16.msrb.mxu1 %v4219_v59  ;;  %2666 = vmatpush.bf16.msrb.mxu2 %v4347_v60  ;;  %v4836_v35 = vld [vmem:[%s7429_s1 + $0x904] sm:$0xf]  ;;  %v4296_v40 = vld [vmem:[%s7429_s1 + $0xa10] sm:$0xf0]  ;;  %v2387_v49 = vpop.f32.mrf.mxu0  ;;  %v4043_v50 = vor.u32 %v4804_v28, %v4040_v31  ;;  %v2400_v54 = vpop.f32.mrf.mxu1  ;;  %v3246_v3 = vld [vmem:[%s7429_s1 + $0x1c8] sm:$0xf]  ;;  %v3519_v5 = vor.u32 %v4675_v58, %v3518_v57 }
  0xb8   :  { %v4868_v37 = vld [vmem:[%s7429_s1 + $0xa04] sm:$0xf]  ;;  %v4424_v45 = vld [vmem:[%s7429_s1 + $0xb10] sm:$0xf0]  ;;  %v4171_v55 = vor.u32 %v4836_v35, %v4168_v36  ;;  %v2413_v59 = vpop.f32.mrf.mxu2  ;;  %v4607_v7 = vld [vmem:[%s7429_s1 + $0x1d4] sm:$0xf0] }
  0xb9   :  { %2679 = vmatpush.bf16.msrb.mxu3 %v4475_v0  ;;  %2641 = vmatpush.bf16.msrb.mxu0 %v4075_v9  ;;  %v4900_v43 = vld [vmem:[%s7429_s1 + $0xb04] sm:$0xf]  ;;  %v4299_v56 = vor.u32 %v4868_v37, %v4296_v40  ;;  %v3391_v0 = vor.u32 %v4643_v53, %v3390_v52  ;;  %v3374_v9 = vld [vmem:[%s7429_s1 + $0x2c8] sm:$0xf]  ;;  %v4671_v13 = vld [vmem:[%s7429_s1 + $0x3d4] sm:$0xf0] }
  0xba   :  { %v4427_v60 = vor.u32 %v4900_v43, %v4424_v45  ;;  %v6226_v14 = vld [vmem:[%s7431_s2] sm:$0xf]  ;;  %v3102_v19 = vld [vmem:[%s7429_s1 + $0xa8] sm:$0xf]  ;;  %v4571_v22 = vld [vmem:[%s7429_s1 + $0xb4] sm:$0xf0] }
  0xbb   :  { %2654 = vmatpush.bf16.msrb.mxu1 %v4203_v11  ;;  %2667 = vmatpush.bf16.msrb.mxu2 %v4331_v12  ;;  %v4639_v11 = vld [vmem:[%s7429_s1 + $0x2d4] sm:$0xf0]  ;;  %v3502_v12 = vld [vmem:[%s7429_s1 + $0x3c8] sm:$0xf]  ;;  %v406_v35 = vperm.slane %v6226_v14, 0  ;;  %v3103_v36 = vor.u32 %v4571_v22, %v3102_v19 }
  0xbc   :  { %v3375_v18 = vor.u32 %v4639_v11, %v3374_v9  ;;  %v3230_v24 = vld [vmem:[%s7429_s1 + $0x1a8] sm:$0xf]  ;;  %v3503_v26 = vor.u32 %v4671_v13, %v3502_v12  ;;  %v4635_v31 = vld [vmem:[%s7429_s1 + $0x2b4] sm:$0xf0] }
  0xbd   :  { %2680 = vmatpush.bf16.msrb.mxu3 %v4459_v17  ;;  %2642 = vmatpush.bf16.msrb.mxu0 %v4059_v27  ;;  %v3247_v17 = vor.u32 %v4607_v7, %v3246_v3  ;;  %v4603_v27 = vld [vmem:[%s7429_s1 + $0x1b4] sm:$0xf0]  ;;  %v3358_v28 = vld [vmem:[%s7429_s1 + $0x2a8] sm:$0xf]  ;;  %v2386_v54 = vadd.f32 %v6119_v8, %v406_v35 }
  0xbe   :  { %v3231_v37 = vor.u32 %v4603_v27, %v3230_v24  ;;  %v3086_v40 = vld [vmem:[%s7429_s1 + $0x88] sm:$0xf]  ;;  %v4567_v43 = vld [vmem:[%s7429_s1 + $0x94] sm:$0xf0] }
  0xbf   :  { %2655 = vmatpush.bf16.msrb.mxu1 %v4187_v32  ;;  %2668 = vmatpush.bf16.msrb.mxu2 %v4315_v34  ;;  %v3486_v32 = vld [vmem:[%s7429_s1 + $0x3a8] sm:$0xf]  ;;  %v4667_v34 = vld [vmem:[%s7429_s1 + $0x3b4] sm:$0xf0]  ;;  %v3087_v52 = vor.u32 %v4567_v43, %v3086_v40  ;;  %v2399_v3 = vadd.f32 %v6121_v10, %v2386_v54 }
  0xc0   :  { %v3214_v45 = vld [vmem:[%s7429_s1 + $0x188] sm:$0xf]  ;;  %v3487_v46 = vor.u32 %v4667_v34, %v3486_v32  ;;  %v4599_v47 = vld [vmem:[%s7429_s1 + $0x194] sm:$0xf0] }
  0xc1   :  { %2681 = vmatpush.bf16.msrb.mxu3 %v4443_v39  ;;  %2643 = vmatpush.bf16.msrb.mxu0 %v4043_v50  ;;  %v3359_v39 = vor.u32 %v4635_v31, %v3358_v28  ;;  %v3342_v48 = vld [vmem:[%s7429_s1 + $0x288] sm:$0xf]  ;;  %v4631_v49 = vld [vmem:[%s7429_s1 + $0x294] sm:$0xf0]  ;;  %v2412_v28 = vadd.f32 %v6132_v16, %v2399_v3 }
  0xc2   :  { %v3470_v50 = vld [vmem:[%s7429_s1 + $0x388] sm:$0xf]  ;;  %v4663_v51 = vld [vmem:[%s7429_s1 + $0x394] sm:$0xf0] }
  0xc3   :  { %2656 = vmatpush.bf16.msrb.mxu1 %v4171_v55  ;;  %2669 = vmatpush.bf16.msrb.mxu2 %v4299_v56  ;;  %v6281_v53 = vpop.f32.mrf.mxu0  ;;  %v3215_v55 = vor.u32 %v4599_v47, %v3214_v45  ;;  %v3343_v56 = vor.u32 %v4631_v49, %v3342_v48  ;;  %v3070_v57 = vld [vmem:[%s7429_s1 + $0x68] sm:$0xf]  ;;  %v4563_v58 = vld [vmem:[%s7429_s1 + $0x74] sm:$0xf0]  ;;  %v3471_v8 = vor.u32 %v4663_v51, %v3470_v50 }
  0xc4   :  { %2644 = vmatmul.bf16.vlgmr.msrb.gmra.mxu0 %v5604_v25  ;;  %v3198_v59 = vld [vmem:[%s7429_s1 + $0x168] sm:$0xf]  ;;  %v4659_v1 = vld [vmem:[%s7429_s1 + $0x374] sm:$0xf0]  ;;  %v3071_v2 = vor.u32 %v4563_v58, %v3070_v57  ;;  %v2425_v50 = vadd.f32 %v6143_v23, %v2412_v28 }
  0xc5   :  { %2682 = vmatpush.bf16.msrb.mxu3 %v4427_v60  ;;  %2688 = vmatpush.bf16.msra.mxu0 %v3135_v61  ;;  %v6293_v60 = vpop.f32.mrf.mxu1  ;;  %v4595_v61 = vld [vmem:[%s7429_s1 + $0x174] sm:$0xf0]  ;;  %v3326_v62 = vld [vmem:[%s7429_s1 + $0x268] sm:$0xf] }
  0xc6   :  { %2670 = vmatmul.bf16.vlgmr.msrb.gmra.mxu2 %v5615_v29  ;;  %2657 = vmatmul.bf16.vlgmr.msrb.gmra.mxu1 %v5617_v30  ;;  %v3054_v9 = vld [vmem:[%s7429_s1 + $0x48] sm:$0xf]  ;;  %v4559_v11 = vld [vmem:[%s7429_s1 + $0x54] sm:$0xf0] }
  0xc7   :  { %2701 = vmatpush.bf16.msra.mxu1 %v3263_v63  ;;  %2714 = vmatpush.bf16.msra.mxu2 %v3391_v0  ;;  %v4627_v63 = vld [vmem:[%s7429_s1 + $0x274] sm:$0xf0]  ;;  %v3454_v0 = vld [vmem:[%s7429_s1 + $0x368] sm:$0xf] }
  0xc8   :  { %2683 = vmatmul.bf16.vlgmr.msrb.gmra.mxu3 %v5625_v33  ;;  %v3327_v7 = vor.u32 %v4627_v63, %v3326_v62  ;;  %v3182_v12 = vld [vmem:[%s7429_s1 + $0x148] sm:$0xf]  ;;  %v3455_v10 = vor.u32 %v4659_v1, %v3454_v0  ;;  %v4655_v24 = vld [vmem:[%s7429_s1 + $0x354] sm:$0xf0] }
  0xc9   :  { %2727 = vmatpush.bf16.msra.mxu3 %v3519_v5  ;;  %2689 = vmatpush.bf16.msra.mxu0 %v3119_v15  ;;  %v3199_v5 = vor.u32 %v4595_v61, %v3198_v59  ;;  %v6320_v13 = vpop.f32.mrf.mxu2  ;;  %v4591_v15 = vld [vmem:[%s7429_s1 + $0x154] sm:$0xf0]  ;;  %v3438_v22 = vld [vmem:[%s7429_s1 + $0x348] sm:$0xf] }
  0xca   :  { %v3183_v31 = vor.u32 %v4591_v15, %v3182_v12  ;;  %v3038_v34 = vld [vmem:[%s7429_s1 + $0x28] sm:$0xf]  ;;  %v4555_v35 = vld [vmem:[%s7429_s1 + $0x34] sm:$0xf0] }
  0xcb   :  { %2702 = vmatpush.bf16.msra.mxu1 %v3247_v17  ;;  %2715 = vmatpush.bf16.msra.mxu2 %v3375_v18  ;;  %v3310_v17 = vld [vmem:[%s7429_s1 + $0x248] sm:$0xf]  ;;  %v4623_v18 = vld [vmem:[%s7429_s1 + $0x254] sm:$0xf0]  ;;  %v2439_v27 = vpop.f32.mrf.mxu0  ;;  %v3039_v47 = vor.u32 %v4555_v35, %v3038_v34 }
  0xcc   :  { %v6331_v19 = vpop.f32.mrf.mxu3  ;;  %v3311_v32 = vor.u32 %v4623_v18, %v3310_v17  ;;  %v4587_v16 = vld [vmem:[%s7429_s1 + $0x134] sm:$0xf0]  ;;  %v3294_v40 = vld [vmem:[%s7429_s1 + $0x228] sm:$0xf] }
  0xcd   :  { %2728 = vmatpush.bf16.msra.mxu3 %v3503_v26  ;;  %2690 = vmatpush.bf16.msra.mxu0 %v3103_v36  ;;  %v3055_v26 = vor.u32 %v4559_v11, %v3054_v9  ;;  %v3166_v36 = vld [vmem:[%s7429_s1 + $0x128] sm:$0xf]  ;;  %v4619_v43 = vld [vmem:[%s7429_s1 + $0x234] sm:$0xf0] }
  0xce   :  { %v3422_v45 = vld [vmem:[%s7429_s1 + $0x328] sm:$0xf]  ;;  %v4551_v49 = vld [vmem:[%s7429_s1 + $0x14] sm:$0xf0]  ;;  %v3167_v51 = vor.u32 %v4587_v16, %v3166_v36 }
  0xcf   :  { %2703 = vmatpush.bf16.msra.mxu1 %v3231_v37  ;;  %2716 = vmatpush.bf16.msra.mxu2 %v3359_v39  ;;  %v2452_v37 = vpop.f32.mrf.mxu1  ;;  %v3439_v39 = vor.u32 %v4655_v24, %v3438_v22  ;;  %v3022_v48 = vld [vmem:[%s7429_s1 + $0x8] sm:$0xf]  ;;  %v4615_v23 = vld [vmem:[%s7429_s1 + $0x214] sm:$0xf0] }
  0xd0   :  { %v3150_v54 = vld [vmem:[%s7429_s1 + $0x108] sm:$0xf]  ;;  %v4707_v63 = vld [vmem:[%s7429_s1 + $0x4f4] sm:$0xf0]  ;;  %v3023_v1 = vor.u32 %v4551_v49, %v3022_v48 }
  0xd1   :  { %2729 = vmatpush.bf16.msra.mxu3 %v3487_v46  ;;  %2691 = vmatpush.bf16.msra.mxu0 %v3087_v52  ;;  %v4651_v46 = vld [vmem:[%s7429_s1 + $0x334] sm:$0xf0]  ;;  %v3295_v52 = vor.u32 %v4619_v43, %v3294_v40  ;;  %v2465_v57 = vpop.f32.mrf.mxu2  ;;  %v3406_v59 = vld [vmem:[%s7429_s1 + $0x308] sm:$0xf] }
  0xd2   :  { %v3423_v58 = vor.u32 %v4651_v46, %v3422_v45  ;;  %v3646_v62 = vld [vmem:[%s7429_s1 + $0x4e8] sm:$0xf]  ;;  %v4703_v24 = vld [vmem:[%s7429_s1 + $0x4d4] sm:$0xf0] }
  0xd3   :  { %2704 = vmatpush.bf16.msra.mxu1 %v3215_v55  ;;  %2717 = vmatpush.bf16.msra.mxu2 %v3343_v56  ;;  %v4583_v55 = vld [vmem:[%s7429_s1 + $0x114] sm:$0xf0]  ;;  %v3278_v56 = vld [vmem:[%s7429_s1 + $0x208] sm:$0xf]  ;;  %v3647_v17 = vor.u32 %v4707_v63, %v3646_v62 }
  0xd4   :  { %v2478_v61 = vpop.f32.mrf.mxu3  ;;  %v3774_v0 = vld [vmem:[%s7429_s1 + $0x5e8] sm:$0xf]  ;;  %v3151_v9 = vor.u32 %v4583_v55, %v3150_v54  ;;  %v3279_v11 = vor.u32 %v4615_v23, %v3278_v56  ;;  %v4735_v28 = vld [vmem:[%s7429_s1 + $0x5d4] sm:$0xf0] }
  0xd5   :  { %2730 = vmatpush.bf16.msra.mxu3 %v3471_v8  ;;  %2692 = vmatpush.bf16.msra.mxu0 %v3071_v2  ;;  %v4647_v8 = vld [vmem:[%s7429_s1 + $0x314] sm:$0xf0]  ;;  %v3902_v3 = vld [vmem:[%s7429_s1 + $0x6e8] sm:$0xf] }
  0xd6   :  { %v4739_v2 = vld [vmem:[%s7429_s1 + $0x5f4] sm:$0xf0]  ;;  %v4030_v12 = vld [vmem:[%s7429_s1 + $0x7e8] sm:$0xf]  ;;  %v3407_v15 = vor.u32 %v4647_v8, %v3406_v59 }
  0xd7   :  { %2705 = vmatpush.bf16.msra.mxu1 %v3199_v5  ;;  %2718 = vmatpush.bf16.msra.mxu2 %v3327_v7  ;;  %v4771_v5 = vld [vmem:[%s7429_s1 + $0x6f4] sm:$0xf0]  ;;  %v2438_v7 = vadd.f32 %v6281_v53, %v2425_v50  ;;  %v3775_v18 = vor.u32 %v4739_v2, %v3774_v0  ;;  %v3630_v53 = vld [vmem:[%s7429_s1 + $0x4c8] sm:$0xf] }
  0xd8   :  { %v3903_v22 = vor.u32 %v4771_v5, %v3902_v3  ;;  %v4014_v35 = vld [vmem:[%s7429_s1 + $0x7c8] sm:$0xf]  ;;  %v4799_v36 = vld [vmem:[%s7429_s1 + $0x7d4] sm:$0xf0]  ;;  %v3631_v37 = vor.u32 %v4703_v24, %v3630_v53 }
  0xd9   :  { %2731 = vmatpush.bf16.msra.mxu3 %v3455_v10  ;;  %2693 = vmatpush.bf16.msra.mxu0 %v3055_v26  ;;  %v4803_v10 = vld [vmem:[%s7429_s1 + $0x7f4] sm:$0xf0]  ;;  %v3758_v26 = vld [vmem:[%s7429_s1 + $0x5c8] sm:$0xf]  ;;  %v2451_v34 = vadd.f32 %v6293_v60, %v2438_v7  ;;  %v4015_v45 = vor.u32 %v4799_v36, %v4014_v35 }
  0xda   :  { %v4031_v27 = vor.u32 %v4803_v10, %v4030_v12  ;;  %v3614_v60 = vld [vmem:[%s7429_s1 + $0x4a8] sm:$0xf]  ;;  %v4699_v40 = vld [vmem:[%s7429_s1 + $0x4b4] sm:$0xf0] }
  0xdb   :  { %2706 = vmatpush.bf16.msra.mxu1 %v3183_v31  ;;  %2719 = vmatpush.bf16.msra.mxu2 %v3311_v32  ;;  %v3886_v31 = vld [vmem:[%s7429_s1 + $0x6c8] sm:$0xf]  ;;  %v4767_v32 = vld [vmem:[%s7429_s1 + $0x6d4] sm:$0xf0]  ;;  %v2464_v49 = vadd.f32 %v6320_v13, %v2451_v34 }
  0xdc   :  { %v3887_v16 = vor.u32 %v4767_v32, %v3886_v31  ;;  %v3742_v43 = vld [vmem:[%s7429_s1 + $0x5a8] sm:$0xf]  ;;  %v4731_v46 = vld [vmem:[%s7429_s1 + $0x5b4] sm:$0xf0] }
  0xdd   :  { %2732 = vmatpush.bf16.msra.mxu3 %v3439_v39  ;;  %2694 = vmatpush.bf16.msra.mxu0 %v3039_v47  ;;  %v3759_v39 = vor.u32 %v4735_v28, %v3758_v26  ;;  %v3870_v47 = vld [vmem:[%s7429_s1 + $0x6a8] sm:$0xf]  ;;  %v4763_v48 = vld [vmem:[%s7429_s1 + $0x6b4] sm:$0xf0]  ;;  %v3743_v54 = vor.u32 %v4731_v46, %v3742_v43  ;;  %v2477_v61 = vadd.f32 %v6331_v19, %v2464_v49 }
  0xde   :  { %v3998_v50 = vld [vmem:[%s7429_s1 + $0x7a8] sm:$0xf]  ;;  %v3871_v13 = vor.u32 %v4763_v48, %v3870_v47  ;;  %v4695_v56 = vld [vmem:[%s7429_s1 + $0x494] sm:$0xf0] }
  0xdf   :  { %2707 = vmatpush.bf16.msra.mxu1 %v3167_v51  ;;  %2720 = vmatpush.bf16.msra.mxu2 %v3295_v52  ;;  %v4795_v51 = vld [vmem:[%s7429_s1 + $0x7b4] sm:$0xf0]  ;;  %v3615_v52 = vor.u32 %v4699_v40, %v3614_v60  ;;  %v3598_v55 = vld [vmem:[%s7429_s1 + $0x488] sm:$0xf] }
  0xe0   :  { %v3726_v57 = vld [vmem:[%s7429_s1 + $0x588] sm:$0xf]  ;;  %v4727_v23 = vld [vmem:[%s7429_s1 + $0x594] sm:$0xf0] }
  0xe1   :  { %2733 = vmatpush.bf16.msra.mxu3 %v3423_v58  ;;  %2695 = vmatpush.bf16.msra.mxu0 %v3023_v1  ;;  %v3999_v58 = vor.u32 %v4795_v51, %v3998_v50  ;;  %v3854_v59 = vld [vmem:[%s7429_s1 + $0x688] sm:$0xf]  ;;  %v4759_v8 = vld [vmem:[%s7429_s1 + $0x694] sm:$0xf0]  ;;  %v3599_v1 = vor.u32 %v4695_v56, %v3598_v55  ;;  %v3727_v5 = vor.u32 %v4727_v23, %v3726_v57 }
  0xe2   :  { %v3982_v63 = vld [vmem:[%s7429_s1 + $0x788] sm:$0xf]  ;;  %v4791_v0 = vld [vmem:[%s7429_s1 + $0x794] sm:$0xf0]  ;;  %v3855_v7 = vor.u32 %v4759_v8, %v3854_v59 }
  0xe3   :  { %2708 = vmatpush.bf16.msra.mxu1 %v3151_v9  ;;  %2721 = vmatpush.bf16.msra.mxu2 %v3279_v11  ;;  %v2489_v62 = vpop.f32.mrf.mxu0  ;;  %v3582_v19 = vld [vmem:[%s7429_s1 + $0x468] sm:$0xf]  ;;  %v4691_v9 = vld [vmem:[%s7429_s1 + $0x474] sm:$0xf0]  ;;  %v3983_v12 = vor.u32 %v4791_v0, %v3982_v63 }
  0xe4   :  { %2696 = vmatmul.bf16.vlgmr.msra.gmra.mxu0 %v5252_v20  ;;  %v2490_v3 = vadd.f32 %v2489_v62, %v2477_v61  ;;  %v3710_v11 = vld [vmem:[%s7429_s1 + $0x568] sm:$0xf]  ;;  %v4723_v10 = vld [vmem:[%s7429_s1 + $0x574] sm:$0xf0]  ;;  %v3583_v53 = vor.u32 %v4691_v9, %v3582_v19 }
  0xe5   :  { %2734 = vmatpush.bf16.msra.mxu3 %v3407_v15  ;;  %2740 = vmatpush.bf16.msrb.mxu0 %v3647_v17  ;;  %v2502_v2 = vpop.f32.mrf.mxu1  ;;  %v3838_v15 = vld [vmem:[%s7429_s1 + $0x668] sm:$0xf]  ;;  %v4755_v17 = vld [vmem:[%s7429_s1 + $0x674] sm:$0xf0]  ;;  %v3711_v26 = vor.u32 %v4723_v10, %v3710_v11 }
  0xe6   :  { %2722 = vmatmul.bf16.vlgmr.msra.gmra.mxu2 %v5220_v4  ;;  %2709 = vmatmul.bf16.vlgmr.msra.gmra.mxu1 %v5255_v21  ;;  %v2503_v24 = vadd.f32 %v2502_v2, %v2490_v3  ;;  %v3566_v28 = vld [vmem:[%s7429_s1 + $0x448] sm:$0xf]  ;;  %v4687_v31 = vld [vmem:[%s7429_s1 + $0x454] sm:$0xf0] }
  0xe7   :  { %2753 = vmatpush.bf16.msrb.mxu1 %v3775_v18  ;;  %2766 = vmatpush.bf16.msrb.mxu2 %v3903_v22  ;;  %v3966_v18 = vld [vmem:[%s7429_s1 + $0x768] sm:$0xf]  ;;  %v4787_v22 = vld [vmem:[%s7429_s1 + $0x774] sm:$0xf0]  ;;  %v3567_v46 = vor.u32 %v4687_v31, %v3566_v28 }
  0xe8   :  { %2735 = vmatmul.bf16.vlgmr.msra.gmra.mxu3 %v5225_v6  ;;  %v3694_v32 = vld [vmem:[%s7429_s1 + $0x548] sm:$0xf]  ;;  %v3967_v34 = vor.u32 %v4787_v22, %v3966_v18  ;;  %v4719_v36 = vld [vmem:[%s7429_s1 + $0x554] sm:$0xf0] }
  0xe9   :  { %2779 = vmatpush.bf16.msrb.mxu3 %v4031_v27  ;;  %2741 = vmatpush.bf16.msrb.mxu0 %v3631_v37  ;;  %v3839_v27 = vor.u32 %v4755_v17, %v3838_v15  ;;  %v2515_v35 = vpop.f32.mrf.mxu2  ;;  %v3822_v37 = vld [vmem:[%s7429_s1 + $0x648] sm:$0xf]  ;;  %v4783_v43 = vld [vmem:[%s7429_s1 + $0x754] sm:$0xf0]  ;;  %v3695_v49 = vor.u32 %v4719_v36, %v3694_v32 }
  0xea   :  { %v3950_v40 = vld [vmem:[%s7429_s1 + $0x748] sm:$0xf]  ;;  %v4715_v55 = vld [vmem:[%s7429_s1 + $0x534] sm:$0xf0] }
  0xeb   :  { %2754 = vmatpush.bf16.msrb.mxu1 %v3759_v39  ;;  %2767 = vmatpush.bf16.msrb.mxu2 %v3887_v16  ;;  %v4751_v39 = vld [vmem:[%s7429_s1 + $0x654] sm:$0xf0]  ;;  %v2516_v16 = vadd.f32 %v2515_v35, %v2503_v24  ;;  %v2528_v60 = vpop.f32.mrf.mxu3  ;;  %v3550_v51 = vld [vmem:[%s7429_s1 + $0x428] sm:$0xf] }
  0xec   :  { %v3823_v50 = vor.u32 %v4751_v39, %v3822_v37  ;;  %v3806_v56 = vld [vmem:[%s7429_s1 + $0x628] sm:$0xf]  ;;  %v4747_v57 = vld [vmem:[%s7429_s1 + $0x634] sm:$0xf0] }
  0xed   :  { %2780 = vmatpush.bf16.msrb.mxu3 %v4015_v45  ;;  %2742 = vmatpush.bf16.msrb.mxu0 %v3615_v52  ;;  %v2491_v45 = vpop.f32.mrf.mxu0  ;;  %v2504_v47 = vpop.f32.mrf.mxu1  ;;  %v2529_v48 = vadd.f32 %v2528_v60, %v2516_v16  ;;  %v4683_v52 = vld [vmem:[%s7429_s1 + $0x434] sm:$0xf0]  ;;  %v3934_v23 = vld [vmem:[%s7429_s1 + $0x728] sm:$0xf]  ;;  %v3807_v0 = vor.u32 %v4747_v57, %v3806_v56 }
  0xee   :  { %v4779_v59 = vld [vmem:[%s7429_s1 + $0x734] sm:$0xf0]  ;;  %v3551_v8 = vor.u32 %v4683_v52, %v3550_v51  ;;  %v3534_v61 = vld [vmem:[%s7429_s1 + $0x408] sm:$0xf] }
  0xef   :  { %2755 = vmatpush.bf16.msrb.mxu1 %v3743_v54  ;;  %2768 = vmatpush.bf16.msrb.mxu2 %v3871_v13  ;;  %v3678_v54 = vld [vmem:[%s7429_s1 + $0x528] sm:$0xf]  ;;  %v3951_v13 = vor.u32 %v4783_v43, %v3950_v40  ;;  %v4679_v62 = vld [vmem:[%s7429_s1 + $0x414] sm:$0xf0] }
  0xf0   :  { %v3679_v63 = vor.u32 %v4715_v55, %v3678_v54  ;;  %v4711_v2 = vld [vmem:[%s7429_s1 + $0x514] sm:$0xf0]  ;;  %v3790_v3 = vld [vmem:[%s7429_s1 + $0x608] sm:$0xf]  ;;  %v3535_v18 = vor.u32 %v4679_v62, %v3534_v61 }
  0xf1   :  { %2781 = vmatpush.bf16.msrb.mxu3 %v3999_v58  ;;  %2743 = vmatpush.bf16.msrb.mxu0 %v3599_v1  ;;  %v3000_v58 = vmax.f32 %v2529_v48, 0.0  ;;  %v3662_v1 = vld [vmem:[%s7429_s1 + $0x508] sm:$0xf]  ;;  %v4775_v9 = vld [vmem:[%s7429_s1 + $0x714] sm:$0xf0]  ;;  %v2517_v11 = vpop.f32.mrf.mxu2 }
  0xf2   :  { %v3918_v19 = vld [vmem:[%s7429_s1 + $0x708] sm:$0xf]  ;;  %v4835_v10 = vld [vmem:[%s7429_s1 + $0x8f4] sm:$0xf0] }
  0xf3   :  { %2756 = vmatpush.bf16.msrb.mxu1 %v3727_v5  ;;  %2769 = vmatpush.bf16.msrb.mxu2 %v3855_v7  ;;  %3004 = vst [vmem:[%s7432_s3] sm:$0xff] %v3000_v58  ;;  %v3935_v5 = vor.u32 %v4779_v59, %v3934_v23  ;;  %v4743_v7 = vld [vmem:[%s7429_s1 + $0x614] sm:$0xf0]  ;;  %v4286_v15 = vld [vmem:[%s7429_s1 + $0x9e8] sm:$0xf]  ;;  %v2530_v17 = vpop.f32.mrf.mxu3  ;;  %v3919_v32 = vor.u32 %v4775_v9, %v3918_v19 }
  0xf4   :  { %v4867_v22 = vld [vmem:[%s7429_s1 + $0x9f4] sm:$0xf0]  ;;  %v4542_v28 = vld [vmem:[%s7429_s1 + $0xbe8] sm:$0xf] }
  0xf5   :  { %2782 = vmatpush.bf16.msrb.mxu3 %v3983_v12  ;;  %2744 = vmatpush.bf16.msrb.mxu0 %v3583_v53  ;;  %v4158_v12 = vld [vmem:[%s7429_s1 + $0x8e8] sm:$0xf]  ;;  %v4899_v24 = vld [vmem:[%s7429_s1 + $0xaf4] sm:$0xf0]  ;;  %v4287_v35 = vor.u32 %v4867_v22, %v4286_v15 }
  0xf6   :  { %v4414_v53 = vld [vmem:[%s7429_s1 + $0xae8] sm:$0xf]  ;;  %v4931_v31 = vld [vmem:[%s7429_s1 + $0xbf4] sm:$0xf0] }
  0xf7   :  { %2757 = vmatpush.bf16.msrb.mxu1 %v3711_v26  ;;  %2770 = vmatpush.bf16.msrb.mxu2 %v3839_v27  ;;  %v3663_v26 = vor.u32 %v4711_v2, %v3662_v1  ;;  %v3791_v27 = vor.u32 %v4743_v7, %v3790_v3  ;;  %v4415_v36 = vor.u32 %v4899_v24, %v4414_v53  ;;  %v4142_v37 = vld [vmem:[%s7429_s1 + $0x8c8] sm:$0xf]  ;;  %v4831_v39 = vld [vmem:[%s7429_s1 + $0x8d4] sm:$0xf0] }
  0xf8   :  { %v4270_v16 = vld [vmem:[%s7429_s1 + $0x9c8] sm:$0xf]  ;;  %v4543_v60 = vor.u32 %v4931_v31, %v4542_v28  ;;  %v4863_v40 = vld [vmem:[%s7429_s1 + $0x9d4] sm:$0xf0]  ;;  %v4143_v48 = vor.u32 %v4831_v39, %v4142_v37 }
  0xf9   :  { %2783 = vmatpush.bf16.msrb.mxu3 %v3967_v34  ;;  %2745 = vmatpush.bf16.msrb.mxu0 %v3567_v46  ;;  %v4159_v34 = vor.u32 %v4835_v10, %v4158_v12  ;;  %v4398_v43 = vld [vmem:[%s7429_s1 + $0xac8] sm:$0xf]  ;;  %v4895_v45 = vld [vmem:[%s7429_s1 + $0xad4] sm:$0xf0] }
  0xfa   :  { %v4526_v46 = vld [vmem:[%s7429_s1 + $0xbc8] sm:$0xf]  ;;  %v4927_v47 = vld [vmem:[%s7429_s1 + $0xbd4] sm:$0xf0] }
  0xfb   :  { %2758 = vmatpush.bf16.msrb.mxu1 %v3695_v49  ;;  %2771 = vmatpush.bf16.msrb.mxu2 %v3823_v50  ;;  %v4271_v49 = vor.u32 %v4863_v40, %v4270_v16  ;;  %v4399_v50 = vor.u32 %v4895_v45, %v4398_v43  ;;  %v4126_v51 = vld [vmem:[%s7429_s1 + $0x8a8] sm:$0xf]  ;;  %v4827_v52 = vld [vmem:[%s7429_s1 + $0x8b4] sm:$0xf0] }
  0xfc   :  { %v4254_v54 = vld [vmem:[%s7429_s1 + $0x9a8] sm:$0xf]  ;;  %v4859_v55 = vld [vmem:[%s7429_s1 + $0x9b4] sm:$0xf0]  ;;  %v4127_v59 = vor.u32 %v4827_v52, %v4126_v51 }
  0xfd   :  { %2784 = vmatpush.bf16.msrb.mxu3 %v3951_v13  ;;  %2746 = vmatpush.bf16.msrb.mxu0 %v3551_v8  ;;  %v4527_v13 = vor.u32 %v4927_v47, %v4526_v46  ;;  %v4382_v56 = vld [vmem:[%s7429_s1 + $0xaa8] sm:$0xf]  ;;  %v4891_v57 = vld [vmem:[%s7429_s1 + $0xab4] sm:$0xf0]  ;;  %v4255_v8 = vor.u32 %v4859_v55, %v4254_v54 }
  0xfe   :  { %v4510_v58 = vld [vmem:[%s7429_s1 + $0xba8] sm:$0xf]  ;;  %v4923_v23 = vld [vmem:[%s7429_s1 + $0xbb4] sm:$0xf0]  ;;  %v4383_v61 = vor.u32 %v4891_v57, %v4382_v56 }
  0xff   :  { %2759 = vmatpush.bf16.msrb.mxu1 %v3679_v63  ;;  %2772 = vmatpush.bf16.msrb.mxu2 %v3807_v0  ;;  %v4110_v62 = vld [vmem:[%s7429_s1 + $0x888] sm:$0xf]  ;;  %v4823_v63 = vld [vmem:[%s7429_s1 + $0x894] sm:$0xf0]  ;;  %v4511_v1 = vor.u32 %v4923_v23, %v4510_v58 }
 0x100   :  { %v4238_v0 = vld [vmem:[%s7429_s1 + $0x988] sm:$0xf]  ;;  %v4855_v2 = vld [vmem:[%s7429_s1 + $0x994] sm:$0xf0]  ;;  %v4111_v9 = vor.u32 %v4823_v63, %v4110_v62 }
 0x101   :  { %2785 = vmatpush.bf16.msrb.mxu3 %v3935_v5  ;;  %2747 = vmatpush.bf16.msrb.mxu0 %v3535_v18  ;;  %v4366_v3 = vld [vmem:[%s7429_s1 + $0xa88] sm:$0xf]  ;;  %v4887_v5 = vld [vmem:[%s7429_s1 + $0xa94] sm:$0xf0]  ;;  %v6692_v11 = vpop.f32.mrf.mxu0  ;;  %v4239_v12 = vor.u32 %v4855_v2, %v4238_v0 }
 0x102   :  { %v4494_v7 = vld [vmem:[%s7429_s1 + $0xb88] sm:$0xf]  ;;  %v4919_v19 = vld [vmem:[%s7429_s1 + $0xb94] sm:$0xf0]  ;;  %v4367_v10 = vor.u32 %v4887_v5, %v4366_v3 }
 0x103   :  { %2760 = vmatpush.bf16.msrb.mxu1 %v3663_v26  ;;  %2773 = vmatpush.bf16.msrb.mxu2 %v3791_v27  ;;  %v4094_v15 = vld [vmem:[%s7429_s1 + $0x868] sm:$0xf]  ;;  %v4819_v17 = vld [vmem:[%s7429_s1 + $0x874] sm:$0xf0]  ;;  %v6703_v22 = vpop.f32.mrf.mxu1  ;;  %v4495_v53 = vor.u32 %v4919_v19, %v4494_v7 }
 0x104   :  { %2748 = vmatmul.bf16.vlgmr.msrb.gmra.mxu0 %v5411_v41  ;;  %v4222_v18 = vld [vmem:[%s7429_s1 + $0x968] sm:$0xf]  ;;  %v4851_v24 = vld [vmem:[%s7429_s1 + $0x974] sm:$0xf0] }
 0x105   :  { %2786 = vmatpush.bf16.msrb.mxu3 %v3919_v32  ;;  %2792 = vmatpush.bf16.msra.mxu0 %v4159_v34  ;;  %v4350_v26 = vld [vmem:[%s7429_s1 + $0xa68] sm:$0xf]  ;;  %v4883_v27 = vld [vmem:[%s7429_s1 + $0xa74] sm:$0xf0]  ;;  %v4095_v32 = vor.u32 %v4819_v17, %v4094_v15  ;;  %v4223_v34 = vor.u32 %v4851_v24, %v4222_v18  ;;  %v4577_v18 = vld [vmem:[%s7429_s1 + $0xec] sm:$0xf] }
 0x106   :  { %2774 = vmatmul.bf16.vlgmr.msrb.gmra.mxu2 %v5403_v38  ;;  %2761 = vmatmul.bf16.vlgmr.msrb.gmra.mxu1 %v5415_v44  ;;  %v4478_v28 = vld [vmem:[%s7429_s1 + $0xb68] sm:$0xf]  ;;  %v4915_v31 = vld [vmem:[%s7429_s1 + $0xb74] sm:$0xf0]  ;;  %v4609_v24 = vld [vmem:[%s7429_s1 + $0x1ec] sm:$0xf] }
 0x107   :  { %2805 = vmatpush.bf16.msra.mxu1 %v4287_v35  ;;  %2818 = vmatpush.bf16.msra.mxu2 %v4415_v36  ;;  %v4351_v35 = vor.u32 %v4883_v27, %v4350_v26  ;;  %v4078_v36 = vld [vmem:[%s7429_s1 + $0x848] sm:$0xf]  ;;  %v4815_v37 = vld [vmem:[%s7429_s1 + $0x854] sm:$0xf0]  ;;  %v3264_v27 = vld [vmem:[%s7429_s1 + $0x1f8] sm:$0xf0] }
 0x108   :  { %2787 = vmatmul.bf16.vlgmr.msrb.gmra.mxu3 %v5413_v42  ;;  %v4206_v39 = vld [vmem:[%s7429_s1 + $0x948] sm:$0xf]  ;;  %v4847_v40 = vld [vmem:[%s7429_s1 + $0x954] sm:$0xf0] }
 0x109   :  { %2831 = vmatpush.bf16.msra.mxu3 %v4543_v60  ;;  %2793 = vmatpush.bf16.msra.mxu0 %v4143_v48  ;;  %v6729_v16 = vpop.f32.mrf.mxu2  ;;  %v4479_v60 = vor.u32 %v4915_v31, %v4478_v28  ;;  %v4334_v43 = vld [vmem:[%s7429_s1 + $0xa48] sm:$0xf]  ;;  %v4879_v45 = vld [vmem:[%s7429_s1 + $0xa54] sm:$0xf0]  ;;  %v4207_v51 = vor.u32 %v4847_v40, %v4206_v39  ;;  %v4641_v28 = vld [vmem:[%s7429_s1 + $0x2ec] sm:$0xf] }
 0x10a   :  { %v4462_v47 = vld [vmem:[%s7429_s1 + $0xb48] sm:$0xf]  ;;  %v4911_v48 = vld [vmem:[%s7429_s1 + $0xb54] sm:$0xf0]  ;;  %v4335_v52 = vor.u32 %v4879_v45, %v4334_v43  ;;  %v3392_v31 = vld [vmem:[%s7429_s1 + $0x2f8] sm:$0xf0] }
 0x10b   :  { %2806 = vmatpush.bf16.msra.mxu1 %v4271_v49  ;;  %2819 = vmatpush.bf16.msra.mxu2 %v4399_v50  ;;  %v6740_v46 = vpop.f32.mrf.mxu3  ;;  %v4079_v49 = vor.u32 %v4815_v37, %v4078_v36  ;;  %v2543_v50 = vpop.f32.mrf.mxu0  ;;  %v4062_v54 = vld [vmem:[%s7429_s1 + $0x828] sm:$0xf]  ;;  %v4463_v57 = vor.u32 %v4911_v48, %v4462_v47  ;;  %v4843_v58 = vld [vmem:[%s7429_s1 + $0x934] sm:$0xf0]  ;;  %v3520_v36 = vld [vmem:[%s7429_s1 + $0x3f8] sm:$0xf0]  ;;  %v3395_v40 = vor.u32 %v4641_v28, %v3392_v31 }
 0x10c   :  { %v4190_v55 = vld [vmem:[%s7429_s1 + $0x928] sm:$0xf]  ;;  %v2556_v56 = vpop.f32.mrf.mxu1  ;;  %v4807_v0 = vld [vmem:[%s7429_s1 + $0x814] sm:$0xf0]  ;;  %v4573_v43 = vld [vmem:[%s7429_s1 + $0xcc] sm:$0xf] }
 0x10d   :  { %2832 = vmatpush.bf16.msra.mxu3 %v4527_v13  ;;  %2794 = vmatpush.bf16.msra.mxu0 %v4127_v59  ;;  %v4811_v13 = vld [vmem:[%s7429_s1 + $0x834] sm:$0xf0]  ;;  %v4318_v23 = vld [vmem:[%s7429_s1 + $0xa28] sm:$0xf]  ;;  %v3120_v45 = vld [vmem:[%s7429_s1 + $0xd8] sm:$0xf0] }
 0x10e   :  { %v4875_v59 = vld [vmem:[%s7429_s1 + $0xa34] sm:$0xf0]  ;;  %v4063_v62 = vor.u32 %v4811_v13, %v4062_v54  ;;  %v4046_v63 = vld [vmem:[%s7429_s1 + $0x808] sm:$0xf]  ;;  %v4605_v47 = vld [vmem:[%s7429_s1 + $0x1cc] sm:$0xf]  ;;  %v3123_v13 = vor.u32 %v4573_v43, %v3120_v45 }
 0x10f   :  { %2807 = vmatpush.bf16.msra.mxu1 %v4255_v8  ;;  %2820 = vmatpush.bf16.msra.mxu2 %v4383_v61  ;;  %v4446_v8 = vld [vmem:[%s7429_s1 + $0xb28] sm:$0xf]  ;;  %v4907_v61 = vld [vmem:[%s7429_s1 + $0xb34] sm:$0xf0]  ;;  %v4319_v2 = vor.u32 %v4875_v59, %v4318_v23  ;;  %v4047_v26 = vor.u32 %v4807_v0, %v4046_v63  ;;  %v4637_v50 = vld [vmem:[%s7429_s1 + $0x2cc] sm:$0xf] }
 0x110   :  { %v4174_v3 = vld [vmem:[%s7429_s1 + $0x908] sm:$0xf]  ;;  %v4839_v5 = vld [vmem:[%s7429_s1 + $0x914] sm:$0xf0]  ;;  %v3504_v54 = vld [vmem:[%s7429_s1 + $0x3d8] sm:$0xf0] }
 0x111   :  { %2833 = vmatpush.bf16.msra.mxu3 %v4511_v1  ;;  %2795 = vmatpush.bf16.msra.mxu0 %v4111_v9  ;;  %v4191_v1 = vor.u32 %v4843_v58, %v4190_v55  ;;  %v4302_v7 = vld [vmem:[%s7429_s1 + $0xa08] sm:$0xf]  ;;  %v2569_v19 = vpop.f32.mrf.mxu2  ;;  %v4447_v9 = vor.u32 %v4907_v61, %v4446_v8  ;;  %v4903_v15 = vld [vmem:[%s7429_s1 + $0xb14] sm:$0xf0]  ;;  %v3104_v58 = vld [vmem:[%s7429_s1 + $0xb8] sm:$0xf0] }
 0x112   :  { %v4601_v23 = vld [vmem:[%s7429_s1 + $0x1ac] sm:$0xf]  ;;  %v3232_v8 = vld [vmem:[%s7429_s1 + $0x1b8] sm:$0xf0] }
 0x113   :  { %2808 = vmatpush.bf16.msra.mxu1 %v4239_v12  ;;  %2821 = vmatpush.bf16.msra.mxu2 %v4367_v10  ;;  %v4871_v12 = vld [vmem:[%s7429_s1 + $0xa14] sm:$0xf0]  ;;  %v4430_v10 = vld [vmem:[%s7429_s1 + $0xb08] sm:$0xf]  ;;  %v2582_v17 = vpop.f32.mrf.mxu3  ;;  %v4633_v61 = vld [vmem:[%s7429_s1 + $0x2ac] sm:$0xf] }
 0x114   :  { %v4431_v37 = vor.u32 %v4903_v15, %v4430_v10  ;;  %v4665_v63 = vld [vmem:[%s7429_s1 + $0x3ac] sm:$0xf]  ;;  %v3488_v0 = vld [vmem:[%s7429_s1 + $0x3b8] sm:$0xf0] }
 0x115   :  { %2834 = vmatpush.bf16.msra.mxu3 %v4495_v53  ;;  %2796 = vmatpush.bf16.msra.mxu0 %v4095_v32  ;;  %v3136_v53 = vld [vmem:[%s7429_s1 + $0xf8] sm:$0xf0]  ;;  %v4175_v32 = vor.u32 %v4839_v5, %v4174_v3  ;;  %v3235_v3 = vor.u32 %v4601_v23, %v3232_v8  ;;  %v4629_v10 = vld [vmem:[%s7429_s1 + $0x28c] sm:$0xf] }
 0x116   :  { %v3139_v39 = vor.u32 %v4577_v18, %v3136_v53  ;;  %v3088_v19 = vld [vmem:[%s7429_s1 + $0x98] sm:$0xf0]  ;;  %v4661_v17 = vld [vmem:[%s7429_s1 + $0x38c] sm:$0xf] }
 0x117   :  { %2809 = vmatpush.bf16.msra.mxu1 %v4223_v34  ;;  %2822 = vmatpush.bf16.msra.mxu2 %v4351_v35  ;;  %v4303_v34 = vor.u32 %v4871_v12, %v4302_v7  ;;  %v4673_v35 = vld [vmem:[%s7429_s1 + $0x3ec] sm:$0xf]  ;;  %v3216_v12 = vld [vmem:[%s7429_s1 + $0x198] sm:$0xf0] }
 0x118   :  { %v3523_v48 = vor.u32 %v4673_v35, %v3520_v36  ;;  %v4565_v7 = vld [vmem:[%s7429_s1 + $0x8c] sm:$0xf]  ;;  %v3344_v15 = vld [vmem:[%s7429_s1 + $0x298] sm:$0xf0] }
 0x119   :  { %2835 = vmatpush.bf16.msra.mxu3 %v4479_v60  ;;  %2797 = vmatpush.bf16.msra.mxu0 %v4079_v49  ;;  %v3267_v60 = vor.u32 %v4609_v24, %v3264_v27  ;;  %v3248_v49 = vld [vmem:[%s7429_s1 + $0x1d8] sm:$0xf0]  ;;  %v3091_v53 = vor.u32 %v4565_v7, %v3088_v19  ;;  %v3347_v28 = vor.u32 %v4629_v10, %v3344_v15  ;;  %v4561_v31 = vld [vmem:[%s7429_s1 + $0x6c] sm:$0xf] }
 0x11a   :  { %v3251_v55 = vor.u32 %v4605_v47, %v3248_v49  ;;  %v3472_v18 = vld [vmem:[%s7429_s1 + $0x398] sm:$0xf0]  ;;  %v4557_v49 = vld [vmem:[%s7429_s1 + $0x4c] sm:$0xf] }
 0x11b   :  { %2810 = vmatpush.bf16.msra.mxu1 %v4207_v51  ;;  %2823 = vmatpush.bf16.msra.mxu2 %v4335_v52  ;;  %v3376_v51 = vld [vmem:[%s7429_s1 + $0x2d8] sm:$0xf0]  ;;  %v4669_v52 = vld [vmem:[%s7429_s1 + $0x3cc] sm:$0xf] }
 0x11c   :  { %v3379_v56 = vor.u32 %v4637_v50, %v3376_v51  ;;  %v3507_v59 = vor.u32 %v4669_v52, %v3504_v54  ;;  %v3200_v36 = vld [vmem:[%s7429_s1 + $0x178] sm:$0xf0]  ;;  %v4589_v51 = vld [vmem:[%s7429_s1 + $0x14c] sm:$0xf] }
 0x11d   :  { %2836 = vmatpush.bf16.msra.mxu3 %v4463_v57  ;;  %2798 = vmatpush.bf16.msra.mxu0 %v4063_v62  ;;  %v4569_v57 = vld [vmem:[%s7429_s1 + $0xac] sm:$0xf]  ;;  %v3360_v62 = vld [vmem:[%s7429_s1 + $0x2b8] sm:$0xf0] }
 0x11e   :  { %v3363_v5 = vor.u32 %v4633_v61, %v3360_v62  ;;  %v3056_v50 = vld [vmem:[%s7429_s1 + $0x58] sm:$0xf0]  ;;  %v4649_v19 = vld [vmem:[%s7429_s1 + $0x32c] sm:$0xf] }
 0x11f   :  { %2811 = vmatpush.bf16.msra.mxu1 %v4191_v1  ;;  %2824 = vmatpush.bf16.msra.mxu2 %v4319_v2  ;;  %v407_v1 = vperm.slane %v6226_v14, 1  ;;  %v3107_v2 = vor.u32 %v4569_v57, %v3104_v58  ;;  %v4597_v14 = vld [vmem:[%s7429_s1 + $0x18c] sm:$0xf]  ;;  %v3184_v54 = vld [vmem:[%s7429_s1 + $0x158] sm:$0xf0]  ;;  %v3059_v23 = vor.u32 %v4557_v49, %v3056_v50 }
 0x120   :  { %v3219_v27 = vor.u32 %v4597_v14, %v3216_v12  ;;  %v4653_v57 = vld [vmem:[%s7429_s1 + $0x34c] sm:$0xf]  ;;  %v3440_v58 = vld [vmem:[%s7429_s1 + $0x358] sm:$0xf0]  ;;  %v3187_v61 = vor.u32 %v4589_v51, %v3184_v54 }
 0x121   :  { %2837 = vmatpush.bf16.msra.mxu3 %v4447_v9  ;;  %2799 = vmatpush.bf16.msra.mxu0 %v4047_v26  ;;  %v3491_v9 = vor.u32 %v4665_v63, %v3488_v0  ;;  %v6897_v24 = vpop.f32.mrf.mxu0  ;;  %v2542_v26 = vadd.f32 %v6692_v11, %v407_v1  ;;  %v3475_v11 = vor.u32 %v4661_v17, %v3472_v18  ;;  %v4553_v63 = vld [vmem:[%s7429_s1 + $0x2c] sm:$0xf]  ;;  %v3040_v0 = vld [vmem:[%s7429_s1 + $0x38] sm:$0xf0] }
 0x122   :  { %v4585_v1 = vld [vmem:[%s7429_s1 + $0x12c] sm:$0xf]  ;;  %v3296_v7 = vld [vmem:[%s7429_s1 + $0x238] sm:$0xf0] }
 0x123   :  { %2812 = vmatpush.bf16.msra.mxu1 %v4175_v32  ;;  %2825 = vmatpush.bf16.msra.mxu2 %v4303_v34  ;;  %v3072_v32 = vld [vmem:[%s7429_s1 + $0x78] sm:$0xf0]  ;;  %v4593_v34 = vld [vmem:[%s7429_s1 + $0x16c] sm:$0xf]  ;;  %v6909_v35 = vpop.f32.mrf.mxu1  ;;  %v2555_v45 = vadd.f32 %v6703_v22, %v2542_v26 }
 0x124   :  { %2800 = vmatmul.bf16.vlgmr.msra.gmra.mxu0 %v5604_v25  ;;  %v3075_v43 = vor.u32 %v4561_v31, %v3072_v32  ;;  %v3203_v47 = vor.u32 %v4593_v34, %v3200_v36  ;;  %v3424_v14 = vld [vmem:[%s7429_s1 + $0x338] sm:$0xf0]  ;;  %v4549_v12 = vld [vmem:[%s7429_s1 + $0xc] sm:$0xf] }
 0x125   :  { %2838 = vmatpush.bf16.msra.mxu3 %v4431_v37  ;;  %2844 = vmatpush.bf16.msrb.mxu0 %v3139_v39  ;;  %v4625_v37 = vld [vmem:[%s7429_s1 + $0x26c] sm:$0xf]  ;;  %v3328_v39 = vld [vmem:[%s7429_s1 + $0x278] sm:$0xf0]  ;;  %v2568_v8 = vadd.f32 %v6729_v16, %v2555_v45  ;;  %v3427_v31 = vor.u32 %v4649_v19, %v3424_v14 }
 0x126   :  { %2826 = vmatmul.bf16.vlgmr.msra.gmra.mxu2 %v5615_v29  ;;  %2813 = vmatmul.bf16.vlgmr.msra.gmra.mxu1 %v5617_v30  ;;  %v3168_v16 = vld [vmem:[%s7429_s1 + $0x138] sm:$0xf0]  ;;  %v4645_v32 = vld [vmem:[%s7429_s1 + $0x30c] sm:$0xf] }
 0x127   :  { %2857 = vmatpush.bf16.msrb.mxu1 %v3267_v60  ;;  %2870 = vmatpush.bf16.msrb.mxu2 %v3395_v40  ;;  %v4657_v60 = vld [vmem:[%s7429_s1 + $0x36c] sm:$0xf]  ;;  %v3456_v40 = vld [vmem:[%s7429_s1 + $0x378] sm:$0xf0]  ;;  %v2581_v15 = vadd.f32 %v6740_v46, %v2568_v8  ;;  %v3171_v17 = vor.u32 %v4585_v1, %v3168_v16 }
 0x128   :  { %2839 = vmatmul.bf16.vlgmr.msra.gmra.mxu3 %v5625_v33  ;;  %v3459_v22 = vor.u32 %v4657_v60, %v3456_v40  ;;  %v3024_v10 = vld [vmem:[%s7429_s1 + $0x18] sm:$0xf0]  ;;  %v4705_v36 = vld [vmem:[%s7429_s1 + $0x4ec] sm:$0xf] }
 0x129   :  { %2883 = vmatpush.bf16.msrb.mxu3 %v3523_v48  ;;  %2845 = vmatpush.bf16.msrb.mxu0 %v3123_v13  ;;  %v3331_v48 = vor.u32 %v4625_v37, %v3328_v39  ;;  %v6936_v52 = vpop.f32.mrf.mxu2  ;;  %v4621_v13 = vld [vmem:[%s7429_s1 + $0x24c] sm:$0xf]  ;;  %v3152_v26 = vld [vmem:[%s7429_s1 + $0x118] sm:$0xf0]  ;;  %v3027_v60 = vor.u32 %v4549_v12, %v3024_v10 }
 0x12a   :  { %v3280_v46 = vld [vmem:[%s7429_s1 + $0x218] sm:$0xf0]  ;;  %v4737_v39 = vld [vmem:[%s7429_s1 + $0x5ec] sm:$0xf] }
 0x12b   :  { %2858 = vmatpush.bf16.msrb.mxu1 %v3251_v55  ;;  %2871 = vmatpush.bf16.msrb.mxu2 %v3379_v56  ;;  %v3312_v55 = vld [vmem:[%s7429_s1 + $0x258] sm:$0xf0]  ;;  %v6947_v56 = vpop.f32.mrf.mxu3  ;;  %v4801_v50 = vld [vmem:[%s7429_s1 + $0x7ec] sm:$0xf] }
 0x12c   :  { %v3315_v62 = vor.u32 %v4621_v13, %v3312_v55  ;;  %v3408_v34 = vld [vmem:[%s7429_s1 + $0x318] sm:$0xf0]  ;;  %v4765_v8 = vld [vmem:[%s7429_s1 + $0x6cc] sm:$0xf] }
 0x12d   :  { %2884 = vmatpush.bf16.msrb.mxu3 %v3507_v59  ;;  %2846 = vmatpush.bf16.msrb.mxu0 %v3107_v2  ;;  %v2595_v59 = vpop.f32.mrf.mxu0  ;;  %v2608_v2 = vpop.f32.mrf.mxu1  ;;  %v3648_v37 = vld [vmem:[%s7429_s1 + $0x4f8] sm:$0xf0]  ;;  %v4761_v14 = vld [vmem:[%s7429_s1 + $0x6ac] sm:$0xf] }
 0x12e   :  { %v3776_v40 = vld [vmem:[%s7429_s1 + $0x5f8] sm:$0xf0]  ;;  %v3651_v54 = vor.u32 %v4705_v36, %v3648_v37  ;;  %v4793_v10 = vld [vmem:[%s7429_s1 + $0x7ac] sm:$0xf] }
 0x12f   :  { %2859 = vmatpush.bf16.msrb.mxu1 %v3235_v3  ;;  %2872 = vmatpush.bf16.msrb.mxu2 %v3363_v5  ;;  %v3443_v3 = vor.u32 %v4653_v57, %v3440_v58  ;;  %v4617_v5 = vld [vmem:[%s7429_s1 + $0x22c] sm:$0xf]  ;;  %v3904_v45 = vld [vmem:[%s7429_s1 + $0x6f8] sm:$0xf0]  ;;  %v3779_v13 = vor.u32 %v4737_v39, %v3776_v40 }
 0x130   :  { %v3299_v18 = vor.u32 %v4617_v5, %v3296_v7  ;;  %v4032_v51 = vld [vmem:[%s7429_s1 + $0x7f8] sm:$0xf0]  ;;  %v4733_v58 = vld [vmem:[%s7429_s1 + $0x5cc] sm:$0xf] }
 0x131   :  { %2885 = vmatpush.bf16.msrb.mxu3 %v3491_v9  ;;  %2847 = vmatpush.bf16.msrb.mxu0 %v3091_v53  ;;  %v3043_v9 = vor.u32 %v4553_v63, %v3040_v0  ;;  %v4581_v53 = vld [vmem:[%s7429_s1 + $0x10c] sm:$0xf]  ;;  %v3632_v57 = vld [vmem:[%s7429_s1 + $0x4d8] sm:$0xf0] }
 0x132   :  { %v3760_v59 = vld [vmem:[%s7429_s1 + $0x5d8] sm:$0xf0]  ;;  %v4797_v63 = vld [vmem:[%s7429_s1 + $0x7cc] sm:$0xf] }
 0x133   :  { %2860 = vmatpush.bf16.msrb.mxu1 %v3219_v27  ;;  %2873 = vmatpush.bf16.msrb.mxu2 %v3347_v28  ;;  %v4613_v27 = vld [vmem:[%s7429_s1 + $0x20c] sm:$0xf]  ;;  %v2621_v28 = vpop.f32.mrf.mxu2  ;;  %v4016_v0 = vld [vmem:[%s7429_s1 + $0x7d8] sm:$0xf0]  ;;  %v3763_v2 = vor.u32 %v4733_v58, %v3760_v59 }
 0x134   :  { %v3283_v49 = vor.u32 %v4613_v27, %v3280_v46  ;;  %v3616_v16 = vld [vmem:[%s7429_s1 + $0x4b8] sm:$0xf0]  ;;  %v4729_v5 = vld [vmem:[%s7429_s1 + $0x5ac] sm:$0xf]  ;;  %v4019_v7 = vor.u32 %v4797_v63, %v4016_v0 }
 0x135   :  { %2886 = vmatpush.bf16.msrb.mxu3 %v3475_v11  ;;  %2848 = vmatpush.bf16.msrb.mxu0 %v3075_v43  ;;  %v2634_v11 = vpop.f32.mrf.mxu3  ;;  %v4769_v43 = vld [vmem:[%s7429_s1 + $0x6ec] sm:$0xf]  ;;  %v3744_v19 = vld [vmem:[%s7429_s1 + $0x5b8] sm:$0xf0] }
 0x136   :  { %v3907_v55 = vor.u32 %v4769_v43, %v3904_v45  ;;  %v3856_v27 = vld [vmem:[%s7429_s1 + $0x698] sm:$0xf0]  ;;  %v4789_v46 = vld [vmem:[%s7429_s1 + $0x78c] sm:$0xf] }
 0x137   :  { %2861 = vmatpush.bf16.msrb.mxu1 %v3203_v47  ;;  %2874 = vmatpush.bf16.msrb.mxu2 %v3331_v48  ;;  %v2594_v47 = vadd.f32 %v6897_v24, %v2581_v15  ;;  %v3155_v48 = vor.u32 %v4581_v53, %v3152_v26  ;;  %v4701_v24 = vld [vmem:[%s7429_s1 + $0x4cc] sm:$0xf]  ;;  %v4000_v15 = vld [vmem:[%s7429_s1 + $0x7b8] sm:$0xf0] }
 0x138   :  { %v3635_v1 = vor.u32 %v4701_v24, %v3632_v57  ;;  %v3600_v53 = vld [vmem:[%s7429_s1 + $0x498] sm:$0xf0]  ;;  %v4757_v26 = vld [vmem:[%s7429_s1 + $0x68c] sm:$0xf] }
 0x139   :  { %2887 = vmatpush.bf16.msrb.mxu3 %v3459_v22  ;;  %2849 = vmatpush.bf16.msrb.mxu0 %v3059_v23  ;;  %v3411_v22 = vor.u32 %v4645_v32, %v3408_v34  ;;  %v4035_v23 = vor.u32 %v4801_v50, %v4032_v51  ;;  %v3984_v32 = vld [vmem:[%s7429_s1 + $0x798] sm:$0xf0]  ;;  %v3859_v39 = vor.u32 %v4757_v26, %v3856_v27  ;;  %v4721_v40 = vld [vmem:[%s7429_s1 + $0x56c] sm:$0xf] }
 0x13a   :  { %v3987_v43 = vor.u32 %v4789_v46, %v3984_v32  ;;  %v3712_v45 = vld [vmem:[%s7429_s1 + $0x578] sm:$0xf0]  ;;  %v4717_v57 = vld [vmem:[%s7429_s1 + $0x54c] sm:$0xf] }
 0x13b   :  { %2862 = vmatpush.bf16.msrb.mxu1 %v3187_v61  ;;  %2875 = vmatpush.bf16.msrb.mxu2 %v3315_v62  ;;  %v3888_v61 = vld [vmem:[%s7429_s1 + $0x6d8] sm:$0xf0]  ;;  %v2607_v62 = vadd.f32 %v6909_v35, %v2594_v47  ;;  %v4697_v35 = vld [vmem:[%s7429_s1 + $0x4ac] sm:$0xf] }
 0x13c   :  { %v4753_v47 = vld [vmem:[%s7429_s1 + $0x66c] sm:$0xf]  ;;  %v3968_v50 = vld [vmem:[%s7429_s1 + $0x778] sm:$0xf0] }
 0x13d   :  { %2888 = vmatpush.bf16.msrb.mxu3 %v3443_v3  ;;  %2850 = vmatpush.bf16.msrb.mxu0 %v3043_v9  ;;  %v3891_v3 = vor.u32 %v4765_v8, %v3888_v61  ;;  %v3872_v9 = vld [vmem:[%s7429_s1 + $0x6b8] sm:$0xf0]  ;;  %v2620_v12 = vadd.f32 %v6936_v52, %v2607_v62  ;;  %v4749_v8 = vld [vmem:[%s7429_s1 + $0x64c] sm:$0xf] }
 0x13e   :  { %v3875_v52 = vor.u32 %v4761_v14, %v3872_v9  ;;  %v3568_v24 = vld [vmem:[%s7429_s1 + $0x458] sm:$0xf0]  ;;  %v4781_v0 = vld [vmem:[%s7429_s1 + $0x74c] sm:$0xf] }
 0x13f   :  { %2863 = vmatpush.bf16.msrb.mxu1 %v3171_v17  ;;  %2876 = vmatpush.bf16.msrb.mxu2 %v3299_v18  ;;  %v3619_v17 = vor.u32 %v4697_v35, %v3616_v16  ;;  %v4693_v18 = vld [vmem:[%s7429_s1 + $0x48c] sm:$0xf]  ;;  %v2633_v28 = vadd.f32 %v6947_v56, %v2620_v12  ;;  %v3696_v59 = vld [vmem:[%s7429_s1 + $0x558] sm:$0xf0] }
 0x140   :  { %v3603_v34 = vor.u32 %v4693_v18, %v3600_v53  ;;  %v4689_v56 = vld [vmem:[%s7429_s1 + $0x46c] sm:$0xf]  ;;  %v3824_v61 = vld [vmem:[%s7429_s1 + $0x658] sm:$0xf0] }
 0x141   :  { %2889 = vmatpush.bf16.msrb.mxu3 %v3427_v31  ;;  %2851 = vmatpush.bf16.msrb.mxu0 %v3027_v60  ;;  %v2645_v31 = vpop.f32.mrf.mxu0  ;;  %v3584_v60 = vld [vmem:[%s7429_s1 + $0x478] sm:$0xf0]  ;;  %v4713_v9 = vld [vmem:[%s7429_s1 + $0x52c] sm:$0xf] }
 0x142   :  { %v2646_v36 = vadd.f32 %v2645_v31, %v2633_v28  ;;  %v3587_v51 = vor.u32 %v4689_v56, %v3584_v60  ;;  %v3552_v14 = vld [vmem:[%s7429_s1 + $0x438] sm:$0xf0]  ;;  %v4741_v31 = vld [vmem:[%s7429_s1 + $0x60c] sm:$0xf] }
 0x143   :  { %2864 = vmatpush.bf16.msrb.mxu1 %v3155_v48  ;;  %2877 = vmatpush.bf16.msrb.mxu2 %v3283_v49  ;;  %v2658_v11 = vpop.f32.mrf.mxu1  ;;  %v3840_v48 = vld [vmem:[%s7429_s1 + $0x678] sm:$0xf0]  ;;  %v4785_v49 = vld [vmem:[%s7429_s1 + $0x76c] sm:$0xf] }
 0x144   :  { %2852 = vmatmul.bf16.vlgmr.msrb.gmra.mxu0 %v5252_v20  ;;  %v4003_v20 = vor.u32 %v4793_v10, %v4000_v15  ;;  %v3971_v58 = vor.u32 %v4785_v49, %v3968_v50  ;;  %v3680_v10 = vld [vmem:[%s7429_s1 + $0x538] sm:$0xf0]  ;;  %v4745_v15 = vld [vmem:[%s7429_s1 + $0x62c] sm:$0xf] }
 0x145   :  { %2890 = vmatpush.bf16.msrb.mxu3 %v3411_v22  ;;  %2896 = vmatpush.bf16.msra.mxu0 %v3651_v54  ;;  %v2659_v22 = vadd.f32 %v2658_v11, %v2646_v36  ;;  %v3715_v54 = vor.u32 %v4721_v40, %v3712_v45  ;;  %v3936_v18 = vld [vmem:[%s7429_s1 + $0x738] sm:$0xf0]  ;;  %v3683_v26 = vor.u32 %v4713_v9, %v3680_v10  ;;  %v4865_v56 = vld [vmem:[%s7429_s1 + $0x9ec] sm:$0xf] }
 0x146   :  { %2878 = vmatmul.bf16.vlgmr.msrb.gmra.mxu2 %v5220_v4  ;;  %2865 = vmatmul.bf16.vlgmr.msrb.gmra.mxu1 %v5255_v21  ;;  %v3747_v4 = vor.u32 %v4729_v5, %v3744_v19  ;;  %v3728_v21 = vld [vmem:[%s7429_s1 + $0x598] sm:$0xf0]  ;;  %v3699_v5 = vor.u32 %v4717_v57, %v3696_v59  ;;  %v4681_v19 = vld [vmem:[%s7429_s1 + $0x42c] sm:$0xf] }
 0x147   :  { %2909 = vmatpush.bf16.msra.mxu1 %v3779_v13  ;;  %2922 = vmatpush.bf16.msra.mxu2 %v3907_v55  ;;  %v3843_v13 = vor.u32 %v4753_v47, %v3840_v48  ;;  %v4685_v55 = vld [vmem:[%s7429_s1 + $0x44c] sm:$0xf]  ;;  %v3555_v53 = vor.u32 %v4681_v19, %v3552_v14  ;;  %v3664_v28 = vld [vmem:[%s7429_s1 + $0x518] sm:$0xf0] }
 0x148   :  { %2891 = vmatmul.bf16.vlgmr.msrb.gmra.mxu3 %v5225_v6  ;;  %v4725_v6 = vld [vmem:[%s7429_s1 + $0x58c] sm:$0xf]  ;;  %v3792_v32 = vld [vmem:[%s7429_s1 + $0x618] sm:$0xf0] }
 0x149   :  { %2935 = vmatpush.bf16.msra.mxu3 %v4035_v23  ;;  %2897 = vmatpush.bf16.msra.mxu0 %v3635_v1  ;;  %v3731_v37 = vor.u32 %v4725_v6, %v3728_v21  ;;  %v2671_v23 = vpop.f32.mrf.mxu2  ;;  %v3952_v1 = vld [vmem:[%s7429_s1 + $0x758] sm:$0xf0]  ;;  %v4677_v6 = vld [vmem:[%s7429_s1 + $0x40c] sm:$0xf]  ;;  %v3795_v49 = vor.u32 %v4741_v31, %v3792_v32 }
 0x14a   :  { %v2672_v62 = vadd.f32 %v2671_v23, %v2659_v22  ;;  %v3955_v12 = vor.u32 %v4781_v0, %v3952_v1  ;;  %v4709_v21 = vld [vmem:[%s7429_s1 + $0x50c] sm:$0xf]  ;;  %v3920_v11 = vld [vmem:[%s7429_s1 + $0x718] sm:$0xf0] }
 0x14b   :  { %2910 = vmatpush.bf16.msra.mxu1 %v3763_v2  ;;  %2923 = vmatpush.bf16.msra.mxu2 %v3891_v3  ;;  %v2684_v63 = vpop.f32.mrf.mxu3  ;;  %v2647_v2 = vpop.f32.mrf.mxu0  ;;  %v3571_v3 = vor.u32 %v4685_v55, %v3568_v24  ;;  %v4897_v45 = vld [vmem:[%s7429_s1 + $0xaec] sm:$0xf]  ;;  %v4416_v47 = vld [vmem:[%s7429_s1 + $0xaf8] sm:$0xf0]  ;;  %v3667_v48 = vor.u32 %v4709_v21, %v3664_v28 }
 0x14c   :  { %v2660_v35 = vpop.f32.mrf.mxu1  ;;  %v2685_v16 = vadd.f32 %v2684_v63, %v2672_v62  ;;  %v4929_v50 = vld [vmem:[%s7429_s1 + $0xbec] sm:$0xf]  ;;  %v4419_v55 = vor.u32 %v4897_v45, %v4416_v47  ;;  %v4144_v57 = vld [vmem:[%s7429_s1 + $0x8d8] sm:$0xf0] }
 0x14d   :  { %2936 = vmatpush.bf16.msra.mxu3 %v4019_v7  ;;  %2898 = vmatpush.bf16.msra.mxu0 %v3619_v17  ;;  %v3827_v7 = vor.u32 %v4749_v8, %v3824_v61  ;;  %v3808_v17 = vld [vmem:[%s7429_s1 + $0x638] sm:$0xf0]  ;;  %v4829_v24 = vld [vmem:[%s7429_s1 + $0x8cc] sm:$0xf] }
 0x14e   :  { %v3811_v27 = vor.u32 %v4745_v15, %v3808_v17  ;;  %v4272_v59 = vld [vmem:[%s7429_s1 + $0x9d8] sm:$0xf0]  ;;  %v4893_v8 = vld [vmem:[%s7429_s1 + $0xacc] sm:$0xf]  ;;  %v4147_v0 = vor.u32 %v4829_v24, %v4144_v57 }
 0x14f   :  { %2911 = vmatpush.bf16.msra.mxu1 %v3747_v4  ;;  %2924 = vmatpush.bf16.msra.mxu2 %v3875_v52  ;;  %v3001_v4 = vmax.f32 %v2685_v16, 0.0  ;;  %v4777_v52 = vld [vmem:[%s7429_s1 + $0x72c] sm:$0xf]  ;;  %v4400_v61 = vld [vmem:[%s7429_s1 + $0xad8] sm:$0xf0] }
 0x150   :  { %v3939_v46 = vor.u32 %v4777_v52, %v3936_v18  ;;  %v4925_v62 = vld [vmem:[%s7429_s1 + $0xbcc] sm:$0xf]  ;;  %v4528_v63 = vld [vmem:[%s7429_s1 + $0xbd8] sm:$0xf0]  ;;  %v4403_v2 = vor.u32 %v4893_v8, %v4400_v61 }
 0x151   :  { %2937 = vmatpush.bf16.msra.mxu3 %v4003_v20  ;;  %2899 = vmatpush.bf16.msra.mxu0 %v3603_v34  ;;  %v3536_v20 = vld [vmem:[%s7429_s1 + $0x418] sm:$0xf0]  ;;  %3005 = vst [vmem:[%s7432_s3 + $0x8] sm:$0xff] %v3001_v4  ;;  %v4773_v34 = vld [vmem:[%s7429_s1 + $0x70c] sm:$0xf]  ;;  %v2673_v36 = vpop.f32.mrf.mxu2 }
 0x152   :  { %v3539_v40 = vor.u32 %v4677_v6, %v3536_v20  ;;  %v3923_v22 = vor.u32 %v4773_v34, %v3920_v11  ;;  %v4128_v35 = vld [vmem:[%s7429_s1 + $0x8b8] sm:$0xf0]  ;;  %v4857_v16 = vld [vmem:[%s7429_s1 + $0x9ac] sm:$0xf] }
 0x153   :  { %2912 = vmatpush.bf16.msra.mxu1 %v3731_v37  ;;  %2925 = vmatpush.bf16.msra.mxu2 %v3859_v39  ;;  %v4833_v37 = vld [vmem:[%s7429_s1 + $0x8ec] sm:$0xf]  ;;  %v4160_v39 = vld [vmem:[%s7429_s1 + $0x8f8] sm:$0xf0]  ;;  %v2686_v60 = vpop.f32.mrf.mxu3 }
 0x154   :  { %v4889_v19 = vld [vmem:[%s7429_s1 + $0xaac] sm:$0xf]  ;;  %v4384_v14 = vld [vmem:[%s7429_s1 + $0xab8] sm:$0xf0] }
 0x155   :  { %2938 = vmatpush.bf16.msra.mxu3 %v3987_v43  ;;  %2900 = vmatpush.bf16.msra.mxu0 %v3587_v51  ;;  %v4288_v43 = vld [vmem:[%s7429_s1 + $0x9f8] sm:$0xf0]  ;;  %v4387_v15 = vor.u32 %v4889_v19, %v4384_v14  ;;  %v4853_v17 = vld [vmem:[%s7429_s1 + $0x98c] sm:$0xf] }
 0x156   :  { %v4544_v51 = vld [vmem:[%s7429_s1 + $0xbf8] sm:$0xf0]  ;;  %v4885_v52 = vld [vmem:[%s7429_s1 + $0xa8c] sm:$0xf] }
 0x157   :  { %2913 = vmatpush.bf16.msra.mxu1 %v3715_v54  ;;  %2926 = vmatpush.bf16.msra.mxu2 %v3843_v13  ;;  %v4163_v54 = vor.u32 %v4833_v37, %v4160_v39  ;;  %v4291_v13 = vor.u32 %v4865_v56, %v4288_v43  ;;  %v4547_v23 = vor.u32 %v4929_v50, %v4544_v51  ;;  %v4512_v9 = vld [vmem:[%s7429_s1 + $0xbb8] sm:$0xf0]  ;;  %v4817_v28 = vld [vmem:[%s7429_s1 + $0x86c] sm:$0xf] }
 0x158   :  { %v4368_v18 = vld [vmem:[%s7429_s1 + $0xa98] sm:$0xf0]  ;;  %v4881_v36 = vld [vmem:[%s7429_s1 + $0xa6c] sm:$0xf] }
 0x159   :  { %2939 = vmatpush.bf16.msra.mxu3 %v3971_v58  ;;  %2901 = vmatpush.bf16.msra.mxu0 %v3571_v3  ;;  %v4861_v58 = vld [vmem:[%s7429_s1 + $0x9cc] sm:$0xf]  ;;  %v4496_v6 = vld [vmem:[%s7429_s1 + $0xb98] sm:$0xf0] }
 0x15a   :  { %v4275_v1 = vor.u32 %v4861_v58, %v4272_v59  ;;  %v4825_v3 = vld [vmem:[%s7429_s1 + $0x8ac] sm:$0xf]  ;;  %v4096_v31 = vld [vmem:[%s7429_s1 + $0x878] sm:$0xf0] }
 0x15b   :  { %2914 = vmatpush.bf16.msra.mxu1 %v3699_v5  ;;  %2927 = vmatpush.bf16.msra.mxu2 %v3827_v7  ;;  %v4531_v5 = vor.u32 %v4925_v62, %v4528_v63  ;;  %v4256_v7 = vld [vmem:[%s7429_s1 + $0x9b8] sm:$0xf0]  ;;  %v4913_v39 = vld [vmem:[%s7429_s1 + $0xb6c] sm:$0xf]  ;;  %v4099_v60 = vor.u32 %v4817_v28, %v4096_v31 }
 0x15c   :  { %v4259_v10 = vor.u32 %v4857_v16, %v4256_v7  ;;  %v4224_v11 = vld [vmem:[%s7429_s1 + $0x978] sm:$0xf0]  ;;  %v4813_v45 = vld [vmem:[%s7429_s1 + $0x84c] sm:$0xf] }
 0x15d   :  { %2940 = vmatpush.bf16.msra.mxu3 %v3955_v12  ;;  %2902 = vmatpush.bf16.msra.mxu0 %v3555_v53  ;;  %v4131_v12 = vor.u32 %v4825_v3, %v4128_v35  ;;  %v4917_v53 = vld [vmem:[%s7429_s1 + $0xb8c] sm:$0xf]  ;;  %v4352_v37 = vld [vmem:[%s7429_s1 + $0xa78] sm:$0xf0] }
 0x15e   :  { %v4499_v34 = vor.u32 %v4917_v53, %v4496_v6  ;;  %v4480_v56 = vld [vmem:[%s7429_s1 + $0xb78] sm:$0xf0]  ;;  %v4355_v43 = vor.u32 %v4881_v36, %v4352_v37  ;;  %v4809_v8 = vld [vmem:[%s7429_s1 + $0x82c] sm:$0xf] }
 0x15f   :  { %2915 = vmatpush.bf16.msra.mxu1 %v3683_v26  ;;  %2928 = vmatpush.bf16.msra.mxu2 %v3811_v27  ;;  %v4371_v27 = vor.u32 %v4885_v52, %v4368_v18  ;;  %v4080_v47 = vld [vmem:[%s7429_s1 + $0x858] sm:$0xf0]  ;;  %v4483_v50 = vor.u32 %v4913_v39, %v4480_v56  ;;  %v4841_v62 = vld [vmem:[%s7429_s1 + $0x92c] sm:$0xf] }
 0x160   :  { %v4208_v51 = vld [vmem:[%s7429_s1 + $0x958] sm:$0xf0]  ;;  %v4083_v57 = vor.u32 %v4813_v45, %v4080_v47  ;;  %v4905_v35 = vld [vmem:[%s7429_s1 + $0xb2c] sm:$0xf] }
 0x161   :  { %2941 = vmatpush.bf16.msra.mxu3 %v3939_v46  ;;  %2903 = vmatpush.bf16.msra.mxu0 %v3539_v40  ;;  %v7308_v21 = vpop.f32.mrf.mxu0  ;;  %v4849_v46 = vld [vmem:[%s7429_s1 + $0x96c] sm:$0xf]  ;;  %v4464_v24 = vld [vmem:[%s7429_s1 + $0xb58] sm:$0xf0] }
 0x162   :  { %v4227_v40 = vor.u32 %v4849_v46, %v4224_v11  ;;  %v4064_v61 = vld [vmem:[%s7429_s1 + $0x838] sm:$0xf0]  ;;  %v4805_v14 = vld [vmem:[%s7429_s1 + $0x80c] sm:$0xf] }
 0x163   :  { %2916 = vmatpush.bf16.msra.mxu1 %v3667_v48  ;;  %2929 = vmatpush.bf16.msra.mxu2 %v3795_v49  ;;  %v7319_v32 = vpop.f32.mrf.mxu1  ;;  %v4845_v48 = vld [vmem:[%s7429_s1 + $0x94c] sm:$0xf]  ;;  %v4320_v3 = vld [vmem:[%s7429_s1 + $0xa38] sm:$0xf0] }
 0x164   :  { %2904 = vmatmul.bf16.vlgmr.msra.gmra.mxu0 %v5411_v41  ;;  %v4821_v41 = vld [vmem:[%s7429_s1 + $0x88c] sm:$0xf]  ;;  %v4448_v16 = vld [vmem:[%s7429_s1 + $0xb38] sm:$0xf0] }
 0x165   :  { %2942 = vmatpush.bf16.msra.mxu3 %v3923_v22  ;;  %2948 = vmatpush.bf16.msrb.mxu0 %v4163_v54  ;;  %v4877_v22 = vld [vmem:[%s7429_s1 + $0xa4c] sm:$0xf]  ;;  %v4336_v54 = vld [vmem:[%s7429_s1 + $0xa58] sm:$0xf0] }
 0x166   :  { %2930 = vmatmul.bf16.vlgmr.msra.gmra.mxu2 %v5403_v38  ;;  %v4921_v38 = vld [vmem:[%s7429_s1 + $0xbac] sm:$0xf]  ;;  %2917 = vmatmul.bf16.vlgmr.msra.gmra.mxu1 %v5415_v44  ;;  %v4240_v44 = vld [vmem:[%s7429_s1 + $0x998] sm:$0xf0]  ;;  %v4339_v59 = vor.u32 %v4877_v22, %v4336_v54 }
 0x167   :  { %2961 = vmatpush.bf16.msrb.mxu1 %v4291_v13  ;;  %2974 = vmatpush.bf16.msrb.mxu2 %v4419_v55  ;;  %v4515_v4 = vor.u32 %v4921_v38, %v4512_v9  ;;  %v4243_v26 = vor.u32 %v4853_v17, %v4240_v44  ;;  %v4909_v55 = vld [vmem:[%s7429_s1 + $0xb4c] sm:$0xf]  ;;  %v4048_v38 = vld [vmem:[%s7429_s1 + $0x818] sm:$0xf0] }
 0x168   :  { %2943 = vmatmul.bf16.vlgmr.msra.gmra.mxu3 %v5413_v42  ;;  %v4112_v42 = vld [vmem:[%s7429_s1 + $0x898] sm:$0xf0]  ;;  %v4837_v9 = vld [vmem:[%s7429_s1 + $0x90c] sm:$0xf]  ;;  %v4051_v52 = vor.u32 %v4805_v14, %v4048_v38 }
 0x169   :  { %2987 = vmatpush.bf16.msrb.mxu3 %v4547_v23  ;;  %2949 = vmatpush.bf16.msrb.mxu0 %v4147_v0  ;;  %v4115_v20 = vor.u32 %v4821_v41, %v4112_v42  ;;  %v7345_v49 = vpop.f32.mrf.mxu2  ;;  %v2699_v58 = vpop.f32.mrf.mxu0  ;;  %v4211_v23 = vor.u32 %v4845_v48, %v4208_v51  ;;  %v4467_v0 = vor.u32 %v4909_v55, %v4464_v24  ;;  %v4869_v41 = vld [vmem:[%s7429_s1 + $0xa0c] sm:$0xf]  ;;  %v4304_v42 = vld [vmem:[%s7429_s1 + $0xa18] sm:$0xf0] }
 0x16a   :  { %v4432_v44 = vld [vmem:[%s7429_s1 + $0xb18] sm:$0xf0]  ;;  %v4307_v53 = vor.u32 %v4869_v41, %v4304_v42 }
 0x16b   :  { %2962 = vmatpush.bf16.msrb.mxu1 %v4275_v1  ;;  %2975 = vmatpush.bf16.msrb.mxu2 %v4403_v2  ;;  %v7356_v13 = vpop.f32.mrf.mxu3  ;;  %v2712_v63 = vpop.f32.mrf.mxu1  ;;  %v4192_v1 = vld [vmem:[%s7429_s1 + $0x938] sm:$0xf0]  ;;  %v4873_v2 = vld [vmem:[%s7429_s1 + $0xa2c] sm:$0xf] }
 0x16c   :  { %v4195_v7 = vor.u32 %v4841_v62, %v4192_v1  ;;  %v4323_v19 = vor.u32 %v4873_v2, %v4320_v3 }
 0x16d   :  { %2988 = vmatpush.bf16.msrb.mxu3 %v4531_v5  ;;  %2950 = vmatpush.bf16.msrb.mxu0 %v4131_v12  ;;  %v4067_v5 = vor.u32 %v4809_v8, %v4064_v61 }
 0x16f   :  { %2963 = vmatpush.bf16.msrb.mxu1 %v4259_v10  ;;  %2976 = vmatpush.bf16.msrb.mxu2 %v4387_v15  ;;  %v4451_v10 = vor.u32 %v4905_v35, %v4448_v16  ;;  %v4176_v15 = vld [vmem:[%s7429_s1 + $0x918] sm:$0xf0] }
 0x170   :  { %v4179_v18 = vor.u32 %v4837_v9, %v4176_v15 }
 0x171   :  { %2989 = vmatpush.bf16.msrb.mxu3 %v4515_v4  ;;  %2951 = vmatpush.bf16.msrb.mxu0 %v4115_v20  ;;  %v2725_v12 = vpop.f32.mrf.mxu2  ;;  %v4901_v4 = vld [vmem:[%s7429_s1 + $0xb0c] sm:$0xf]  ;;  %v4932_v20 = vld [vmem:[%s7431_s2] sm:$0xf] }
 0x172   :  { %v4435_v6 = vor.u32 %v4901_v4, %v4432_v44  ;;  %v409_v63 = vperm.slane %v4932_v20, 3 }
 0x173   :  { %2964 = vmatpush.bf16.msrb.mxu1 %v4243_v26  ;;  %2977 = vmatpush.bf16.msrb.mxu2 %v4371_v27  ;;  %v2738_v17 = vpop.f32.mrf.mxu3  ;;  %v408_v26 = vperm.slane %v4932_v20, 2 }
 0x175   :  { %2990 = vmatpush.bf16.msrb.mxu3 %v4499_v34  ;;  %2952 = vmatpush.bf16.msrb.mxu0 %v4099_v60  ;;  %v2698_v28 = vadd.f32 %v7308_v21, %v408_v26 }
 0x177   :  { %2965 = vmatpush.bf16.msrb.mxu1 %v4227_v40  ;;  %2978 = vmatpush.bf16.msrb.mxu2 %v4355_v43  ;;  %v2711_v46 = vadd.f32 %v7319_v32, %v2698_v28 }
 0x179   :  { %2991 = vmatpush.bf16.msrb.mxu3 %v4483_v50  ;;  %2953 = vmatpush.bf16.msrb.mxu0 %v4083_v57 }
 0x17b   :  { %2966 = vmatpush.bf16.msrb.mxu1 %v4211_v23  ;;  %2979 = vmatpush.bf16.msrb.mxu2 %v4339_v59 }
 0x17d   :  { %2992 = vmatpush.bf16.msrb.mxu3 %v4467_v0  ;;  %2954 = vmatpush.bf16.msrb.mxu0 %v4067_v5 }
 0x17f   :  { %2967 = vmatpush.bf16.msrb.mxu1 %v4195_v7  ;;  %2980 = vmatpush.bf16.msrb.mxu2 %v4323_v19 }
 0x181   :  { %2993 = vmatpush.bf16.msrb.mxu3 %v4451_v10  ;;  %2955 = vmatpush.bf16.msrb.mxu0 %v4051_v52  ;;  %v2749_v27 = vpop.f32.mrf.mxu0 }
 0x183   :  { %2968 = vmatpush.bf16.msrb.mxu1 %v4179_v18  ;;  %2981 = vmatpush.bf16.msrb.mxu2 %v4307_v53  ;;  %v2762_v31 = vpop.f32.mrf.mxu1 }
 0x184   :  { %2956 = vmatmul.bf16.vlgmr.msrb.gmra.mxu0 %v5604_v25 }
 0x185   :  { %2994 = vmatpush.bf16.msrb.mxu3 %v4435_v6 }
 0x186   :  { %2969 = vmatmul.bf16.vlgmr.msrb.gmra.mxu1 %v5617_v30  ;;  %2982 = vmatmul.bf16.vlgmr.msrb.gmra.mxu2 %v5615_v29  ;;  %v2724_v30 = vadd.f32 %v7345_v49, %v2711_v46 }
 0x188   :  { %2995 = vmatmul.bf16.vlgmr.msrb.gmra.mxu3 %v5625_v33  ;;  %v2737_v29 = vadd.f32 %v7356_v13, %v2724_v30 }
 0x189   :  { %v2775_v34 = vpop.f32.mrf.mxu2  ;;  %v2751_v25 = vpop.f32.mrf.mxu0 }
 0x18a   :  { %v2750_v39 = vadd.f32 %v2749_v27, %v2737_v29 }
 0x18b   :  { %v2788_v11 = vpop.f32.mrf.mxu3  ;;  %v2764_v36 = vpop.f32.mrf.mxu1 }
 0x18c   :  { %v2763_v56 = vadd.f32 %v2762_v31, %v2750_v39 }
 0x18e   :  { %v2776_v60 = vadd.f32 %v2775_v34, %v2763_v56 }
 0x190   :  { %v2789_v40 = vadd.f32 %v2788_v11, %v2776_v60 }
 0x191   :  { %v2777_v33 = vpop.f32.mrf.mxu2 }
 0x193   :  { %v2790_v37 = vpop.f32.mrf.mxu3 }
 0x1a1   :  { %v2801_v43 = vpop.f32.mrf.mxu0 }
 0x1a2   :  { %v2802_v21 = vadd.f32 %v2801_v43, %v2789_v40 }
 0x1a3   :  { %v2814_v45 = vpop.f32.mrf.mxu1 }
 0x1a4   :  { %v2815_v47 = vadd.f32 %v2814_v45, %v2802_v21 }
 0x1a9   :  { %v2827_v48 = vpop.f32.mrf.mxu2  ;;  %v2803_v51 = vpop.f32.mrf.mxu0 }
 0x1aa   :  { %v2828_v32 = vadd.f32 %v2827_v48, %v2815_v47 }
 0x1ab   :  { %v2840_v50 = vpop.f32.mrf.mxu3  ;;  %v2816_v22 = vpop.f32.mrf.mxu1 }
 0x1ac   :  { %v2841_v54 = vadd.f32 %v2840_v50, %v2828_v32 }
 0x1ae   :  { %v3002_v49 = vmax.f32 %v2841_v54, 0.0 }
 0x1b0   :  { %3006 = vst [vmem:[%s7432_s3 + $0x10] sm:$0xff] %v3002_v49 }
 0x1b1   :  { %v2829_v13 = vpop.f32.mrf.mxu2 }
 0x1b3   :  { %v2842_v55 = vpop.f32.mrf.mxu3 }
 0x1c1   :  { %v2853_v24 = vpop.f32.mrf.mxu0 }
 0x1c2   :  { %v2854_v0 = vadd.f32 %v2853_v24, %v409_v63 }
 0x1c3   :  { %v2866_v57 = vpop.f32.mrf.mxu1 }
 0x1c4   :  { %v2867_v3 = vadd.f32 %v2866_v57, %v2854_v0 }
 0x1c9   :  { %v2879_v58 = vpop.f32.mrf.mxu2  ;;  %v2855_v59 = vpop.f32.mrf.mxu0 }
 0x1ca   :  { %v2880_v5 = vadd.f32 %v2879_v58, %v2867_v3 }
 0x1cb   :  { %v2892_v23 = vpop.f32.mrf.mxu3  ;;  %v2868_v8 = vpop.f32.mrf.mxu1 }
 0x1cc   :  { %v2893_v14 = vadd.f32 %v2892_v23, %v2880_v5 }
 0x1d1   :  { %v2881_v61 = vpop.f32.mrf.mxu2 }
 0x1d3   :  { %v2894_v62 = vpop.f32.mrf.mxu3 }
 0x1e1   :  { %v2905_v1 = vpop.f32.mrf.mxu0 }
 0x1e2   :  { %v2906_v12 = vadd.f32 %v2905_v1, %v2893_v14 }
 0x1e3   :  { %v2918_v2 = vpop.f32.mrf.mxu1 }
 0x1e4   :  { %v2919_v10 = vadd.f32 %v2918_v2, %v2906_v12 }
 0x1e9   :  { %v2931_v35 = vpop.f32.mrf.mxu2  ;;  %v2907_v7 = vpop.f32.mrf.mxu0 }
 0x1ea   :  { %v2932_v15 = vadd.f32 %v2931_v35, %v2919_v10 }
 0x1eb   :  { %v2944_v16 = vpop.f32.mrf.mxu3  ;;  %v2920_v19 = vpop.f32.mrf.mxu1 }
 0x1ec   :  { %v2945_v41 = vadd.f32 %v2944_v16, %v2932_v15 }
 0x1f1   :  { %v2933_v38 = vpop.f32.mrf.mxu2 }
 0x1f3   :  { %v2946_v9 = vpop.f32.mrf.mxu3 }
 0x201   :  { %v2957_v42 = vpop.f32.mrf.mxu0 }
 0x202   :  { %v2958_v4 = vadd.f32 %v2957_v42, %v2945_v41 }
 0x203   :  { %v2970_v17 = vpop.f32.mrf.mxu1 }
 0x204   :  { %v2971_v44 = vadd.f32 %v2970_v17, %v2958_v4 }
 0x209   :  { %v2983_v52 = vpop.f32.mrf.mxu2  ;;  %v2959_v6 = vpop.f32.mrf.mxu0 }
 0x20a   :  { %v2984_v18 = vadd.f32 %v2983_v52, %v2971_v44 }
 0x20b   :  { %v2996_v53 = vpop.f32.mrf.mxu3  ;;  %v2972_v20 = vpop.f32.mrf.mxu1 }
 0x20c   :  { %v2997_v26 = vadd.f32 %v2996_v53, %v2984_v18 }
 0x20e   :  { %v3003_v27 = vmax.f32 %v2997_v26, 0.0 }
 0x210   :  { %3007 = vst [vmem:[%s7432_s3 + $0x18] sm:$0xff] %v3003_v27 }
 0x211   :  { %v2985_v28 = vpop.f32.mrf.mxu2 }
 0x213   :  { %v2998_v31 = vpop.f32.mrf.mxu3 }

</bundles_post_ra>
